<compile_context>
chip_gen: v7x
topology: tpu7x:2x2x1
jax: 0.10.0
libtpu: 0.0.40
codegen_flags: <defaults>
</compile_context>

<pallas_src>
import jax
import jax.numpy as jnp
from jax.experimental import pallas as pl
from jax.experimental.pallas import tpu as pltpu

EPS = 1e-5                      # nn.BatchNorm2d / nn.InstanceNorm2d default
C_PAD = 128                     # GEMM output lanes (one full lane tile)
MAX_TILE_M = 1024               # max GEMM row tile (HBM-roofline sweet spot)
VMEM_LIMIT = 32 * 1024 * 1024   # explicit scoped-VMEM budget (safe on v5e/v6e/v7x)


def _compiler_params():
    return pltpu.CompilerParams(dimension_semantics=("parallel",),
                                vmem_limit_bytes=VMEM_LIMIT)


def _ceil_to(x, m):
    return (x + m - 1) // m * m


def _pick_tile_m(m):
    # Big row tiles (mem-bound kernels hit ~85% of HBM roofline at >=512),
    # but keep the grid >= 2 steps when possible so the "parallel" axis can
    # shard across the two v7x TensorCores.
    mp8 = _ceil_to(m, 8)
    if mp8 > 2 * MAX_TILE_M:
        return MAX_TILE_M
    if mp8 >= 16:
        return _ceil_to((mp8 + 1) // 2, 8)
    return mp8


def _pad_rows(a, tile):
    m = a.shape[0]
    mp = _ceil_to(m, tile)
    if mp != m:
        a = jnp.pad(a, ((0, mp - m), (0, 0)))
    return a, mp


def _use_fused_dual_gemm():
    # v6e/v7x MXUs are 256 lanes wide -> the rescale output columns are free in
    # one fused (K, 256) matmul.  v5e's MXU is 128 wide: keep two 128-wide dots.
    try:
        kind = jax.devices()[0].device_kind.lower()
    except Exception:
        return True
    return not (("v5 lite" in kind) or ("v5lite" in kind) or ("v5e" in kind))


_FUSED_DUAL = _use_fused_dual_gemm()


# ----------------------------- Pallas kernels ------------------------------

def _gemm_kernel(x_ref, w_ref, o_ref):
    o_ref[...] = jnp.dot(x_ref[...], w_ref[...],
                         preferred_element_type=jnp.float32).astype(o_ref.dtype)


def _stats_block(y):
    # Full (8, C) stats block built in registers: rows 0/1 = sum / sum-of-squares.
    s = jnp.sum(y, axis=0, keepdims=True)
    sq = jnp.sum(y * y, axis=0, keepdims=True)
    return jnp.concatenate([s, sq, jnp.zeros((6, y.shape[1]), jnp.float32)], axis=0)


def _gemm_stats_kernel(x_ref, w_ref, y_ref, ps_ref):
    y = jnp.dot(x_ref[...], w_ref[...], preferred_element_type=jnp.float32)
    y_ref[...] = y.astype(y_ref.dtype)          # bf16 intermediate to HBM
    ps_ref[...] = _stats_block(y)                # exact f32 partial sums


def _dual_gemm_fused_kernel(x_ref, w_ref, y_ref, ps_ref):
    # One (tm, K) x (K, 256) dot producing [conv1 | rescale] (v6e/v7x).
    y = jnp.dot(x_ref[...], w_ref[...], preferred_element_type=jnp.float32)
    y_ref[...] = y.astype(y_ref.dtype)
    ps_ref[...] = _stats_block(y)


def _dual_gemm_split_kernel(x_ref, w1_ref, wid_ref, y_ref, ps_ref):
    # v5e: two 128-wide dots (each already fills the 128-wide MXU).
    y1 = jnp.dot(x_ref[...], w1_ref[...], preferred_element_type=jnp.float32)
    yid = jnp.dot(x_ref[...], wid_ref[...], preferred_element_type=jnp.float32)
    y = jnp.concatenate([y1, yid], axis=-1)
    y_ref[...] = y.astype(y_ref.dtype)
    ps_ref[...] = _stats_block(y)


def _bn_relu_kernel(y_ref, sc_ref, bi_ref, o_ref):
    # f32 epilogue math (no bf16 VPU on v5e), bf16 store.
    y = y_ref[...].astype(jnp.float32)
    o_ref[...] = jnp.maximum(y * sc_ref[...] + bi_ref[...], 0.0).astype(o_ref.dtype)


def _bn_relu_add_kernel(y2_ref, yid_ref, sc2_ref, bi2_ref, scid_ref, biid_ref, o_ref):
    # relu(bn(conv2)) + relu(bn(rescale))  -- matches the reference Residual.
    a = jnp.maximum(y2_ref[...].astype(jnp.float32) * sc2_ref[...] + bi2_ref[...], 0.0)
    b = jnp.maximum(yid_ref[...].astype(jnp.float32) * scid_ref[...] + biid_ref[...], 0.0)
    o_ref[...] = (a + b).astype(o_ref.dtype)


def _instance_norm_kernel(x_ref, o_ref):
    # nn.InstanceNorm2d(affine=False): per-(n, c) normalization over H*W.
    # NHWC layout: block (1, H*W, C_PAD), reduce over the sublane/spatial axis.
    x = x_ref[...].astype(jnp.float32)
    mean = jnp.mean(x, axis=1, keepdims=True)
    var = jnp.mean(jnp.square(x - mean), axis=1, keepdims=True)
    o_ref[...] = ((x - mean) * jax.lax.rsqrt(var + EPS)).astype(o_ref.dtype)


# ---------------------------- Pallas wrappers -------------------------------

def _reduce_stats(ps, nm):
    ps = ps.reshape(nm, 8, ps.shape[-1])
    return jnp.sum(ps[:, 0, :], axis=0), jnp.sum(ps[:, 1, :], axis=0)


def pallas_gemm(x, w, out_dtype=jnp.bfloat16):
    """Tiled (M, K) x (K, C) GEMM, bf16 operands, f32 accumulate."""
    m = x.shape[0]
    tm = _pick_tile_m(m)
    xp, mp = _pad_rows(x, tm)
    k, cp = xp.shape[1], w.shape[1]
    nm = mp // tm
    out = pl.pallas_call(
        _gemm_kernel,
        out_shape=jax.ShapeDtypeStruct((mp, cp), out_dtype),
        grid=(nm,),
        in_specs=[pl.BlockSpec((tm, k), lambda i: (i, 0)),
                  pl.BlockSpec((k, cp), lambda i: (0, 0))],
        out_specs=pl.BlockSpec((tm, cp), lambda i: (i, 0)),
        compiler_params=_compiler_params(),
        cost_estimate=pl.CostEstimate(
            flops=2 * mp * k * cp, transcendentals=0,
            bytes_accessed=xp.size * 2 + w.size * 2
            + mp * cp * jnp.dtype(out_dtype).itemsize),
    )(xp, w)
    return out[:m]


def pallas_gemm_stats(patches, w):
    m = patches.shape[0]
    tm = _pick_tile_m(m)
    xp, mp = _pad_rows(patches, tm)
    k, cp = xp.shape[1], w.shape[1]
    nm = mp // tm
    y, ps = pl.pallas_call(
        _gemm_stats_kernel,
        out_shape=(jax.ShapeDtypeStruct((mp, cp), jnp.bfloat16),
                   jax.ShapeDtypeStruct((nm * 8, cp), jnp.float32)),
        grid=(nm,),
        in_specs=[pl.BlockSpec((tm, k), lambda i: (i, 0)),
                  pl.BlockSpec((k, cp), lambda i: (0, 0))],
        out_specs=(pl.BlockSpec((tm, cp), lambda i: (i, 0)),
                   pl.BlockSpec((8, cp), lambda i: (i, 0))),
        compiler_params=_compiler_params(),
        cost_estimate=pl.CostEstimate(
            flops=2 * mp * k * cp, transcendentals=0,
            bytes_accessed=xp.size * 2 + w.size * 2 + mp * cp * 2),
    )(xp, w)
    return y, _reduce_stats(ps, nm), m, tm


def pallas_dual_gemm(patches, w1, wid, fused):
    """conv1 (3x3/s2) + rescale (1x1/s2) sharing one tight-K patch tile.

    Returns y (M, 256) bf16 with columns [0:128)=conv1, [128:256)=rescale,
    plus f32 (sum, sumsq) stats for each half.
    """
    m = patches.shape[0]
    tm = _pick_tile_m(m)
    xp, mp = _pad_rows(patches, tm)
    k = xp.shape[1]
    nm = mp // tm
    cp2 = 2 * C_PAD
    if fused:
        kernel = _dual_gemm_fused_kernel
        in_specs = [pl.BlockSpec((tm, k), lambda i: (i, 0)),
                    pl.BlockSpec((k, cp2), lambda i: (0, 0))]
        args = (xp, jnp.concatenate([w1, wid], axis=1))
    else:
        kernel = _dual_gemm_split_kernel
        in_specs = [pl.BlockSpec((tm, k), lambda i: (i, 0)),
                    pl.BlockSpec((k, C_PAD), lambda i: (0, 0)),
                    pl.BlockSpec((k, C_PAD), lambda i: (0, 0))]
        args = (xp, w1, wid)
    y, ps = pl.pallas_call(
        kernel,
        out_shape=(jax.ShapeDtypeStruct((mp, cp2), jnp.bfloat16),
                   jax.ShapeDtypeStruct((nm * 8, cp2), jnp.float32)),
        grid=(nm,),
        in_specs=in_specs,
        out_specs=(pl.BlockSpec((tm, cp2), lambda i: (i, 0)),
                   pl.BlockSpec((8, cp2), lambda i: (i, 0))),
        compiler_params=_compiler_params(),
        cost_estimate=pl.CostEstimate(
            flops=2 * mp * k * cp2, transcendentals=0,
            bytes_accessed=xp.size * 2 + k * cp2 * 2 + mp * cp2 * 2),
    )(*args)
    s, sq = _reduce_stats(ps, nm)
    return y, (s[:C_PAD], sq[:C_PAD]), (s[C_PAD:], sq[C_PAD:]), m, tm


def pallas_bn_relu(y_pad, col_block, scale, bias, m_real, tm):
    # Reads only the selected 128-column block of y_pad (no wasted traffic).
    mp = y_pad.shape[0]
    nm = mp // tm
    out = pl.pallas_call(
        _bn_relu_kernel,
        out_shape=jax.ShapeDtypeStruct((mp, C_PAD), jnp.bfloat16),
        grid=(nm,),
        in_specs=[pl.BlockSpec((tm, C_PAD), lambda i, c=col_block: (i, c)),
                  pl.BlockSpec((1, C_PAD), lambda i: (0, 0)),
                  pl.BlockSpec((1, C_PAD), lambda i: (0, 0))],
        out_specs=pl.BlockSpec((tm, C_PAD), lambda i: (i, 0)),
        compiler_params=_compiler_params(),
    )(y_pad, scale, bias)
    return out[:m_real]


def pallas_bn_relu_add(y2_pad, ydual_pad, sc2, bi2, scid, biid, m_real, tm):
    mp = y2_pad.shape[0]
    assert ydual_pad.shape[0] == mp
    nm = mp // tm
    out = pl.pallas_call(
        _bn_relu_add_kernel,
        out_shape=jax.ShapeDtypeStruct((mp, C_PAD), jnp.bfloat16),
        grid=(nm,),
        in_specs=[pl.BlockSpec((tm, C_PAD), lambda i: (i, 0)),
                  pl.BlockSpec((tm, C_PAD), lambda i: (i, 1)),   # rescale half
                  pl.BlockSpec((1, C_PAD), lambda i: (0, 0)),
                  pl.BlockSpec((1, C_PAD), lambda i: (0, 0)),
                  pl.BlockSpec((1, C_PAD), lambda i: (0, 0)),
                  pl.BlockSpec((1, C_PAD), lambda i: (0, 0))],
        out_specs=pl.BlockSpec((tm, C_PAD), lambda i: (i, 0)),
        compiler_params=_compiler_params(),
    )(y2_pad, ydual_pad, sc2, bi2, scid, biid)
    return out[:m_real]


def pallas_instance_norm(x_nhwc):
    n, h, w, c = x_nhwc.shape
    hw = h * w
    xr = x_nhwc.reshape(n, hw, c)
    out = pl.pallas_call(
        _instance_norm_kernel,
        out_shape=jax.ShapeDtypeStruct((n, hw, c), jnp.bfloat16),
        grid=(n,),
        in_specs=[pl.BlockSpec((1, hw, c), lambda i: (i, 0, 0))],
        out_specs=pl.BlockSpec((1, hw, c), lambda i: (i, 0, 0)),
        compiler_params=_compiler_params(),
    )(xr)
    return out.reshape(n, h, w, c)


# ------------------------------- JAX glue -----------------------------------

def _extract_patches_tight(x_padc, cin, ksize, stride, pad):
    """im2col with a TIGHT contraction dim.

    x_padc: (N, H, W, C_PAD) bf16 with real data in [..., :cin].
    Returns (M, Kp) bf16 patches, K = ksize*ksize*cin in (kh, kw, cin) order,
    zero-padded once to a multiple of 128 lanes, plus (n, ho, wo).
    """
    # TODO(synk): patches are still materialized in HBM by XLA; an in-kernel
    # per-tap accumulation (extra "arbitrary" grid axis + f32 VMEM accumulator)
    # would remove that remaining round trip.
    n, h, w, _ = x_padc.shape
    x = x_padc[..., :cin]
    if pad:
        x = jnp.pad(x, ((0, 0), (pad, pad), (pad, pad), (0, 0)))
    ho = (h + 2 * pad - ksize) // stride + 1
    wo = (w + 2 * pad - ksize) // stride + 1
    cols = []
    for kh in range(ksize):
        for kw in range(ksize):
            cols.append(x[:, kh:kh + stride * (ho - 1) + 1:stride,
                          kw:kw + stride * (wo - 1) + 1:stride, :])
    p = cols[0] if len(cols) == 1 else jnp.concatenate(cols, axis=-1)
    k = ksize * ksize * cin
    p = p.reshape(n * ho * wo, k)
    kp = _ceil_to(k, 128)
    if kp != k:
        p = jnp.pad(p, ((0, 0), (0, kp - k)))
    return p.astype(jnp.bfloat16), (n, ho, wo)


def _bn_scale_bias(stats, gamma_p, beta_p, m_real):
    # nn.BatchNorm2d, training-mode batch statistics (biased variance), folded
    # into a per-channel scale/bias.  Padded channels have gamma=beta=0 -> 0.
    # TODO(synk): running_mean/var update (eval-mode parity) not implemented.
    s, sq = stats
    mean = s / m_real
    var = jnp.maximum(sq / m_real - mean * mean, 0.0)
    scale = gamma_p * jax.lax.rsqrt(var + EPS)
    bias = beta_p - mean * scale
    return (scale.reshape(1, -1).astype(jnp.float32),
            bias.reshape(1, -1).astype(jnp.float32))


# --------------------------- Parameters / model ------------------------------

def _conv_weight_to_gemm(w_oihw):
    # (Cout, Cin, K, K) -> (ceil(K*K*Cin, 128), C_PAD) bf16.  Rows are packed
    # tight in (kh, kw, cin) order and padded ONCE (not per tap).
    cout, cin, k, _ = w_oihw.shape
    kk = k * k * cin
    kp = _ceil_to(kk, 128)
    w = jnp.transpose(w_oihw, (2, 3, 1, 0)).reshape(kk, cout)
    w = jnp.pad(w, ((0, kp - kk), (0, C_PAD - cout)))
    return w.astype(jnp.bfloat16)


def _rescale_weight_fullk(w_oihw, kp):
    # 1x1 rescale weight lifted onto the 3x3 patch rows: nonzero only on the
    # centre-tap rows [4*cin, 5*cin), so it contracts against the same patch
    # tile as conv1 (single shared input read; fusable into a 256-wide output).
    cout, cin, _, _ = w_oihw.shape
    w = jnp.transpose(w_oihw[:, :, 0, 0], (1, 0))     # (cin, cout)
    full = jnp.zeros((kp, C_PAD), jnp.float32)
    full = full.at[4 * cin:5 * cin, :cout].set(w)
    return full.astype(jnp.bfloat16)


def _affine_padded(cout):
    gamma = jnp.zeros((C_PAD,), jnp.float32).at[:cout].set(1.0)
    beta = jnp.zeros((C_PAD,), jnp.float32)
    return gamma, beta


def init_params(key, in_channels, base_channels, depth, out_channels=None):
    # base_channels == in_channels is required for the reference wiring to be
    # self-consistent (the first Downsample is declared with in_channels).
    # NOTE: all convs in the reference use bias=False, so no conv biases here.
    assert in_channels == base_channels
    assert base_channels * 2 ** depth <= C_PAD, "widen C_PAD for larger models"

    def raw_w(k, cout, cin, ks):
        fan_in = cin * ks * ks
        return jax.random.normal(k, (cout, cin, ks, ks), jnp.float32) / jnp.sqrt(fan_in)

    keys = iter(jax.random.split(key, 2 + 4 * depth))
    params = {"in_conv_w": _conv_weight_to_gemm(
        raw_w(next(keys), base_channels, in_channels, 1))}
    downs = []
    for lvl in range(depth):
        c_in = in_channels if lvl == 0 else base_channels * 2 ** (lvl - 1)
        c_out = base_channels * 2 ** lvl
        kp = _ceil_to(9 * c_in, 128)
        g1, b1 = _affine_padded(c_out)
        g2, b2 = _affine_padded(c_out)
        gr, br = _affine_padded(c_out)
        downs.append({
            "conv1_w": _conv_weight_to_gemm(raw_w(next(keys), c_out, c_in, 3)),
            "bn1_g": g1, "bn1_b": b1,
            "conv2_w": _conv_weight_to_gemm(raw_w(next(keys), c_out, c_out, 3)),
            "bn2_g": g2, "bn2_b": b2,
            "rescale_w": _rescale_weight_fullk(raw_w(next(keys), c_out, c_in, 1), kp),
            "bnr_g": gr, "bnr_b": br,
            # down (1x1) reads the 128-wide residual activation directly
            # (padded channels are zero), so its contraction dim is C_PAD.
            "down_w": jnp.pad(
                jnp.transpose(raw_w(next(keys), c_out, c_out, 1)[:, :, 0, 0], (1, 0)),
                ((0, C_PAD - c_out), (0, C_PAD - c_out))).astype(jnp.bfloat16),
        })
    params["downsamples"] = downs
    c_final = base_channels * 2 ** (depth - 1)    # channels actually produced
    out_c = base_channels * 2 ** depth if out_channels is None else out_channels
    # TODO(synk): the reference declares out_conv with in_channels=base*2**depth,
    # which does not match the channel count produced by its own downsample
    # stack (base*2**(depth-1)); out_conv is sized to the actual channel count
    # so the forward pass is runnable.
    params["out_conv_w"] = _conv_weight_to_gemm(raw_w(next(keys), out_c, c_final, 1))
    return params


def unet_encoder_forward(params, x_nchw, *, in_channels, base_channels, depth,
                         out_channels=None):
    n, _, h, w = x_nchw.shape
    out_c = base_channels * 2 ** depth if out_channels is None else out_channels
    skip_channels = [base_channels] + [base_channels * 2 ** i for i in range(depth - 1)]
    fused_dual = _FUSED_DUAL

    # NCHW -> NHWC (real channels), bf16 MXU operands.
    x_in = jnp.transpose(x_nchw, (0, 2, 3, 1)).astype(jnp.bfloat16)

    # in_conv: 1x1, stride 1 -> plain tiled GEMM; K padded once to 128.
    xk = x_in.reshape(n * h * w, in_channels)
    xk = jnp.pad(xk, ((0, 0), (0, _ceil_to(in_channels, 128) - in_channels)))
    x = pallas_gemm(xk, params["in_conv_w"]).reshape(n, h, w, C_PAD)

    skips = []
    for lvl in range(depth):
        d = params["downsamples"][lvl]
        c_in = in_channels if lvl == 0 else base_channels * 2 ** (lvl - 1)
        c_out = base_channels * 2 ** lvl
        skips.append(x)

        # Residual(stride=2): conv1 (3x3/s2/p1) and rescale (1x1/s2) share one
        # tight-K patch tile in a single dual GEMM that also emits BN stats.
        patches, (_, ho, wo) = _extract_patches_tight(x, c_in, 3, 2, 1)
        y_dual, st1, stid, m, tm = pallas_dual_gemm(
            patches, d["conv1_w"], d["rescale_w"], fused_dual)
        sc1, bi1 = _bn_scale_bias(st1, d["bn1_g"], d["bn1_b"], m)
        scid, biid = _bn_scale_bias(stid, d["bnr_g"], d["bnr_b"], m)
        h1 = pallas_bn_relu(y_dual, 0, sc1, bi1, m, tm).reshape(n, ho, wo, C_PAD)

        # conv2 (3x3/s1/p1) + BN stats, then one fused epilogue:
        #   relu(bn(conv2)) + relu(bn(rescale))   (reference Residual order).
        patches2, _ = _extract_patches_tight(h1, c_out, 3, 1, 1)
        y2, st2, m2, tm2 = pallas_gemm_stats(patches2, d["conv2_w"])
        assert m2 == m and tm2 == tm
        sc2, bi2 = _bn_scale_bias(st2, d["bn2_g"], d["bn2_b"], m2)
        r = pallas_bn_relu_add(y2, y_dual, sc2, bi2, scid, biid, m2, tm2
                               ).reshape(n, ho, wo, C_PAD)

        # Downsample.down: 1x1 conv, stride 2, no norm / no activation.  The
        # 128-wide residual activation feeds the GEMM directly; only the
        # spatial stride-2 subsample is XLA glue.
        # TODO(synk): fold the stride-2 row selection into the bn_relu_add
        # output spec / a strided BlockSpec to avoid this small extra copy.
        r_sub = r[:, ::2, ::2, :]
        hd, wd = r_sub.shape[1], r_sub.shape[2]
        x = pallas_gemm(r_sub.reshape(n * hd * wd, C_PAD),
                        d["down_w"]).reshape(n, hd, wd, C_PAD)
        h, w = hd, wd

    # out_norm: InstanceNorm2d(affine=False), directly in NHWC (no transposes).
    x = pallas_instance_norm(x)

    # out_conv: 1x1 -> plain GEMM, f32 output.
    out = pallas_gemm(x.reshape(n * h * w, C_PAD), params["out_conv_w"],
                      out_dtype=jnp.float32).reshape(n, h, w, C_PAD)

    latent = jnp.transpose(out[..., :out_c], (0, 3, 1, 2))
    skips_nchw = tuple(
        jnp.transpose(s[..., :c].astype(jnp.float32), (0, 3, 1, 2))
        for s, c in zip(skips, skip_channels))
    # NOTE: the PyTorch forward returns None when skip_connections=False; we
    # always return the computed (latent, skips) == UNetEncoderOutput fields.
    return latent, skips_nchw


if __name__ == "__main__":
    in_channels, base_channels, depth = 4, 4, 2
    N, H, W = 2, 32, 32

    key = jax.random.PRNGKey(0)
    k_params, k_x = jax.random.split(key)
    params = init_params(k_params, in_channels, base_channels, depth)
    x = jax.random.normal(k_x, (N, in_channels, H, W), jnp.float32)

    fwd = jax.jit(unet_encoder_forward,
                  static_argnames=("in_channels", "base_channels", "depth",
                                   "out_channels"))
    latent, skips = fwd(params, x, in_channels=in_channels,
                        base_channels=base_channels, depth=depth)
    jax.block_until_ready(latent)
    for s in skips:
        jax.block_until_ready(s)
    print("KERNEL_OK")
</pallas_src>

<mosaic_0001>
module attributes {stable_mosaic.version = 11 : i64} {
  func.func @_gemm_kernel(%arg0: i32, %arg1: memref<1024x128xbf16, #tpu.memory_space<vmem>>, %arg2: memref<128x128xbf16, #tpu.memory_space<vmem>>, %arg3: memref<1024x128xbf16, #tpu.memory_space<vmem>>) attributes {dimension_semantics = [#tpu.dimension_semantics<parallel>], iteration_bounds = array<i64: 2>, scalar_prefetch = 0 : i64, scratch_operands = 0 : i64, tpu.core_type = #tpu.core_type<tc>, window_params = [{transform_indices = @transform_0, window_bounds = array<i64: 1024, 128>}, {pipeline_mode = #tpu.pipeline_mode<synchronous>, transform_indices = @transform_1, window_bounds = array<i64: 128, 128>}, {transform_indices = @transform_2, window_bounds = array<i64: 1024, 128>}]} {
    %c0 = arith.constant 0 : index
    %c0_0 = arith.constant 0 : index
    %0 = vector.load %arg1[%c0, %c0_0] : memref<1024x128xbf16, #tpu.memory_space<vmem>>, vector<1024x128xbf16>
    %c0_1 = arith.constant 0 : index
    %c0_2 = arith.constant 0 : index
    %1 = vector.load %arg2[%c0_1, %c0_2] : memref<128x128xbf16, #tpu.memory_space<vmem>>, vector<128x128xbf16>
    %cst = arith.constant dense<0.000000e+00> : vector<1024x128xf32>
    %2 = tpu.matmul %0, %1, %cst {dimension_numbers = #tpu.dot_dimension_numbers<[1], [0], [0], [1], [0, 0, 1, 1], [], []>} : vector<1024x128xbf16>, vector<128x128xbf16>, vector<1024x128xf32> -> vector<1024x128xf32>
    %3 = arith.truncf %2 : vector<1024x128xf32> to vector<1024x128xbf16>
    %c0_3 = arith.constant 0 : index
    %c0_4 = arith.constant 0 : index
    %4 = vector.load %arg3[%c0_3, %c0_4] : memref<1024x128xbf16, #tpu.memory_space<vmem>>, vector<1024x128xbf16>
    tpu.vector_store %arg3[%c0_3, %c0_4], %3 {strides = array<i32>} : memref<1024x128xbf16, #tpu.memory_space<vmem>>, vector<1024x128xbf16>,
    return
  }
  func.func @transform_0(%arg0: i32) -> (i32, i32) {
    %c0_i32 = arith.constant 0 : i32
    %c0_i32_0 = arith.constant 0 : i32
    return %arg0, %c0_i32 : i32, i32
  }
  func.func @transform_1(%arg0: i32) -> (i32, i32) {
    %c0_i32 = arith.constant 0 : i32
    %c0_i32_0 = arith.constant 0 : i32
    %c0_i32_1 = arith.constant 0 : i32
    return %c0_i32, %c0_i32_0 : i32, i32
  }
  func.func @transform_2(%arg0: i32) -> (i32, i32) {
    %c0_i32 = arith.constant 0 : i32
    %c0_i32_0 = arith.constant 0 : i32
    return %arg0, %c0_i32 : i32, i32
  }
}

module attributes {stable_mosaic.version = 11 : i64} {
  func.func @_dual_gemm_fused_kernel(%arg0: i32, %arg1: memref<256x128xbf16, #tpu.memory_space<vmem>>, %arg2: memref<128x256xbf16, #tpu.memory_space<vmem>>, %arg3: memref<256x256xbf16, #tpu.memory_space<vmem>>, %arg4: memref<8x256xf32, #tpu.memory_space<vmem>>) attributes {dimension_semantics = [#tpu.dimension_semantics<parallel>], iteration_bounds = array<i64: 2>, scalar_prefetch = 0 : i64, scratch_operands = 0 : i64, tpu.core_type = #tpu.core_type<tc>, window_params = [{transform_indices = @transform_0, window_bounds = array<i64: 256, 128>}, {pipeline_mode = #tpu.pipeline_mode<synchronous>, transform_indices = @transform_1, window_bounds = array<i64: 128, 256>}, {transform_indices = @transform_2, window_bounds = array<i64: 256, 256>}, {transform_indices = @transform_3, window_bounds = array<i64: 8, 256>}]} {
    %c0 = arith.constant 0 : index
    %c0_0 = arith.constant 0 : index
    %0 = vector.load %arg1[%c0, %c0_0] : memref<256x128xbf16, #tpu.memory_space<vmem>>, vector<256x128xbf16>
    %c0_1 = arith.constant 0 : index
    %c0_2 = arith.constant 0 : index
    %1 = vector.load %arg2[%c0_1, %c0_2] : memref<128x256xbf16, #tpu.memory_space<vmem>>, vector<128x256xbf16>
    %cst = arith.constant dense<0.000000e+00> : vector<256x256xf32>
    %2 = tpu.matmul %0, %1, %cst {dimension_numbers = #tpu.dot_dimension_numbers<[1], [0], [0], [1], [0, 0, 1, 1], [], []>} : vector<256x128xbf16>, vector<128x256xbf16>, vector<256x256xf32> -> vector<256x256xf32>
    %3 = arith.truncf %2 : vector<256x256xf32> to vector<256x256xbf16>
    %c0_3 = arith.constant 0 : index
    %c0_4 = arith.constant 0 : index
    %4 = vector.load %arg3[%c0_3, %c0_4] : memref<256x256xbf16, #tpu.memory_space<vmem>>, vector<256x256xbf16>
    tpu.vector_store %arg3[%c0_3, %c0_4], %3 {strides = array<i32>} : memref<256x256xbf16, #tpu.memory_space<vmem>>, vector<256x256xbf16>,
    %cst_5 = arith.constant dense<0.000000e+00> : vector<256xf32>
    %5 = vector.multi_reduction <add>, %2, %cst_5 [0] : vector<256x256xf32> to vector<256xf32>
    %6 = vector.shape_cast %5 : vector<256xf32> to vector<1x256xf32>
    %7 = arith.mulf %2, %2 : vector<256x256xf32>
    %cst_6 = arith.constant dense<0.000000e+00> : vector<256xf32>
    %8 = vector.multi_reduction <add>, %7, %cst_6 [0] : vector<256x256xf32> to vector<256xf32>
    %9 = vector.shape_cast %8 : vector<256xf32> to vector<1x256xf32>
    %cst_7 = arith.constant 0.000000e+00 : f32
    %10 = vector.broadcast %cst_7 : f32 to vector<6x256xf32>
    %11 = tpu.concatenate %6, %9, %10 in 0 : vector<1x256xf32>, vector<1x256xf32>, vector<6x256xf32> -> vector<8x256xf32>
    %c0_8 = arith.constant 0 : index
    %c0_9 = arith.constant 0 : index
    %12 = vector.load %arg4[%c0_8, %c0_9] : memref<8x256xf32, #tpu.memory_space<vmem>>, vector<8x256xf32>
    tpu.vector_store %arg4[%c0_8, %c0_9], %11 {strides = array<i32>} : memref<8x256xf32, #tpu.memory_space<vmem>>, vector<8x256xf32>,
    return
  }
  func.func @transform_0(%arg0: i32) -> (i32, i32) {
    %c0_i32 = arith.constant 0 : i32
    %c0_i32_0 = arith.constant 0 : i32
    return %arg0, %c0_i32 : i32, i32
  }
  func.func @transform_1(%arg0: i32) -> (i32, i32) {
    %c0_i32 = arith.constant 0 : i32
    %c0_i32_0 = arith.constant 0 : i32
    %c0_i32_1 = arith.constant 0 : i32
    return %c0_i32, %c0_i32_0 : i32, i32
  }
  func.func @transform_2(%arg0: i32) -> (i32, i32) {
    %c0_i32 = arith.constant 0 : i32
    %c0_i32_0 = arith.constant 0 : i32
    return %arg0, %c0_i32 : i32, i32
  }
  func.func @transform_3(%arg0: i32) -> (i32, i32) {
    %c0_i32 = arith.constant 0 : i32
    %c0_i32_0 = arith.constant 0 : i32
    return %arg0, %c0_i32 : i32, i32
  }
}

module attributes {stable_mosaic.version = 11 : i64} {
  func.func @_bn_relu_kernel(%arg0: i32, %arg1: memref<256x128xbf16, #tpu.memory_space<vmem>>, %arg2: memref<1x128xf32, #tpu.memory_space<vmem>>, %arg3: memref<1x128xf32, #tpu.memory_space<vmem>>, %arg4: memref<256x128xbf16, #tpu.memory_space<vmem>>) attributes {dimension_semantics = [#tpu.dimension_semantics<parallel>], iteration_bounds = array<i64: 2>, scalar_prefetch = 0 : i64, scratch_operands = 0 : i64, tpu.core_type = #tpu.core_type<tc>, window_params = [{transform_indices = @transform_0, window_bounds = array<i64: 256, 128>}, {pipeline_mode = #tpu.pipeline_mode<synchronous>, transform_indices = @transform_1, window_bounds = array<i64: 1, 128>}, {pipeline_mode = #tpu.pipeline_mode<synchronous>, transform_indices = @transform_2, window_bounds = array<i64: 1, 128>}, {transform_indices = @transform_3, window_bounds = array<i64: 256, 128>}]} {
    %c0 = arith.constant 0 : index
    %c0_0 = arith.constant 0 : index
    %0 = vector.load %arg1[%c0, %c0_0] : memref<256x128xbf16, #tpu.memory_space<vmem>>, vector<256x128xbf16>
    %1 = arith.extf %0 : vector<256x128xbf16> to vector<256x128xf32>
    %c0_1 = arith.constant 0 : index
    %c0_2 = arith.constant 0 : index
    %2 = vector.load %arg2[%c0_1, %c0_2] : memref<1x128xf32, #tpu.memory_space<vmem>>, vector<1x128xf32>
    %3 = vector.broadcast %2 : vector<1x128xf32> to vector<256x128xf32>
    %4 = arith.mulf %1, %3 : vector<256x128xf32>
    %c0_3 = arith.constant 0 : index
    %c0_4 = arith.constant 0 : index
    %5 = vector.load %arg3[%c0_3, %c0_4] : memref<1x128xf32, #tpu.memory_space<vmem>>, vector<1x128xf32>
    %6 = vector.broadcast %5 : vector<1x128xf32> to vector<256x128xf32>
    %7 = arith.addf %4, %6 : vector<256x128xf32>
    %cst = arith.constant 0.000000e+00 : f32
    %8 = vector.broadcast %cst : f32 to vector<256x128xf32>
    %9 = arith.maximumf %7, %8 : vector<256x128xf32>
    %10 = arith.truncf %9 : vector<256x128xf32> to vector<256x128xbf16>
    %c0_5 = arith.constant 0 : index
    %c0_6 = arith.constant 0 : index
    %11 = vector.load %arg4[%c0_5, %c0_6] : memref<256x128xbf16, #tpu.memory_space<vmem>>, vector<256x128xbf16>
    tpu.vector_store %arg4[%c0_5, %c0_6], %10 {strides = array<i32>} : memref<256x128xbf16, #tpu.memory_space<vmem>>, vector<256x128xbf16>,
    return
  }
  func.func @transform_0(%arg0: i32) -> (i32, i32) {
    %c0_i32 = arith.constant 0 : i32
    %c0_i32_0 = arith.constant 0 : i32
    return %arg0, %c0_i32 : i32, i32
  }
  func.func @transform_1(%arg0: i32) -> (i32, i32) {
    %c0_i32 = arith.constant 0 : i32
    %c0_i32_0 = arith.constant 0 : i32
    %c0_i32_1 = arith.constant 0 : i32
    return %c0_i32, %c0_i32_0 : i32, i32
  }
  func.func @transform_2(%arg0: i32) -> (i32, i32) {
    %c0_i32 = arith.constant 0 : i32
    %c0_i32_0 = arith.constant 0 : i32
    %c0_i32_1 = arith.constant 0 : i32
    return %c0_i32, %c0_i32_0 : i32, i32
  }
  func.func @transform_3(%arg0: i32) -> (i32, i32) {
    %c0_i32 = arith.constant 0 : i32
    %c0_i32_0 = arith.constant 0 : i32
    return %arg0, %c0_i32 : i32, i32
  }
}

module attributes {stable_mosaic.version = 11 : i64} {
  func.func @_gemm_stats_kernel(%arg0: i32, %arg1: memref<256x128xbf16, #tpu.memory_space<vmem>>, %arg2: memref<128x128xbf16, #tpu.memory_space<vmem>>, %arg3: memref<256x128xbf16, #tpu.memory_space<vmem>>, %arg4: memref<8x128xf32, #tpu.memory_space<vmem>>) attributes {dimension_semantics = [#tpu.dimension_semantics<parallel>], iteration_bounds = array<i64: 2>, scalar_prefetch = 0 : i64, scratch_operands = 0 : i64, tpu.core_type = #tpu.core_type<tc>, window_params = [{transform_indices = @transform_0, window_bounds = array<i64: 256, 128>}, {pipeline_mode = #tpu.pipeline_mode<synchronous>, transform_indices = @transform_1, window_bounds = array<i64: 128, 128>}, {transform_indices = @transform_2, window_bounds = array<i64: 256, 128>}, {transform_indices = @transform_3, window_bounds = array<i64: 8, 128>}]} {
    %c0 = arith.constant 0 : index
    %c0_0 = arith.constant 0 : index
    %0 = vector.load %arg1[%c0, %c0_0] : memref<256x128xbf16, #tpu.memory_space<vmem>>, vector<256x128xbf16>
    %c0_1 = arith.constant 0 : index
    %c0_2 = arith.constant 0 : index
    %1 = vector.load %arg2[%c0_1, %c0_2] : memref<128x128xbf16, #tpu.memory_space<vmem>>, vector<128x128xbf16>
    %cst = arith.constant dense<0.000000e+00> : vector<256x128xf32>
    %2 = tpu.matmul %0, %1, %cst {dimension_numbers = #tpu.dot_dimension_numbers<[1], [0], [0], [1], [0, 0, 1, 1], [], []>} : vector<256x128xbf16>, vector<128x128xbf16>, vector<256x128xf32> -> vector<256x128xf32>
    %3 = arith.truncf %2 : vector<256x128xf32> to vector<256x128xbf16>
    %c0_3 = arith.constant 0 : index
    %c0_4 = arith.constant 0 : index
    %4 = vector.load %arg3[%c0_3, %c0_4] : memref<256x128xbf16, #tpu.memory_space<vmem>>, vector<256x128xbf16>
    tpu.vector_store %arg3[%c0_3, %c0_4], %3 {strides = array<i32>} : memref<256x128xbf16, #tpu.memory_space<vmem>>, vector<256x128xbf16>,
    %cst_5 = arith.constant dense<0.000000e+00> : vector<128xf32>
    %5 = vector.multi_reduction <add>, %2, %cst_5 [0] : vector<256x128xf32> to vector<128xf32>
    %6 = vector.shape_cast %5 : vector<128xf32> to vector<1x128xf32>
    %7 = arith.mulf %2, %2 : vector<256x128xf32>
    %cst_6 = arith.constant dense<0.000000e+00> : vector<128xf32>
    %8 = vector.multi_reduction <add>, %7, %cst_6 [0] : vector<256x128xf32> to vector<128xf32>
    %9 = vector.shape_cast %8 : vector<128xf32> to vector<1x128xf32>
    %cst_7 = arith.constant 0.000000e+00 : f32
    %10 = vector.broadcast %cst_7 : f32 to vector<6x128xf32>
    %11 = tpu.concatenate %6, %9, %10 in 0 : vector<1x128xf32>, vector<1x128xf32>, vector<6x128xf32> -> vector<8x128xf32>
    %c0_8 = arith.constant 0 : index
    %c0_9 = arith.constant 0 : index
    %12 = vector.load %arg4[%c0_8, %c0_9] : memref<8x128xf32, #tpu.memory_space<vmem>>, vector<8x128xf32>
    tpu.vector_store %arg4[%c0_8, %c0_9], %11 {strides = array<i32>} : memref<8x128xf32, #tpu.memory_space<vmem>>, vector<8x128xf32>,
    return
  }
  func.func @transform_0(%arg0: i32) -> (i32, i32) {
    %c0_i32 = arith.constant 0 : i32
    %c0_i32_0 = arith.constant 0 : i32
    return %arg0, %c0_i32 : i32, i32
  }
  func.func @transform_1(%arg0: i32) -> (i32, i32) {
    %c0_i32 = arith.constant 0 : i32
    %c0_i32_0 = arith.constant 0 : i32
    %c0_i32_1 = arith.constant 0 : i32
    return %c0_i32, %c0_i32_0 : i32, i32
  }
  func.func @transform_2(%arg0: i32) -> (i32, i32) {
    %c0_i32 = arith.constant 0 : i32
    %c0_i32_0 = arith.constant 0 : i32
    return %arg0, %c0_i32 : i32, i32
  }
  func.func @transform_3(%arg0: i32) -> (i32, i32) {
    %c0_i32 = arith.constant 0 : i32
    %c0_i32_0 = arith.constant 0 : i32
    return %arg0, %c0_i32 : i32, i32
  }
}

module attributes {stable_mosaic.version = 11 : i64} {
  func.func @_bn_relu_add_kernel(%arg0: i32, %arg1: memref<256x128xbf16, #tpu.memory_space<vmem>>, %arg2: memref<256x128xbf16, #tpu.memory_space<vmem>>, %arg3: memref<1x128xf32, #tpu.memory_space<vmem>>, %arg4: memref<1x128xf32, #tpu.memory_space<vmem>>, %arg5: memref<1x128xf32, #tpu.memory_space<vmem>>, %arg6: memref<1x128xf32, #tpu.memory_space<vmem>>, %arg7: memref<256x128xbf16, #tpu.memory_space<vmem>>) attributes {dimension_semantics = [#tpu.dimension_semantics<parallel>], iteration_bounds = array<i64: 2>, scalar_prefetch = 0 : i64, scratch_operands = 0 : i64, tpu.core_type = #tpu.core_type<tc>, window_params = [{transform_indices = @transform_0, window_bounds = array<i64: 256, 128>}, {transform_indices = @transform_1, window_bounds = array<i64: 256, 128>}, {pipeline_mode = #tpu.pipeline_mode<synchronous>, transform_indices = @transform_2, window_bounds = array<i64: 1, 128>}, {pipeline_mode = #tpu.pipeline_mode<synchronous>, transform_indices = @transform_3, window_bounds = array<i64: 1, 128>}, {pipeline_mode = #tpu.pipeline_mode<synchronous>, transform_indices = @transform_4, window_bounds = array<i64: 1, 128>}, {pipeline_mode = #tpu.pipeline_mode<synchronous>, transform_indices = @transform_5, window_bounds = array<i64: 1, 128>}, {transform_indices = @transform_6, window_bounds = array<i64: 256, 128>}]} {
    %c0 = arith.constant 0 : index
    %c0_0 = arith.constant 0 : index
    %0 = vector.load %arg1[%c0, %c0_0] : memref<256x128xbf16, #tpu.memory_space<vmem>>, vector<256x128xbf16>
    %1 = arith.extf %0 : vector<256x128xbf16> to vector<256x128xf32>
    %c0_1 = arith.constant 0 : index
    %c0_2 = arith.constant 0 : index
    %2 = vector.load %arg3[%c0_1, %c0_2] : memref<1x128xf32, #tpu.memory_space<vmem>>, vector<1x128xf32>
    %3 = vector.broadcast %2 : vector<1x128xf32> to vector<256x128xf32>
    %4 = arith.mulf %1, %3 : vector<256x128xf32>
    %c0_3 = arith.constant 0 : index
    %c0_4 = arith.constant 0 : index
    %5 = vector.load %arg4[%c0_3, %c0_4] : memref<1x128xf32, #tpu.memory_space<vmem>>, vector<1x128xf32>
    %6 = vector.broadcast %5 : vector<1x128xf32> to vector<256x128xf32>
    %7 = arith.addf %4, %6 : vector<256x128xf32>
    %cst = arith.constant 0.000000e+00 : f32
    %8 = vector.broadcast %cst : f32 to vector<256x128xf32>
    %9 = arith.maximumf %7, %8 : vector<256x128xf32>
    %c0_5 = arith.constant 0 : index
    %c0_6 = arith.constant 0 : index
    %10 = vector.load %arg2[%c0_5, %c0_6] : memref<256x128xbf16, #tpu.memory_space<vmem>>, vector<256x128xbf16>
    %11 = arith.extf %10 : vector<256x128xbf16> to vector<256x128xf32>
    %c0_7 = arith.constant 0 : index
    %c0_8 = arith.constant 0 : index
    %12 = vector.load %arg5[%c0_7, %c0_8] : memref<1x128xf32, #tpu.memory_space<vmem>>, vector<1x128xf32>
    %13 = vector.broadcast %12 : vector<1x128xf32> to vector<256x128xf32>
    %14 = arith.mulf %11, %13 : vector<256x128xf32>
    %c0_9 = arith.constant 0 : index
    %c0_10 = arith.constant 0 : index
    %15 = vector.load %arg6[%c0_9, %c0_10] : memref<1x128xf32, #tpu.memory_space<vmem>>, vector<1x128xf32>
    %16 = vector.broadcast %15 : vector<1x128xf32> to vector<256x128xf32>
    %17 = arith.addf %14, %16 : vector<256x128xf32>
    %cst_11 = arith.constant 0.000000e+00 : f32
    %18 = vector.broadcast %cst_11 : f32 to vector<256x128xf32>
    %19 = arith.maximumf %17, %18 : vector<256x128xf32>
    %20 = arith.addf %9, %19 : vector<256x128xf32>
    %21 = arith.truncf %20 : vector<256x128xf32> to vector<256x128xbf16>
    %c0_12 = arith.constant 0 : index
    %c0_13 = arith.constant 0 : index
    %22 = vector.load %arg7[%c0_12, %c0_13] : memref<256x128xbf16, #tpu.memory_space<vmem>>, vector<256x128xbf16>
    tpu.vector_store %arg7[%c0_12, %c0_13], %21 {strides = array<i32>} : memref<256x128xbf16, #tpu.memory_space<vmem>>, vector<256x128xbf16>,
    return
  }
  func.func @transform_0(%arg0: i32) -> (i32, i32) {
    %c0_i32 = arith.constant 0 : i32
    %c0_i32_0 = arith.constant 0 : i32
    return %arg0, %c0_i32 : i32, i32
  }
  func.func @transform_1(%arg0: i32) -> (i32, i32) {
    %c1_i32 = arith.constant 1 : i32
    %c0_i32 = arith.constant 0 : i32
    return %arg0, %c1_i32 : i32, i32
  }
  func.func @transform_2(%arg0: i32) -> (i32, i32) {
    %c0_i32 = arith.constant 0 : i32
    %c0_i32_0 = arith.constant 0 : i32
    %c0_i32_1 = arith.constant 0 : i32
    return %c0_i32, %c0_i32_0 : i32, i32
  }
  func.func @transform_3(%arg0: i32) -> (i32, i32) {
    %c0_i32 = arith.constant 0 : i32
    %c0_i32_0 = arith.constant 0 : i32
    %c0_i32_1 = arith.constant 0 : i32
    return %c0_i32, %c0_i32_0 : i32, i32
  }
  func.func @transform_4(%arg0: i32) -> (i32, i32) {
    %c0_i32 = arith.constant 0 : i32
    %c0_i32_0 = arith.constant 0 : i32
    %c0_i32_1 = arith.constant 0 : i32
    return %c0_i32, %c0_i32_0 : i32, i32
  }
  func.func @transform_5(%arg0: i32) -> (i32, i32) {
    %c0_i32 = arith.constant 0 : i32
    %c0_i32_0 = arith.constant 0 : i32
    %c0_i32_1 = arith.constant 0 : i32
    return %c0_i32, %c0_i32_0 : i32, i32
  }
  func.func @transform_6(%arg0: i32) -> (i32, i32) {
    %c0_i32 = arith.constant 0 : i32
    %c0_i32_0 = arith.constant 0 : i32
    return %arg0, %c0_i32 : i32, i32
  }
}

module attributes {stable_mosaic.version = 11 : i64} {
  func.func @_gemm_kernel(%arg0: i32, %arg1: memref<64x128xbf16, #tpu.memory_space<vmem>>, %arg2: memref<128x128xbf16, #tpu.memory_space<vmem>>, %arg3: memref<64x128xbf16, #tpu.memory_space<vmem>>) attributes {dimension_semantics = [#tpu.dimension_semantics<parallel>], iteration_bounds = array<i64: 2>, scalar_prefetch = 0 : i64, scratch_operands = 0 : i64, tpu.core_type = #tpu.core_type<tc>, window_params = [{transform_indices = @transform_0, window_bounds = array<i64: 64, 128>}, {pipeline_mode = #tpu.pipeline_mode<synchronous>, transform_indices = @transform_1, window_bounds = array<i64: 128, 128>}, {transform_indices = @transform_2, window_bounds = array<i64: 64, 128>}]} {
    %c0 = arith.constant 0 : index
    %c0_0 = arith.constant 0 : index
    %0 = vector.load %arg1[%c0, %c0_0] : memref<64x128xbf16, #tpu.memory_space<vmem>>, vector<64x128xbf16>
    %c0_1 = arith.constant 0 : index
    %c0_2 = arith.constant 0 : index
    %1 = vector.load %arg2[%c0_1, %c0_2] : memref<128x128xbf16, #tpu.memory_space<vmem>>, vector<128x128xbf16>
    %cst = arith.constant dense<0.000000e+00> : vector<64x128xf32>
    %2 = tpu.matmul %0, %1, %cst {dimension_numbers = #tpu.dot_dimension_numbers<[1], [0], [0], [1], [0, 0, 1, 1], [], []>} : vector<64x128xbf16>, vector<128x128xbf16>, vector<64x128xf32> -> vector<64x128xf32>
    %3 = arith.truncf %2 : vector<64x128xf32> to vector<64x128xbf16>
    %c0_3 = arith.constant 0 : index
    %c0_4 = arith.constant 0 : index
    %4 = vector.load %arg3[%c0_3, %c0_4] : memref<64x128xbf16, #tpu.memory_space<vmem>>, vector<64x128xbf16>
    tpu.vector_store %arg3[%c0_3, %c0_4], %3 {strides = array<i32>} : memref<64x128xbf16, #tpu.memory_space<vmem>>, vector<64x128xbf16>,
    return
  }
  func.func @transform_0(%arg0: i32) -> (i32, i32) {
    %c0_i32 = arith.constant 0 : i32
    %c0_i32_0 = arith.constant 0 : i32
    return %arg0, %c0_i32 : i32, i32
  }
  func.func @transform_1(%arg0: i32) -> (i32, i32) {
    %c0_i32 = arith.constant 0 : i32
    %c0_i32_0 = arith.constant 0 : i32
    %c0_i32_1 = arith.constant 0 : i32
    return %c0_i32, %c0_i32_0 : i32, i32
  }
  func.func @transform_2(%arg0: i32) -> (i32, i32) {
    %c0_i32 = arith.constant 0 : i32
    %c0_i32_0 = arith.constant 0 : i32
    return %arg0, %c0_i32 : i32, i32
  }
}

module attributes {stable_mosaic.version = 11 : i64} {
  func.func @_dual_gemm_fused_kernel(%arg0: i32, %arg1: memref<16x128xbf16, #tpu.memory_space<vmem>>, %arg2: memref<128x256xbf16, #tpu.memory_space<vmem>>, %arg3: memref<16x256xbf16, #tpu.memory_space<vmem>>, %arg4: memref<8x256xf32, #tpu.memory_space<vmem>>) attributes {dimension_semantics = [#tpu.dimension_semantics<parallel>], iteration_bounds = array<i64: 2>, scalar_prefetch = 0 : i64, scratch_operands = 0 : i64, tpu.core_type = #tpu.core_type<tc>, window_params = [{transform_indices = @transform_0, window_bounds = array<i64: 16, 128>}, {pipeline_mode = #tpu.pipeline_mode<synchronous>, transform_indices = @transform_1, window_bounds = array<i64: 128, 256>}, {transform_indices = @transform_2, window_bounds = array<i64: 16, 256>}, {transform_indices = @transform_3, window_bounds = array<i64: 8, 256>}]} {
    %c0 = arith.constant 0 : index
    %c0_0 = arith.constant 0 : index
    %0 = vector.load %arg1[%c0, %c0_0] : memref<16x128xbf16, #tpu.memory_space<vmem>>, vector<16x128xbf16>
    %c0_1 = arith.constant 0 : index
    %c0_2 = arith.constant 0 : index
    %1 = vector.load %arg2[%c0_1, %c0_2] : memref<128x256xbf16, #tpu.memory_space<vmem>>, vector<128x256xbf16>
    %cst = arith.constant dense<0.000000e+00> : vector<16x256xf32>
    %2 = tpu.matmul %0, %1, %cst {dimension_numbers = #tpu.dot_dimension_numbers<[1], [0], [0], [1], [0, 0, 1, 1], [], []>} : vector<16x128xbf16>, vector<128x256xbf16>, vector<16x256xf32> -> vector<16x256xf32>
    %3 = arith.truncf %2 : vector<16x256xf32> to vector<16x256xbf16>
    %c0_3 = arith.constant 0 : index
    %c0_4 = arith.constant 0 : index
    %4 = vector.load %arg3[%c0_3, %c0_4] : memref<16x256xbf16, #tpu.memory_space<vmem>>, vector<16x256xbf16>
    tpu.vector_store %arg3[%c0_3, %c0_4], %3 {strides = array<i32>} : memref<16x256xbf16, #tpu.memory_space<vmem>>, vector<16x256xbf16>,
    %cst_5 = arith.constant dense<0.000000e+00> : vector<256xf32>
    %5 = vector.multi_reduction <add>, %2, %cst_5 [0] : vector<16x256xf32> to vector<256xf32>
    %6 = vector.shape_cast %5 : vector<256xf32> to vector<1x256xf32>
    %7 = arith.mulf %2, %2 : vector<16x256xf32>
    %cst_6 = arith.constant dense<0.000000e+00> : vector<256xf32>
    %8 = vector.multi_reduction <add>, %7, %cst_6 [0] : vector<16x256xf32> to vector<256xf32>
    %9 = vector.shape_cast %8 : vector<256xf32> to vector<1x256xf32>
    %cst_7 = arith.constant 0.000000e+00 : f32
    %10 = vector.broadcast %cst_7 : f32 to vector<6x256xf32>
    %11 = tpu.concatenate %6, %9, %10 in 0 : vector<1x256xf32>, vector<1x256xf32>, vector<6x256xf32> -> vector<8x256xf32>
    %c0_8 = arith.constant 0 : index
    %c0_9 = arith.constant 0 : index
    %12 = vector.load %arg4[%c0_8, %c0_9] : memref<8x256xf32, #tpu.memory_space<vmem>>, vector<8x256xf32>
    tpu.vector_store %arg4[%c0_8, %c0_9], %11 {strides = array<i32>} : memref<8x256xf32, #tpu.memory_space<vmem>>, vector<8x256xf32>,
    return
  }
  func.func @transform_0(%arg0: i32) -> (i32, i32) {
    %c0_i32 = arith.constant 0 : i32
    %c0_i32_0 = arith.constant 0 : i32
    return %arg0, %c0_i32 : i32, i32
  }
  func.func @transform_1(%arg0: i32) -> (i32, i32) {
    %c0_i32 = arith.constant 0 : i32
    %c0_i32_0 = arith.constant 0 : i32
    %c0_i32_1 = arith.constant 0 : i32
    return %c0_i32, %c0_i32_0 : i32, i32
  }
  func.func @transform_2(%arg0: i32) -> (i32, i32) {
    %c0_i32 = arith.constant 0 : i32
    %c0_i32_0 = arith.constant 0 : i32
    return %arg0, %c0_i32 : i32, i32
  }
  func.func @transform_3(%arg0: i32) -> (i32, i32) {
    %c0_i32 = arith.constant 0 : i32
    %c0_i32_0 = arith.constant 0 : i32
    return %arg0, %c0_i32 : i32, i32
  }
}

module attributes {stable_mosaic.version = 11 : i64} {
  func.func @_bn_relu_kernel(%arg0: i32, %arg1: memref<16x128xbf16, #tpu.memory_space<vmem>>, %arg2: memref<1x128xf32, #tpu.memory_space<vmem>>, %arg3: memref<1x128xf32, #tpu.memory_space<vmem>>, %arg4: memref<16x128xbf16, #tpu.memory_space<vmem>>) attributes {dimension_semantics = [#tpu.dimension_semantics<parallel>], iteration_bounds = array<i64: 2>, scalar_prefetch = 0 : i64, scratch_operands = 0 : i64, tpu.core_type = #tpu.core_type<tc>, window_params = [{transform_indices = @transform_0, window_bounds = array<i64: 16, 128>}, {pipeline_mode = #tpu.pipeline_mode<synchronous>, transform_indices = @transform_1, window_bounds = array<i64: 1, 128>}, {pipeline_mode = #tpu.pipeline_mode<synchronous>, transform_indices = @transform_2, window_bounds = array<i64: 1, 128>}, {transform_indices = @transform_3, window_bounds = array<i64: 16, 128>}]} {
    %c0 = arith.constant 0 : index
    %c0_0 = arith.constant 0 : index
    %0 = vector.load %arg1[%c0, %c0_0] : memref<16x128xbf16, #tpu.memory_space<vmem>>, vector<16x128xbf16>
    %1 = arith.extf %0 : vector<16x128xbf16> to vector<16x128xf32>
    %c0_1 = arith.constant 0 : index
    %c0_2 = arith.constant 0 : index
    %2 = vector.load %arg2[%c0_1, %c0_2] : memref<1x128xf32, #tpu.memory_space<vmem>>, vector<1x128xf32>
    %3 = vector.broadcast %2 : vector<1x128xf32> to vector<16x128xf32>
    %4 = arith.mulf %1, %3 : vector<16x128xf32>
    %c0_3 = arith.constant 0 : index
    %c0_4 = arith.constant 0 : index
    %5 = vector.load %arg3[%c0_3, %c0_4] : memref<1x128xf32, #tpu.memory_space<vmem>>, vector<1x128xf32>
    %6 = vector.broadcast %5 : vector<1x128xf32> to vector<16x128xf32>
    %7 = arith.addf %4, %6 : vector<16x128xf32>
    %cst = arith.constant 0.000000e+00 : f32
    %8 = vector.broadcast %cst : f32 to vector<16x128xf32>
    %9 = arith.maximumf %7, %8 : vector<16x128xf32>
    %10 = arith.truncf %9 : vector<16x128xf32> to vector<16x128xbf16>
    %c0_5 = arith.constant 0 : index
    %c0_6 = arith.constant 0 : index
    %11 = vector.load %arg4[%c0_5, %c0_6] : memref<16x128xbf16, #tpu.memory_space<vmem>>, vector<16x128xbf16>
    tpu.vector_store %arg4[%c0_5, %c0_6], %10 {strides = array<i32>} : memref<16x128xbf16, #tpu.memory_space<vmem>>, vector<16x128xbf16>,
    return
  }
  func.func @transform_0(%arg0: i32) -> (i32, i32) {
    %c0_i32 = arith.constant 0 : i32
    %c0_i32_0 = arith.constant 0 : i32
    return %arg0, %c0_i32 : i32, i32
  }
  func.func @transform_1(%arg0: i32) -> (i32, i32) {
    %c0_i32 = arith.constant 0 : i32
    %c0_i32_0 = arith.constant 0 : i32
    %c0_i32_1 = arith.constant 0 : i32
    return %c0_i32, %c0_i32_0 : i32, i32
  }
  func.func @transform_2(%arg0: i32) -> (i32, i32) {
    %c0_i32 = arith.constant 0 : i32
    %c0_i32_0 = arith.constant 0 : i32
    %c0_i32_1 = arith.constant 0 : i32
    return %c0_i32, %c0_i32_0 : i32, i32
  }
  func.func @transform_3(%arg0: i32) -> (i32, i32) {
    %c0_i32 = arith.constant 0 : i32
    %c0_i32_0 = arith.constant 0 : i32
    return %arg0, %c0_i32 : i32, i32
  }
}

module attributes {stable_mosaic.version = 11 : i64} {
  func.func @_bn_relu_add_kernel(%arg0: i32, %arg1: memref<16x128xbf16, #tpu.memory_space<vmem>>, %arg2: memref<16x128xbf16, #tpu.memory_space<vmem>>, %arg3: memref<1x128xf32, #tpu.memory_space<vmem>>, %arg4: memref<1x128xf32, #tpu.memory_space<vmem>>, %arg5: memref<1x128xf32, #tpu.memory_space<vmem>>, %arg6: memref<1x128xf32, #tpu.memory_space<vmem>>, %arg7: memref<16x128xbf16, #tpu.memory_space<vmem>>) attributes {dimension_semantics = [#tpu.dimension_semantics<parallel>], iteration_bounds = array<i64: 2>, scalar_prefetch = 0 : i64, scratch_operands = 0 : i64, tpu.core_type = #tpu.core_type<tc>, window_params = [{transform_indices = @transform_0, window_bounds = array<i64: 16, 128>}, {transform_indices = @transform_1, window_bounds = array<i64: 16, 128>}, {pipeline_mode = #tpu.pipeline_mode<synchronous>, transform_indices = @transform_2, window_bounds = array<i64: 1, 128>}, {pipeline_mode = #tpu.pipeline_mode<synchronous>, transform_indices = @transform_3, window_bounds = array<i64: 1, 128>}, {pipeline_mode = #tpu.pipeline_mode<synchronous>, transform_indices = @transform_4, window_bounds = array<i64: 1, 128>}, {pipeline_mode = #tpu.pipeline_mode<synchronous>, transform_indices = @transform_5, window_bounds = array<i64: 1, 128>}, {transform_indices = @transform_6, window_bounds = array<i64: 16, 128>}]} {
    %c0 = arith.constant 0 : index
    %c0_0 = arith.constant 0 : index
    %0 = vector.load %arg1[%c0, %c0_0] : memref<16x128xbf16, #tpu.memory_space<vmem>>, vector<16x128xbf16>
    %1 = arith.extf %0 : vector<16x128xbf16> to vector<16x128xf32>
    %c0_1 = arith.constant 0 : index
    %c0_2 = arith.constant 0 : index
    %2 = vector.load %arg3[%c0_1, %c0_2] : memref<1x128xf32, #tpu.memory_space<vmem>>, vector<1x128xf32>
    %3 = vector.broadcast %2 : vector<1x128xf32> to vector<16x128xf32>
    %4 = arith.mulf %1, %3 : vector<16x128xf32>
    %c0_3 = arith.constant 0 : index
    %c0_4 = arith.constant 0 : index
    %5 = vector.load %arg4[%c0_3, %c0_4] : memref<1x128xf32, #tpu.memory_space<vmem>>, vector<1x128xf32>
    %6 = vector.broadcast %5 : vector<1x128xf32> to vector<16x128xf32>
    %7 = arith.addf %4, %6 : vector<16x128xf32>
    %cst = arith.constant 0.000000e+00 : f32
    %8 = vector.broadcast %cst : f32 to vector<16x128xf32>
    %9 = arith.maximumf %7, %8 : vector<16x128xf32>
    %c0_5 = arith.constant 0 : index
    %c0_6 = arith.constant 0 : index
    %10 = vector.load %arg2[%c0_5, %c0_6] : memref<16x128xbf16, #tpu.memory_space<vmem>>, vector<16x128xbf16>
    %11 = arith.extf %10 : vector<16x128xbf16> to vector<16x128xf32>
    %c0_7 = arith.constant 0 : index
    %c0_8 = arith.constant 0 : index
    %12 = vector.load %arg5[%c0_7, %c0_8] : memref<1x128xf32, #tpu.memory_space<vmem>>, vector<1x128xf32>
    %13 = vector.broadcast %12 : vector<1x128xf32> to vector<16x128xf32>
    %14 = arith.mulf %11, %13 : vector<16x128xf32>
    %c0_9 = arith.constant 0 : index
    %c0_10 = arith.constant 0 : index
    %15 = vector.load %arg6[%c0_9, %c0_10] : memref<1x128xf32, #tpu.memory_space<vmem>>, vector<1x128xf32>
    %16 = vector.broadcast %15 : vector<1x128xf32> to vector<16x128xf32>
    %17 = arith.addf %14, %16 : vector<16x128xf32>
    %cst_11 = arith.constant 0.000000e+00 : f32
    %18 = vector.broadcast %cst_11 : f32 to vector<16x128xf32>
    %19 = arith.maximumf %17, %18 : vector<16x128xf32>
    %20 = arith.addf %9, %19 : vector<16x128xf32>
    %21 = arith.truncf %20 : vector<16x128xf32> to vector<16x128xbf16>
    %c0_12 = arith.constant 0 : index
    %c0_13 = arith.constant 0 : index
    %22 = vector.load %arg7[%c0_12, %c0_13] : memref<16x128xbf16, #tpu.memory_space<vmem>>, vector<16x128xbf16>
    tpu.vector_store %arg7[%c0_12, %c0_13], %21 {strides = array<i32>} : memref<16x128xbf16, #tpu.memory_space<vmem>>, vector<16x128xbf16>,
    return
  }
  func.func @transform_0(%arg0: i32) -> (i32, i32) {
    %c0_i32 = arith.constant 0 : i32
    %c0_i32_0 = arith.constant 0 : i32
    return %arg0, %c0_i32 : i32, i32
  }
  func.func @transform_1(%arg0: i32) -> (i32, i32) {
    %c1_i32 = arith.constant 1 : i32
    %c0_i32 = arith.constant 0 : i32
    return %arg0, %c1_i32 : i32, i32
  }
  func.func @transform_2(%arg0: i32) -> (i32, i32) {
    %c0_i32 = arith.constant 0 : i32
    %c0_i32_0 = arith.constant 0 : i32
    %c0_i32_1 = arith.constant 0 : i32
    return %c0_i32, %c0_i32_0 : i32, i32
  }
  func.func @transform_3(%arg0: i32) -> (i32, i32) {
    %c0_i32 = arith.constant 0 : i32
    %c0_i32_0 = arith.constant 0 : i32
    %c0_i32_1 = arith.constant 0 : i32
    return %c0_i32, %c0_i32_0 : i32, i32
  }
  func.func @transform_4(%arg0: i32) -> (i32, i32) {
    %c0_i32 = arith.constant 0 : i32
    %c0_i32_0 = arith.constant 0 : i32
    %c0_i32_1 = arith.constant 0 : i32
    return %c0_i32, %c0_i32_0 : i32, i32
  }
  func.func @transform_5(%arg0: i32) -> (i32, i32) {
    %c0_i32 = arith.constant 0 : i32
    %c0_i32_0 = arith.constant 0 : i32
    %c0_i32_1 = arith.constant 0 : i32
    return %c0_i32, %c0_i32_0 : i32, i32
  }
  func.func @transform_6(%arg0: i32) -> (i32, i32) {
    %c0_i32 = arith.constant 0 : i32
    %c0_i32_0 = arith.constant 0 : i32
    return %arg0, %c0_i32 : i32, i32
  }
}

module attributes {stable_mosaic.version = 11 : i64} {
  func.func @_gemm_stats_kernel(%arg0: i32, %arg1: memref<16x128xbf16, #tpu.memory_space<vmem>>, %arg2: memref<128x128xbf16, #tpu.memory_space<vmem>>, %arg3: memref<16x128xbf16, #tpu.memory_space<vmem>>, %arg4: memref<8x128xf32, #tpu.memory_space<vmem>>) attributes {dimension_semantics = [#tpu.dimension_semantics<parallel>], iteration_bounds = array<i64: 2>, scalar_prefetch = 0 : i64, scratch_operands = 0 : i64, tpu.core_type = #tpu.core_type<tc>, window_params = [{transform_indices = @transform_0, window_bounds = array<i64: 16, 128>}, {pipeline_mode = #tpu.pipeline_mode<synchronous>, transform_indices = @transform_1, window_bounds = array<i64: 128, 128>}, {transform_indices = @transform_2, window_bounds = array<i64: 16, 128>}, {transform_indices = @transform_3, window_bounds = array<i64: 8, 128>}]} {
    %c0 = arith.constant 0 : index
    %c0_0 = arith.constant 0 : index
    %0 = vector.load %arg1[%c0, %c0_0] : memref<16x128xbf16, #tpu.memory_space<vmem>>, vector<16x128xbf16>
    %c0_1 = arith.constant 0 : index
    %c0_2 = arith.constant 0 : index
    %1 = vector.load %arg2[%c0_1, %c0_2] : memref<128x128xbf16, #tpu.memory_space<vmem>>, vector<128x128xbf16>
    %cst = arith.constant dense<0.000000e+00> : vector<16x128xf32>
    %2 = tpu.matmul %0, %1, %cst {dimension_numbers = #tpu.dot_dimension_numbers<[1], [0], [0], [1], [0, 0, 1, 1], [], []>} : vector<16x128xbf16>, vector<128x128xbf16>, vector<16x128xf32> -> vector<16x128xf32>
    %3 = arith.truncf %2 : vector<16x128xf32> to vector<16x128xbf16>
    %c0_3 = arith.constant 0 : index
    %c0_4 = arith.constant 0 : index
    %4 = vector.load %arg3[%c0_3, %c0_4] : memref<16x128xbf16, #tpu.memory_space<vmem>>, vector<16x128xbf16>
    tpu.vector_store %arg3[%c0_3, %c0_4], %3 {strides = array<i32>} : memref<16x128xbf16, #tpu.memory_space<vmem>>, vector<16x128xbf16>,
    %cst_5 = arith.constant dense<0.000000e+00> : vector<128xf32>
    %5 = vector.multi_reduction <add>, %2, %cst_5 [0] : vector<16x128xf32> to vector<128xf32>
    %6 = vector.shape_cast %5 : vector<128xf32> to vector<1x128xf32>
    %7 = arith.mulf %2, %2 : vector<16x128xf32>
    %cst_6 = arith.constant dense<0.000000e+00> : vector<128xf32>
    %8 = vector.multi_reduction <add>, %7, %cst_6 [0] : vector<16x128xf32> to vector<128xf32>
    %9 = vector.shape_cast %8 : vector<128xf32> to vector<1x128xf32>
    %cst_7 = arith.constant 0.000000e+00 : f32
    %10 = vector.broadcast %cst_7 : f32 to vector<6x128xf32>
    %11 = tpu.concatenate %6, %9, %10 in 0 : vector<1x128xf32>, vector<1x128xf32>, vector<6x128xf32> -> vector<8x128xf32>
    %c0_8 = arith.constant 0 : index
    %c0_9 = arith.constant 0 : index
    %12 = vector.load %arg4[%c0_8, %c0_9] : memref<8x128xf32, #tpu.memory_space<vmem>>, vector<8x128xf32>
    tpu.vector_store %arg4[%c0_8, %c0_9], %11 {strides = array<i32>} : memref<8x128xf32, #tpu.memory_space<vmem>>, vector<8x128xf32>,
    return
  }
  func.func @transform_0(%arg0: i32) -> (i32, i32) {
    %c0_i32 = arith.constant 0 : i32
    %c0_i32_0 = arith.constant 0 : i32
    return %arg0, %c0_i32 : i32, i32
  }
  func.func @transform_1(%arg0: i32) -> (i32, i32) {
    %c0_i32 = arith.constant 0 : i32
    %c0_i32_0 = arith.constant 0 : i32
    %c0_i32_1 = arith.constant 0 : i32
    return %c0_i32, %c0_i32_0 : i32, i32
  }
  func.func @transform_2(%arg0: i32) -> (i32, i32) {
    %c0_i32 = arith.constant 0 : i32
    %c0_i32_0 = arith.constant 0 : i32
    return %arg0, %c0_i32 : i32, i32
  }
  func.func @transform_3(%arg0: i32) -> (i32, i32) {
    %c0_i32 = arith.constant 0 : i32
    %c0_i32_0 = arith.constant 0 : i32
    return %arg0, %c0_i32 : i32, i32
  }
}

module attributes {stable_mosaic.version = 11 : i64} {
  func.func @_gemm_kernel(%arg0: i32, %arg1: memref<8x128xbf16, #tpu.memory_space<vmem>>, %arg2: memref<128x128xbf16, #tpu.memory_space<vmem>>, %arg3: memref<8x128xbf16, #tpu.memory_space<vmem>>) attributes {dimension_semantics = [#tpu.dimension_semantics<parallel>], iteration_bounds = array<i64: 1>, scalar_prefetch = 0 : i64, scratch_operands = 0 : i64, tpu.core_type = #tpu.core_type<tc>, window_params = [{transform_indices = @transform_0, window_bounds = array<i64: 8, 128>}, {pipeline_mode = #tpu.pipeline_mode<synchronous>, transform_indices = @transform_1, window_bounds = array<i64: 128, 128>}, {transform_indices = @transform_2, window_bounds = array<i64: 8, 128>}]} {
    %c0 = arith.constant 0 : index
    %c0_0 = arith.constant 0 : index
    %0 = vector.load %arg1[%c0, %c0_0] : memref<8x128xbf16, #tpu.memory_space<vmem>>, vector<8x128xbf16>
    %c0_1 = arith.constant 0 : index
    %c0_2 = arith.constant 0 : index
    %1 = vector.load %arg2[%c0_1, %c0_2] : memref<128x128xbf16, #tpu.memory_space<vmem>>, vector<128x128xbf16>
    %cst = arith.constant dense<0.000000e+00> : vector<8x128xf32>
    %2 = tpu.matmul %0, %1, %cst {dimension_numbers = #tpu.dot_dimension_numbers<[1], [0], [0], [1], [0, 0, 1, 1], [], []>} : vector<8x128xbf16>, vector<128x128xbf16>, vector<8x128xf32> -> vector<8x128xf32>
    %3 = arith.truncf %2 : vector<8x128xf32> to vector<8x128xbf16>
    %c0_3 = arith.constant 0 : index
    %c0_4 = arith.constant 0 : index
    %4 = vector.load %arg3[%c0_3, %c0_4] : memref<8x128xbf16, #tpu.memory_space<vmem>>, vector<8x128xbf16>
    tpu.vector_store %arg3[%c0_3, %c0_4], %3 {strides = array<i32>} : memref<8x128xbf16, #tpu.memory_space<vmem>>, vector<8x128xbf16>,
    return
  }
  func.func @transform_0(%arg0: i32) -> (i32, i32) {
    %c0_i32 = arith.constant 0 : i32
    %c0_i32_0 = arith.constant 0 : i32
    return %arg0, %c0_i32 : i32, i32
  }
  func.func @transform_1(%arg0: i32) -> (i32, i32) {
    %c0_i32 = arith.constant 0 : i32
    %c0_i32_0 = arith.constant 0 : i32
    %c0_i32_1 = arith.constant 0 : i32
    return %c0_i32, %c0_i32_0 : i32, i32
  }
  func.func @transform_2(%arg0: i32) -> (i32, i32) {
    %c0_i32 = arith.constant 0 : i32
    %c0_i32_0 = arith.constant 0 : i32
    return %arg0, %c0_i32 : i32, i32
  }
}

module attributes {stable_mosaic.version = 11 : i64} {
  func.func @_instance_norm_kernel(%arg0: i32, %arg1: memref<1x4x128xbf16, #tpu.memory_space<vmem>>, %arg2: memref<1x4x128xbf16, #tpu.memory_space<vmem>>) attributes {dimension_semantics = [#tpu.dimension_semantics<parallel>], iteration_bounds = array<i64: 2>, scalar_prefetch = 0 : i64, scratch_operands = 0 : i64, tpu.core_type = #tpu.core_type<tc>, window_params = [{transform_indices = @transform_0, window_bounds = array<i64: 1, 4, 128>}, {transform_indices = @transform_1, window_bounds = array<i64: 1, 4, 128>}]} {
    %c0 = arith.constant 0 : index
    %c0_0 = arith.constant 0 : index
    %c0_1 = arith.constant 0 : index
    %0 = vector.load %arg1[%c0, %c0_0, %c0_1] : memref<1x4x128xbf16, #tpu.memory_space<vmem>>, vector<1x4x128xbf16>
    %1 = arith.extf %0 : vector<1x4x128xbf16> to vector<1x4x128xf32>
    %cst = arith.constant dense<0.000000e+00> : vector<1x128xf32>
    %2 = vector.multi_reduction <add>, %1, %cst [1] : vector<1x4x128xf32> to vector<1x128xf32>
    %3 = vector.shape_cast %2 : vector<1x128xf32> to vector<1x1x128xf32>
    %cst_2 = arith.constant 4.000000e+00 : f32
    %4 = vector.broadcast %cst_2 : f32 to vector<1x1x128xf32>
    %5 = arith.divf %3, %4 : vector<1x1x128xf32>
    %6 = vector.broadcast %5 : vector<1x1x128xf32> to vector<1x4x128xf32>
    %7 = arith.subf %1, %6 : vector<1x4x128xf32>
    %8 = arith.mulf %7, %7 : vector<1x4x128xf32>
    %cst_3 = arith.constant dense<0.000000e+00> : vector<1x128xf32>
    %9 = vector.multi_reduction <add>, %8, %cst_3 [1] : vector<1x4x128xf32> to vector<1x128xf32>
    %10 = vector.shape_cast %9 : vector<1x128xf32> to vector<1x1x128xf32>
    %cst_4 = arith.constant 4.000000e+00 : f32
    %11 = vector.broadcast %cst_4 : f32 to vector<1x1x128xf32>
    %12 = arith.divf %10, %11 : vector<1x1x128xf32>
    %13 = vector.broadcast %5 : vector<1x1x128xf32> to vector<1x4x128xf32>
    %14 = arith.subf %1, %13 : vector<1x4x128xf32>
    %cst_5 = arith.constant 9.99999974E-6 : f32
    %15 = vector.broadcast %cst_5 : f32 to vector<1x1x128xf32>
    %16 = arith.addf %12, %15 : vector<1x1x128xf32>
    %17 = math.rsqrt %16 : vector<1x1x128xf32>
    %18 = vector.broadcast %17 : vector<1x1x128xf32> to vector<1x4x128xf32>
    %19 = arith.mulf %14, %18 : vector<1x4x128xf32>
    %20 = arith.truncf %19 : vector<1x4x128xf32> to vector<1x4x128xbf16>
    %c0_6 = arith.constant 0 : index
    %c0_7 = arith.constant 0 : index
    %c0_8 = arith.constant 0 : index
    %21 = vector.load %arg2[%c0_6, %c0_7, %c0_8] : memref<1x4x128xbf16, #tpu.memory_space<vmem>>, vector<1x4x128xbf16>
    tpu.vector_store %arg2[%c0_6, %c0_7, %c0_8], %20 {strides = array<i32>} : memref<1x4x128xbf16, #tpu.memory_space<vmem>>, vector<1x4x128xbf16>,
    return
  }
  func.func @transform_0(%arg0: i32) -> (i32, i32, i32) {
    %c0_i32 = arith.constant 0 : i32
    %c0_i32_0 = arith.constant 0 : i32
    %c0_i32_1 = arith.constant 0 : i32
    return %arg0, %c0_i32, %c0_i32_0 : i32, i32, i32
  }
  func.func @transform_1(%arg0: i32) -> (i32, i32, i32) {
    %c0_i32 = arith.constant 0 : i32
    %c0_i32_0 = arith.constant 0 : i32
    %c0_i32_1 = arith.constant 0 : i32
    return %arg0, %c0_i32, %c0_i32_0 : i32, i32, i32
  }
}

module attributes {stable_mosaic.version = 11 : i64} {
  func.func @_gemm_kernel(%arg0: i32, %arg1: memref<8x128xbf16, #tpu.memory_space<vmem>>, %arg2: memref<128x128xbf16, #tpu.memory_space<vmem>>, %arg3: memref<8x128xf32, #tpu.memory_space<vmem>>) attributes {dimension_semantics = [#tpu.dimension_semantics<parallel>], iteration_bounds = array<i64: 1>, scalar_prefetch = 0 : i64, scratch_operands = 0 : i64, tpu.core_type = #tpu.core_type<tc>, window_params = [{transform_indices = @transform_0, window_bounds = array<i64: 8, 128>}, {pipeline_mode = #tpu.pipeline_mode<synchronous>, transform_indices = @transform_1, window_bounds = array<i64: 128, 128>}, {transform_indices = @transform_2, window_bounds = array<i64: 8, 128>}]} {
    %c0 = arith.constant 0 : index
    %c0_0 = arith.constant 0 : index
    %0 = vector.load %arg1[%c0, %c0_0] : memref<8x128xbf16, #tpu.memory_space<vmem>>, vector<8x128xbf16>
    %c0_1 = arith.constant 0 : index
    %c0_2 = arith.constant 0 : index
    %1 = vector.load %arg2[%c0_1, %c0_2] : memref<128x128xbf16, #tpu.memory_space<vmem>>, vector<128x128xbf16>
    %cst = arith.constant dense<0.000000e+00> : vector<8x128xf32>
    %2 = tpu.matmul %0, %1, %cst {dimension_numbers = #tpu.dot_dimension_numbers<[1], [0], [0], [1], [0, 0, 1, 1], [], []>} : vector<8x128xbf16>, vector<128x128xbf16>, vector<8x128xf32> -> vector<8x128xf32>
    %c0_3 = arith.constant 0 : index
    %c0_4 = arith.constant 0 : index
    %3 = vector.load %arg3[%c0_3, %c0_4] : memref<8x128xf32, #tpu.memory_space<vmem>>, vector<8x128xf32>
    tpu.vector_store %arg3[%c0_3, %c0_4], %2 {strides = array<i32>} : memref<8x128xf32, #tpu.memory_space<vmem>>, vector<8x128xf32>,
    return
  }
  func.func @transform_0(%arg0: i32) -> (i32, i32) {
    %c0_i32 = arith.constant 0 : i32
    %c0_i32_0 = arith.constant 0 : i32
    return %arg0, %c0_i32 : i32, i32
  }
  func.func @transform_1(%arg0: i32) -> (i32, i32) {
    %c0_i32 = arith.constant 0 : i32
    %c0_i32_0 = arith.constant 0 : i32
    %c0_i32_1 = arith.constant 0 : i32
    return %c0_i32, %c0_i32_0 : i32, i32
  }
  func.func @transform_2(%arg0: i32) -> (i32, i32) {
    %c0_i32 = arith.constant 0 : i32
    %c0_i32_0 = arith.constant 0 : i32
    return %arg0, %c0_i32 : i32, i32
  }
}

</mosaic_0001>

<bundles_post_ra>
// kernel: unet_encoder_forward.13
= control target key start
LH: loop header
LB: loop body
LE: loop exit
PB: predicated region body
PF: predicated region fallthrough
CT: control target
= control target key end

     0   :  { %s3022_s9 = smov 0   ;;  %s3202_s0 = inlined_call_operand.vmem [shape: bf16[2048,128], index: 0, kind: input, shape index: {}]   ;;  %s3203_s1 = inlined_call_operand.vmem [shape: bf16[128,128], index: 1, kind: input, shape index: {}]   ;;  %s3204_s2 = inlined_call_operand.vmem [shape: bf16[2048,128], index: 2, kind: output, shape index: {}]  }
   0x1 LB: > { %s1965_s10 = sadd.s32 4294967295, %s3005_s9   ;;  %p1969_p0 = scmp.ge.s32.totalorder %s3005_s9, 1  ;;  %s3005_s9 = sphi %s3022_s9, %s12_s9  }
   0x2   : > { %p113_p1 = scmp.lt.s32.totalorder %s3005_s9, 3 }
   0x4   : > { %p114_p2 = pnand %p1969_p0, %p113_p1 }
   0x5   : > { %v2927_v0 = vld [vmem:[%s3203_s1] sm:$0xff] (!%p114_p2)   ;;  %s1970_s13 = sshll.u32 (!%p114_p2), %s1965_s10, 7  ;;  %v2928_v1 = vld [vmem:[%s3203_s1 + $0x8] sm:$0xff] (!%p114_p2)   ;;  %v2929_v2 = vld [vmem:[%s3203_s1 + $0x10] sm:$0xff] (!%p114_p2)  }
   0x6   : > { %117 = sbr.rel (%p114_p2) target bundleno = 376 (0x178), region = 28  ;;  %p136_p3 = scmp.lt.s32.totalorder (!%p114_p2), %s1970_s13, 255  ;;  %2759 = vmatprep.subr.bf16.mxu0 (!%p114_p2), %v2927_v0  ;;  %2903 = vmatprep.subr.bf16.mxu1 (!%p114_p2), %v2927_v0  ;;  %v2930_v3 = vld [vmem:[%s3203_s1 + $0x18] sm:$0xff] (!%p114_p2)   ;;  %v2931_v6 = vld [vmem:[%s3203_s1 + $0x20] sm:$0xff] (!%p114_p2)   ;;  %v2932_v7 = vld [vmem:[%s3203_s1 + $0x28] sm:$0xff] (!%p114_p2)  }
   0x7   : > { %2760 = vmatpush3.bf16.msra.mxu0 (!%p114_p2), %v2927_v0  ;;  %2911 = vmatpush3.bf16.msra.mxu1 (!%p114_p2), %v2927_v0  ;;  %v2933_v8 = vld [vmem:[%s3203_s1 + $0x30] sm:$0xff] (!%p114_p2)   ;;  %v2934_v9 = vld [vmem:[%s3203_s1 + $0x38] sm:$0xff] (!%p114_p2)  }
   0x8   : > { %2761 = vmatprep.subr.bf16.mxu0 (!%p114_p2), %v2928_v1  ;;  %2904 = vmatprep.subr.bf16.mxu1 (!%p114_p2), %v2928_v1 }
   0xb   : > { %2762 = vmatpush3.bf16.msra.mxu0 (!%p114_p2), %v2928_v1  ;;  %2912 = vmatpush3.bf16.msra.mxu1 (!%p114_p2), %v2928_v1 }
   0xc   : > { %2763 = vmatprep.subr.bf16.mxu0 (!%p114_p2), %v2929_v2  ;;  %2905 = vmatprep.subr.bf16.mxu1 (!%p114_p2), %v2929_v2 }
   0xd   : > { %s3206_s13 = smov (!%p136_p3, %s1970_s13), 255 }
   0xe   : > { %s1971_s18 = sshll.u32 %s3206_s13, 2 }
   0xf   : > { %s3047_s21 = scalar_lea.vmem %s3202_s0, %s1971_s18  ;;  %2764 = vmatpush3.bf16.msra.mxu0 %v2929_v2  ;;  %2913 = vmatpush3.bf16.msra.mxu1 %v2929_v2  ;;  %s3133_s6 = scalar_lea.vmem %s3204_s2, %s1971_s18 }
  0x10   : > { %v2935_v4 = vld [vmem:[%s3047_s21] sm:$0xff]   ;;  %2765 = vmatprep.subr.bf16.mxu0 %v2930_v3  ;;  %2906 = vmatprep.subr.bf16.mxu1 %v2930_v3  ;;  %v2937_v10 = vld [vmem:[%s3047_s21 + $0x8] sm:$0xff]   ;;  %v2939_v12 = vld [vmem:[%s3047_s21 + $0x10] sm:$0xff]  }
  0x11   : > { %v2936_v5 = vld [vmem:[%s3047_s21 + $0x100] sm:$0xff]   ;;  %2775 = vmatprep.mubr.bf16.mxu0 %v2935_v4  ;;  %v2938_v11 = vld [vmem:[%s3047_s21 + $0x108] sm:$0xff]   ;;  %v2940_v13 = vld [vmem:[%s3047_s21 + $0x110] sm:$0xff]  }
  0x12   : > { %2839 = vmatprep.mubr.bf16.mxu1 %v2936_v5  ;;  %v2941_v14 = vld [vmem:[%s3047_s21 + $0x18] sm:$0xff]   ;;  %v2943_v16 = vld [vmem:[%s3047_s21 + $0x20] sm:$0xff]   ;;  %v2945_v18 = vld [vmem:[%s3047_s21 + $0x28] sm:$0xff]  }
  0x13   : > { %2766 = vmatpush3.bf16.msra.mxu0 %v2930_v3  ;;  %2914 = vmatpush3.bf16.msra.mxu1 %v2930_v3  ;;  %v2942_v15 = vld [vmem:[%s3047_s21 + $0x118] sm:$0xff]   ;;  %v2944_v17 = vld [vmem:[%s3047_s21 + $0x120] sm:$0xff]   ;;  %v2946_v19 = vld [vmem:[%s3047_s21 + $0x128] sm:$0xff]  }
  0x14   : > { %2767 = vmatprep.subr.bf16.mxu0 %v2931_v6  ;;  %2907 = vmatprep.subr.bf16.mxu1 %v2931_v6  ;;  %v2947_v20 = vld [vmem:[%s3047_s21 + $0x30] sm:$0xff]   ;;  %v2949_v22 = vld [vmem:[%s3047_s21 + $0x38] sm:$0xff]   ;;  %v2951_v24 = vld [vmem:[%s3047_s21 + $0x40] sm:$0xff]  }
  0x15   : > { %v2948_v21 = vld [vmem:[%s3047_s21 + $0x130] sm:$0xff]   ;;  %v2950_v23 = vld [vmem:[%s3047_s21 + $0x138] sm:$0xff]   ;;  %v2952_v25 = vld [vmem:[%s3047_s21 + $0x140] sm:$0xff]  }
  0x16   : > { %v2953_v26 = vld [vmem:[%s3047_s21 + $0x48] sm:$0xff]   ;;  %v2955_v28 = vld [vmem:[%s3047_s21 + $0x50] sm:$0xff]   ;;  %v2957_v30 = vld [vmem:[%s3047_s21 + $0x58] sm:$0xff]  }
  0x17   : > { %2768 = vmatpush3.bf16.msra.mxu0 %v2931_v6  ;;  %2915 = vmatpush3.bf16.msra.mxu1 %v2931_v6  ;;  %v2954_v27 = vld [vmem:[%s3047_s21 + $0x148] sm:$0xff]   ;;  %v2956_v29 = vld [vmem:[%s3047_s21 + $0x150] sm:$0xff]   ;;  %v2958_v31 = vld [vmem:[%s3047_s21 + $0x158] sm:$0xff]  }
  0x18   : > { %2769 = vmatprep.subr.bf16.mxu0 %v2932_v7  ;;  %2908 = vmatprep.subr.bf16.mxu1 %v2932_v7  ;;  %v2959_v32 = vld [vmem:[%s3047_s21 + $0x60] sm:$0xff]   ;;  %v2961_v34 = vld [vmem:[%s3047_s21 + $0x68] sm:$0xff]   ;;  %v2963_v36 = vld [vmem:[%s3047_s21 + $0x70] sm:$0xff]  }
  0x19   : > { %v2960_v33 = vld [vmem:[%s3047_s21 + $0x160] sm:$0xff]   ;;  %v2962_v35 = vld [vmem:[%s3047_s21 + $0x168] sm:$0xff]   ;;  %v2964_v37 = vld [vmem:[%s3047_s21 + $0x170] sm:$0xff]  }
  0x1a   : > { %v2965_v38 = vld [vmem:[%s3047_s21 + $0x78] sm:$0xff]   ;;  %v2967_v40 = vld [vmem:[%s3047_s21 + $0x80] sm:$0xff]   ;;  %v2969_v42 = vld [vmem:[%s3047_s21 + $0x88] sm:$0xff]  }
  0x1b   : > { %2770 = vmatpush3.bf16.msra.mxu0 %v2932_v7  ;;  %2916 = vmatpush3.bf16.msra.mxu1 %v2932_v7  ;;  %v2966_v39 = vld [vmem:[%s3047_s21 + $0x178] sm:$0xff]   ;;  %v2968_v41 = vld [vmem:[%s3047_s21 + $0x180] sm:$0xff]   ;;  %v2970_v43 = vld [vmem:[%s3047_s21 + $0x188] sm:$0xff]  }
  0x1c   : > { %2771 = vmatprep.subr.bf16.mxu0 %v2933_v8  ;;  %2909 = vmatprep.subr.bf16.mxu1 %v2933_v8  ;;  %v2971_v44 = vld [vmem:[%s3047_s21 + $0x90] sm:$0xff]   ;;  %v2973_v46 = vld [vmem:[%s3047_s21 + $0x98] sm:$0xff]   ;;  %v2975_v48 = vld [vmem:[%s3047_s21 + $0xa0] sm:$0xff]  }
  0x1d   : > { %v2972_v45 = vld [vmem:[%s3047_s21 + $0x190] sm:$0xff]   ;;  %v2974_v47 = vld [vmem:[%s3047_s21 + $0x198] sm:$0xff]   ;;  %v2976_v49 = vld [vmem:[%s3047_s21 + $0x1a0] sm:$0xff]  }
  0x1e   : > { %v2977_v50 = vld [vmem:[%s3047_s21 + $0xa8] sm:$0xff]   ;;  %v2979_v52 = vld [vmem:[%s3047_s21 + $0xb0] sm:$0xff]   ;;  %v2981_v54 = vld [vmem:[%s3047_s21 + $0xb8] sm:$0xff]  }
  0x1f   : > { %2772 = vmatpush3.bf16.msra.mxu0 %v2933_v8  ;;  %2917 = vmatpush3.bf16.msra.mxu1 %v2933_v8  ;;  %v2978_v51 = vld [vmem:[%s3047_s21 + $0x1a8] sm:$0xff]   ;;  %v2980_v53 = vld [vmem:[%s3047_s21 + $0x1b0] sm:$0xff]   ;;  %v2982_v55 = vld [vmem:[%s3047_s21 + $0x1b8] sm:$0xff]  }
  0x20   : > { %2773 = vmatprep.subr.bf16.mxu0 %v2934_v9  ;;  %2910 = vmatprep.subr.bf16.mxu1 %v2934_v9  ;;  %v2983_v56 = vld [vmem:[%s3047_s21 + $0xc0] sm:$0xff]   ;;  %v2985_v58 = vld [vmem:[%s3047_s21 + $0xc8] sm:$0xff]   ;;  %v2987_v60 = vld [vmem:[%s3047_s21 + $0xd0] sm:$0xff]  }
  0x21   : > { %v2984_v57 = vld [vmem:[%s3047_s21 + $0x1c0] sm:$0xff]   ;;  %v2986_v59 = vld [vmem:[%s3047_s21 + $0x1c8] sm:$0xff]   ;;  %v2988_v61 = vld [vmem:[%s3047_s21 + $0x1d0] sm:$0xff]  }
  0x22   : > { %v2989_v62 = vld [vmem:[%s3047_s21 + $0xd8] sm:$0xff]   ;;  %v2991_v0 = vld [vmem:[%s3047_s21 + $0xe0] sm:$0xff]   ;;  %v2993_v2 = vld [vmem:[%s3047_s21 + $0xe8] sm:$0xff]  }
  0x23   : > { %2774 = vmatpush3.bf16.msra.mxu0 %v2934_v9  ;;  %2918 = vmatpush3.bf16.msra.mxu1 %v2934_v9  ;;  %v2990_v63 = vld [vmem:[%s3047_s21 + $0x1d8] sm:$0xff]   ;;  %v2992_v1 = vld [vmem:[%s3047_s21 + $0x1e0] sm:$0xff]   ;;  %v2994_v3 = vld [vmem:[%s3047_s21 + $0x1e8] sm:$0xff]  }
  0x24   : > { %v2995_v4 = vld [vmem:[%s3047_s21 + $0xf0] sm:$0xff]   ;;  %v2997_v6 = vld [vmem:[%s3047_s21 + $0xf8] sm:$0xff]  }
  0x25   : > { %v2996_v5 = vld [vmem:[%s3047_s21 + $0x1f0] sm:$0xff]   ;;  %v2998_v7 = vld [vmem:[%s3047_s21 + $0x1f8] sm:$0xff]  }
  0x26   : > { %2776 = vmatmul.mubr.bf16.vlgmr.msra.gmra.mrb[0].mxu0 %v2937_v10  ;;  %2840 = vmatmul.mubr.bf16.vlgmr.msra.gmra.mrb[0].mxu1 %v2938_v11 }
  0x27   : > { %2779 = vmatprep.mubr.bf16.mxu0 %v2939_v12  ;;  %2843 = vmatprep.mubr.bf16.mxu1 %v2940_v13 }
  0x2e   : > { %2780 = vmatmul.mubr.bf16.gmra.mrb[4].mxu0 %v2941_v14  ;;  %2844 = vmatmul.mubr.bf16.gmra.mrb[4].mxu1 %v2942_v15 }
  0x2f   : > { %2783 = vmatprep.mubr.bf16.mxu0 %v2943_v16  ;;  %2847 = vmatprep.mubr.bf16.mxu1 %v2944_v17 }
  0x36   : > { %2784 = vmatmul.mubr.bf16.gmra.mrb[8].mxu0 %v2945_v18  ;;  %2848 = vmatmul.mubr.bf16.gmra.mrb[8].mxu1 %v2946_v19 }
  0x37   : > { %2787 = vmatprep.mubr.bf16.mxu0 %v2947_v20  ;;  %2851 = vmatprep.mubr.bf16.mxu1 %v2948_v21 }
  0x3e   : > { %2788 = vmatmul.mubr.bf16.gmra.mrb[12].mxu0 %v2949_v22  ;;  %2852 = vmatmul.mubr.bf16.gmra.mrb[12].mxu1 %v2950_v23 }
  0x3f   : > { %2791 = vmatprep.mubr.bf16.mxu0 %v2951_v24  ;;  %2855 = vmatprep.mubr.bf16.mxu1 %v2952_v25 }
  0x46   : > { %2792 = vmatmul.mubr.bf16.gmra.mrb[16].mxu0 %v2953_v26  ;;  %2856 = vmatmul.mubr.bf16.gmra.mrb[16].mxu1 %v2954_v27 }
  0x47   : > { %2795 = vmatprep.mubr.bf16.mxu0 %v2955_v28  ;;  %2859 = vmatprep.mubr.bf16.mxu1 %v2956_v29 }
  0x4e   : > { %2796 = vmatmul.mubr.bf16.gmra.mrb[20].mxu0 %v2957_v30  ;;  %2860 = vmatmul.mubr.bf16.gmra.mrb[20].mxu1 %v2958_v31 }
  0x4f   : > { %2799 = vmatprep.mubr.bf16.mxu0 %v2959_v32  ;;  %2863 = vmatprep.mubr.bf16.mxu1 %v2960_v33 }
  0x56   : > { %2800 = vmatmul.mubr.bf16.gmra.mrb[24].mxu0 %v2961_v34  ;;  %2864 = vmatmul.mubr.bf16.gmra.mrb[24].mxu1 %v2962_v35 }
  0x57   : > { %2803 = vmatprep.mubr.bf16.mxu0 %v2963_v36  ;;  %2867 = vmatprep.mubr.bf16.mxu1 %v2964_v37 }
  0x5e   : > { %2804 = vmatmul.mubr.bf16.gmra.mrb[28].mxu0 %v2965_v38  ;;  %2868 = vmatmul.mubr.bf16.gmra.mrb[28].mxu1 %v2966_v39 }
  0x5f   : > { %2807 = vmatprep.mubr.bf16.mxu0 %v2967_v40  ;;  %2871 = vmatprep.mubr.bf16.mxu1 %v2968_v41 }
  0x66   : > { %2808 = vmatmul.mubr.bf16.gmra.mrb[32].mxu0 %v2969_v42  ;;  %2872 = vmatmul.mubr.bf16.gmra.mrb[32].mxu1 %v2970_v43 }
  0x67   : > { %2811 = vmatprep.mubr.bf16.mxu0 %v2971_v44  ;;  %2875 = vmatprep.mubr.bf16.mxu1 %v2972_v45 }
  0x6e   : > { %2812 = vmatmul.mubr.bf16.gmra.mrb[36].mxu0 %v2973_v46  ;;  %2876 = vmatmul.mubr.bf16.gmra.mrb[36].mxu1 %v2974_v47 }
  0x6f   : > { %2815 = vmatprep.mubr.bf16.mxu0 %v2975_v48  ;;  %2879 = vmatprep.mubr.bf16.mxu1 %v2976_v49 }
  0x76   : > { %2816 = vmatmul.mubr.bf16.gmra.mrb[40].mxu0 %v2977_v50  ;;  %2880 = vmatmul.mubr.bf16.gmra.mrb[40].mxu1 %v2978_v51 }
  0x77   : > { %2819 = vmatprep.mubr.bf16.mxu0 %v2979_v52  ;;  %2883 = vmatprep.mubr.bf16.mxu1 %v2980_v53 }
  0x7e   : > { %2820 = vmatmul.mubr.bf16.gmra.mrb[44].mxu0 %v2981_v54  ;;  %2884 = vmatmul.mubr.bf16.gmra.mrb[44].mxu1 %v2982_v55 }
  0x7f   : > { %2823 = vmatprep.mubr.bf16.mxu0 %v2983_v56  ;;  %2887 = vmatprep.mubr.bf16.mxu1 %v2984_v57 }
  0x86   : > { %2824 = vmatmul.mubr.bf16.gmra.mrb[48].mxu0 %v2985_v58  ;;  %2888 = vmatmul.mubr.bf16.gmra.mrb[48].mxu1 %v2986_v59 }
  0x87   : > { %2827 = vmatprep.mubr.bf16.mxu0 %v2987_v60  ;;  %2891 = vmatprep.mubr.bf16.mxu1 %v2988_v61 }
  0x8e   : > { %2828 = vmatmul.mubr.bf16.gmra.mrb[52].mxu0 %v2989_v62  ;;  %2892 = vmatmul.mubr.bf16.gmra.mrb[52].mxu1 %v2990_v63 }
  0x8f   : > { %2831 = vmatprep.mubr.bf16.mxu0 %v2991_v0  ;;  %2895 = vmatprep.mubr.bf16.mxu1 %v2992_v1 }
  0x96   : > { %2832 = vmatmul.mubr.bf16.gmra.mrb[56].mxu0 %v2993_v2  ;;  %2896 = vmatmul.mubr.bf16.gmra.mrb[56].mxu1 %v2994_v3 }
  0x97   : > { %2835 = vmatprep.mubr.bf16.mxu0 %v2995_v4  ;;  %2899 = vmatprep.mubr.bf16.mxu1 %v2996_v5 }
  0x9e   : > { %2836 = vmatmul.mubr.bf16.gmra.mrb[60].mxu0 %v2997_v6  ;;  %2900 = vmatmul.mubr.bf16.gmra.mrb[60].mxu1 %v2998_v7 }
  0xf9   : > { %v2777_v8 = vpop.f32.mrb[0].mxu0  ;;  %v2841_v9 = vpop.f32.mrb[0].mxu1 }
  0xfa   : > { %v758_v10 = vpop.f32.mrb[1].mxu0  ;;  %v1014_v11 = vpop.f32.mrb[1].mxu1 }
  0xfb   : > { %v2778_v12 = vpop.f32.mrb[2].mxu0  ;;  %v2842_v13 = vpop.f32.mrb[2].mxu1 }
  0xfc   : > { %v2312_v14 = vpack.c.bf16 %v2778_v12, %v2777_v8  ;;  %v2472_v15 = vpack.c.bf16 %v2842_v13, %v2841_v9  ;;  %v761_v16 = vpop.f32.mrb[3].mxu0  ;;  %v1017_v17 = vpop.f32.mrb[3].mxu1 }
  0xfd   : > { %v2307_v18 = vpack.c.bf16 %v761_v16, %v758_v10  ;;  %v2467_v19 = vpack.c.bf16 %v1017_v17, %v1014_v11 }
  0xfe   : > { %2624 = vst [vmem:[%s3133_s6 + $0x8] sm:$0xff] %v2312_v14   ;;  %2656 = vst [vmem:[%s3133_s6 + $0x108] sm:$0xff] %v2472_v15  }
  0xff   : > { %2308 = vst [vmem:[%s3133_s6] sm:$0xff] %v2307_v18   ;;  %2655 = vst [vmem:[%s3133_s6 + $0x100] sm:$0xff] %v2467_v19  }
 0x101   : > { %v2781_v20 = vpop.f32.mrb[4].mxu0  ;;  %v2845_v21 = vpop.f32.mrb[4].mxu1 }
 0x102   : > { %v774_v22 = vpop.f32.mrb[5].mxu0  ;;  %v1030_v23 = vpop.f32.mrb[5].mxu1 }
 0x103   : > { %v2782_v24 = vpop.f32.mrb[6].mxu0  ;;  %v2846_v25 = vpop.f32.mrb[6].mxu1 }
 0x104   : > { %v2322_v26 = vpack.c.bf16 %v2782_v24, %v2781_v20  ;;  %v2482_v27 = vpack.c.bf16 %v2846_v25, %v2845_v21  ;;  %v777_v28 = vpop.f32.mrb[7].mxu0  ;;  %v1033_v29 = vpop.f32.mrb[7].mxu1 }
 0x105   : > { %v2317_v30 = vpack.c.bf16 %v777_v28, %v774_v22  ;;  %v2477_v31 = vpack.c.bf16 %v1033_v29, %v1030_v23 }
 0x106   : > { %2626 = vst [vmem:[%s3133_s6 + $0x18] sm:$0xff] %v2322_v26   ;;  %2658 = vst [vmem:[%s3133_s6 + $0x118] sm:$0xff] %v2482_v27  }
 0x107   : > { %2625 = vst [vmem:[%s3133_s6 + $0x10] sm:$0xff] %v2317_v30   ;;  %2657 = vst [vmem:[%s3133_s6 + $0x110] sm:$0xff] %v2477_v31  }
 0x109   : > { %v2785_v32 = vpop.f32.mrb[8].mxu0  ;;  %v2849_v33 = vpop.f32.mrb[8].mxu1 }
 0x10a   : > { %v790_v34 = vpop.f32.mrb[9].mxu0  ;;  %v1046_v35 = vpop.f32.mrb[9].mxu1 }
 0x10b   : > { %v2786_v36 = vpop.f32.mrb[10].mxu0  ;;  %v2850_v37 = vpop.f32.mrb[10].mxu1 }
 0x10c   : > { %v2332_v38 = vpack.c.bf16 %v2786_v36, %v2785_v32  ;;  %v2492_v39 = vpack.c.bf16 %v2850_v37, %v2849_v33  ;;  %v793_v40 = vpop.f32.mrb[11].mxu0  ;;  %v1049_v41 = vpop.f32.mrb[11].mxu1 }
 0x10d   : > { %v2327_v42 = vpack.c.bf16 %v793_v40, %v790_v34  ;;  %v2487_v43 = vpack.c.bf16 %v1049_v41, %v1046_v35 }
 0x10e   : > { %2628 = vst [vmem:[%s3133_s6 + $0x28] sm:$0xff] %v2332_v38   ;;  %2660 = vst [vmem:[%s3133_s6 + $0x128] sm:$0xff] %v2492_v39  }
 0x10f   : > { %2627 = vst [vmem:[%s3133_s6 + $0x20] sm:$0xff] %v2327_v42   ;;  %2659 = vst [vmem:[%s3133_s6 + $0x120] sm:$0xff] %v2487_v43  }
 0x111   : > { %v2789_v44 = vpop.f32.mrb[12].mxu0  ;;  %v2853_v45 = vpop.f32.mrb[12].mxu1 }
 0x112   : > { %v806_v46 = vpop.f32.mrb[13].mxu0  ;;  %v1062_v47 = vpop.f32.mrb[13].mxu1 }
 0x113   : > { %v2790_v48 = vpop.f32.mrb[14].mxu0  ;;  %v2854_v49 = vpop.f32.mrb[14].mxu1 }
 0x114   : > { %v2342_v50 = vpack.c.bf16 %v2790_v48, %v2789_v44  ;;  %v2502_v51 = vpack.c.bf16 %v2854_v49, %v2853_v45  ;;  %v809_v52 = vpop.f32.mrb[15].mxu0  ;;  %v1065_v53 = vpop.f32.mrb[15].mxu1 }
 0x115   : > { %v2337_v54 = vpack.c.bf16 %v809_v52, %v806_v46  ;;  %v2497_v55 = vpack.c.bf16 %v1065_v53, %v1062_v47 }
 0x116   : > { %2630 = vst [vmem:[%s3133_s6 + $0x38] sm:$0xff] %v2342_v50   ;;  %2662 = vst [vmem:[%s3133_s6 + $0x138] sm:$0xff] %v2502_v51  }
 0x117   : > { %2629 = vst [vmem:[%s3133_s6 + $0x30] sm:$0xff] %v2337_v54   ;;  %2661 = vst [vmem:[%s3133_s6 + $0x130] sm:$0xff] %v2497_v55  }
 0x119   : > { %v2793_v56 = vpop.f32.mrb[16].mxu0  ;;  %v2857_v57 = vpop.f32.mrb[16].mxu1 }
 0x11a   : > { %v822_v58 = vpop.f32.mrb[17].mxu0  ;;  %v1078_v59 = vpop.f32.mrb[17].mxu1 }
 0x11b   : > { %v2794_v60 = vpop.f32.mrb[18].mxu0  ;;  %v2858_v61 = vpop.f32.mrb[18].mxu1 }
 0x11c   : > { %v2352_v62 = vpack.c.bf16 %v2794_v60, %v2793_v56  ;;  %v2512_v63 = vpack.c.bf16 %v2858_v61, %v2857_v57  ;;  %v825_v0 = vpop.f32.mrb[19].mxu0  ;;  %v1081_v1 = vpop.f32.mrb[19].mxu1 }
 0x11d   : > { %v2347_v2 = vpack.c.bf16 %v825_v0, %v822_v58  ;;  %v2507_v3 = vpack.c.bf16 %v1081_v1, %v1078_v59 }
 0x11e   : > { %2632 = vst [vmem:[%s3133_s6 + $0x48] sm:$0xff] %v2352_v62   ;;  %2664 = vst [vmem:[%s3133_s6 + $0x148] sm:$0xff] %v2512_v63  }
 0x11f   : > { %2631 = vst [vmem:[%s3133_s6 + $0x40] sm:$0xff] %v2347_v2   ;;  %2663 = vst [vmem:[%s3133_s6 + $0x140] sm:$0xff] %v2507_v3  }
 0x121   : > { %v2797_v4 = vpop.f32.mrb[20].mxu0  ;;  %v2861_v5 = vpop.f32.mrb[20].mxu1 }
 0x122   : > { %v838_v6 = vpop.f32.mrb[21].mxu0  ;;  %v1094_v7 = vpop.f32.mrb[21].mxu1 }
 0x123   : > { %v2798_v8 = vpop.f32.mrb[22].mxu0  ;;  %v2862_v9 = vpop.f32.mrb[22].mxu1 }
 0x124   : > { %v2362_v10 = vpack.c.bf16 %v2798_v8, %v2797_v4  ;;  %v2522_v11 = vpack.c.bf16 %v2862_v9, %v2861_v5  ;;  %v841_v12 = vpop.f32.mrb[23].mxu0  ;;  %v1097_v13 = vpop.f32.mrb[23].mxu1 }
 0x125   : > { %v2357_v14 = vpack.c.bf16 %v841_v12, %v838_v6  ;;  %v2517_v15 = vpack.c.bf16 %v1097_v13, %v1094_v7 }
 0x126   : > { %2634 = vst [vmem:[%s3133_s6 + $0x58] sm:$0xff] %v2362_v10   ;;  %2666 = vst [vmem:[%s3133_s6 + $0x158] sm:$0xff] %v2522_v11  }
 0x127   : > { %2633 = vst [vmem:[%s3133_s6 + $0x50] sm:$0xff] %v2357_v14   ;;  %2665 = vst [vmem:[%s3133_s6 + $0x150] sm:$0xff] %v2517_v15  }
 0x129   : > { %v2801_v16 = vpop.f32.mrb[24].mxu0  ;;  %v2865_v17 = vpop.f32.mrb[24].mxu1 }
 0x12a   : > { %v854_v18 = vpop.f32.mrb[25].mxu0  ;;  %v1110_v19 = vpop.f32.mrb[25].mxu1 }
 0x12b   : > { %v2802_v20 = vpop.f32.mrb[26].mxu0  ;;  %v2866_v21 = vpop.f32.mrb[26].mxu1 }
 0x12c   : > { %v2372_v22 = vpack.c.bf16 %v2802_v20, %v2801_v16  ;;  %v2532_v23 = vpack.c.bf16 %v2866_v21, %v2865_v17  ;;  %v857_v24 = vpop.f32.mrb[27].mxu0  ;;  %v1113_v25 = vpop.f32.mrb[27].mxu1 }
 0x12d   : > { %v2367_v26 = vpack.c.bf16 %v857_v24, %v854_v18  ;;  %v2527_v27 = vpack.c.bf16 %v1113_v25, %v1110_v19 }
 0x12e   : > { %2636 = vst [vmem:[%s3133_s6 + $0x68] sm:$0xff] %v2372_v22   ;;  %2668 = vst [vmem:[%s3133_s6 + $0x168] sm:$0xff] %v2532_v23  }
 0x12f   : > { %2635 = vst [vmem:[%s3133_s6 + $0x60] sm:$0xff] %v2367_v26   ;;  %2667 = vst [vmem:[%s3133_s6 + $0x160] sm:$0xff] %v2527_v27  }
 0x131   : > { %v2805_v28 = vpop.f32.mrb[28].mxu0  ;;  %v2869_v29 = vpop.f32.mrb[28].mxu1 }
 0x132   : > { %v870_v30 = vpop.f32.mrb[29].mxu0  ;;  %v1126_v31 = vpop.f32.mrb[29].mxu1 }
 0x133   : > { %v2806_v32 = vpop.f32.mrb[30].mxu0  ;;  %v2870_v33 = vpop.f32.mrb[30].mxu1 }
 0x134   : > { %v2382_v34 = vpack.c.bf16 %v2806_v32, %v2805_v28  ;;  %v2542_v35 = vpack.c.bf16 %v2870_v33, %v2869_v29  ;;  %v873_v36 = vpop.f32.mrb[31].mxu0  ;;  %v1129_v37 = vpop.f32.mrb[31].mxu1 }
 0x135   : > { %v2377_v38 = vpack.c.bf16 %v873_v36, %v870_v30  ;;  %v2537_v39 = vpack.c.bf16 %v1129_v37, %v1126_v31 }
 0x136   : > { %2638 = vst [vmem:[%s3133_s6 + $0x78] sm:$0xff] %v2382_v34   ;;  %2670 = vst [vmem:[%s3133_s6 + $0x178] sm:$0xff] %v2542_v35  }
 0x137   : > { %2637 = vst [vmem:[%s3133_s6 + $0x70] sm:$0xff] %v2377_v38   ;;  %2669 = vst [vmem:[%s3133_s6 + $0x170] sm:$0xff] %v2537_v39  }
 0x139   : > { %v2809_v40 = vpop.f32.mrb[32].mxu0  ;;  %v2873_v41 = vpop.f32.mrb[32].mxu1 }
 0x13a   : > { %v886_v42 = vpop.f32.mrb[33].mxu0  ;;  %v1142_v43 = vpop.f32.mrb[33].mxu1 }
 0x13b   : > { %v2810_v44 = vpop.f32.mrb[34].mxu0  ;;  %v2874_v45 = vpop.f32.mrb[34].mxu1 }
 0x13c   : > { %v2392_v46 = vpack.c.bf16 %v2810_v44, %v2809_v40  ;;  %v2552_v47 = vpack.c.bf16 %v2874_v45, %v2873_v41  ;;  %v889_v48 = vpop.f32.mrb[35].mxu0  ;;  %v1145_v49 = vpop.f32.mrb[35].mxu1 }
 0x13d   : > { %v2387_v50 = vpack.c.bf16 %v889_v48, %v886_v42  ;;  %v2547_v51 = vpack.c.bf16 %v1145_v49, %v1142_v43 }
 0x13e   : > { %2640 = vst [vmem:[%s3133_s6 + $0x88] sm:$0xff] %v2392_v46   ;;  %2672 = vst [vmem:[%s3133_s6 + $0x188] sm:$0xff] %v2552_v47  }
 0x13f   : > { %2639 = vst [vmem:[%s3133_s6 + $0x80] sm:$0xff] %v2387_v50   ;;  %2671 = vst [vmem:[%s3133_s6 + $0x180] sm:$0xff] %v2547_v51  }
 0x141   : > { %v2813_v52 = vpop.f32.mrb[36].mxu0  ;;  %v2877_v53 = vpop.f32.mrb[36].mxu1 }
 0x142   : > { %v902_v54 = vpop.f32.mrb[37].mxu0  ;;  %v1158_v55 = vpop.f32.mrb[37].mxu1 }
 0x143   : > { %v2814_v56 = vpop.f32.mrb[38].mxu0  ;;  %v2878_v57 = vpop.f32.mrb[38].mxu1 }
 0x144   : > { %v2402_v58 = vpack.c.bf16 %v2814_v56, %v2813_v52  ;;  %v2562_v59 = vpack.c.bf16 %v2878_v57, %v2877_v53  ;;  %v905_v60 = vpop.f32.mrb[39].mxu0  ;;  %v1161_v61 = vpop.f32.mrb[39].mxu1 }
 0x145   : > { %v2397_v62 = vpack.c.bf16 %v905_v60, %v902_v54  ;;  %v2557_v63 = vpack.c.bf16 %v1161_v61, %v1158_v55 }
 0x146   : > { %2642 = vst [vmem:[%s3133_s6 + $0x98] sm:$0xff] %v2402_v58   ;;  %2674 = vst [vmem:[%s3133_s6 + $0x198] sm:$0xff] %v2562_v59  }
 0x147   : > { %2641 = vst [vmem:[%s3133_s6 + $0x90] sm:$0xff] %v2397_v62   ;;  %2673 = vst [vmem:[%s3133_s6 + $0x190] sm:$0xff] %v2557_v63  }
 0x149   : > { %v2817_v0 = vpop.f32.mrb[40].mxu0  ;;  %v2881_v1 = vpop.f32.mrb[40].mxu1 }
 0x14a   : > { %v918_v2 = vpop.f32.mrb[41].mxu0  ;;  %v1174_v3 = vpop.f32.mrb[41].mxu1 }
 0x14b   : > { %v2818_v4 = vpop.f32.mrb[42].mxu0  ;;  %v2882_v5 = vpop.f32.mrb[42].mxu1 }
 0x14c   : > { %v2412_v6 = vpack.c.bf16 %v2818_v4, %v2817_v0  ;;  %v2572_v7 = vpack.c.bf16 %v2882_v5, %v2881_v1  ;;  %v921_v8 = vpop.f32.mrb[43].mxu0  ;;  %v1177_v9 = vpop.f32.mrb[43].mxu1 }
 0x14d   : > { %v2407_v10 = vpack.c.bf16 %v921_v8, %v918_v2  ;;  %v2567_v11 = vpack.c.bf16 %v1177_v9, %v1174_v3 }
 0x14e   : > { %2644 = vst [vmem:[%s3133_s6 + $0xa8] sm:$0xff] %v2412_v6   ;;  %2676 = vst [vmem:[%s3133_s6 + $0x1a8] sm:$0xff] %v2572_v7  }
 0x14f   : > { %2643 = vst [vmem:[%s3133_s6 + $0xa0] sm:$0xff] %v2407_v10   ;;  %2675 = vst [vmem:[%s3133_s6 + $0x1a0] sm:$0xff] %v2567_v11  }
 0x151   : > { %v2821_v12 = vpop.f32.mrb[44].mxu0  ;;  %v2885_v13 = vpop.f32.mrb[44].mxu1 }
 0x152   : > { %v934_v14 = vpop.f32.mrb[45].mxu0  ;;  %v1190_v15 = vpop.f32.mrb[45].mxu1 }
 0x153   : > { %v2822_v16 = vpop.f32.mrb[46].mxu0  ;;  %v2886_v17 = vpop.f32.mrb[46].mxu1 }
 0x154   : > { %v2422_v18 = vpack.c.bf16 %v2822_v16, %v2821_v12  ;;  %v2582_v19 = vpack.c.bf16 %v2886_v17, %v2885_v13  ;;  %v937_v20 = vpop.f32.mrb[47].mxu0  ;;  %v1193_v21 = vpop.f32.mrb[47].mxu1 }
 0x155   : > { %v2417_v22 = vpack.c.bf16 %v937_v20, %v934_v14  ;;  %v2577_v23 = vpack.c.bf16 %v1193_v21, %v1190_v15 }
 0x156   : > { %2646 = vst [vmem:[%s3133_s6 + $0xb8] sm:$0xff] %v2422_v18   ;;  %2678 = vst [vmem:[%s3133_s6 + $0x1b8] sm:$0xff] %v2582_v19  }
 0x157   : > { %2645 = vst [vmem:[%s3133_s6 + $0xb0] sm:$0xff] %v2417_v22   ;;  %2677 = vst [vmem:[%s3133_s6 + $0x1b0] sm:$0xff] %v2577_v23  }
 0x159   : > { %v2825_v24 = vpop.f32.mrb[48].mxu0  ;;  %v2889_v25 = vpop.f32.mrb[48].mxu1 }
 0x15a   : > { %v950_v26 = vpop.f32.mrb[49].mxu0  ;;  %v1206_v27 = vpop.f32.mrb[49].mxu1 }
 0x15b   : > { %v2826_v28 = vpop.f32.mrb[50].mxu0  ;;  %v2890_v29 = vpop.f32.mrb[50].mxu1 }
 0x15c   : > { %v2432_v30 = vpack.c.bf16 %v2826_v28, %v2825_v24  ;;  %v2592_v31 = vpack.c.bf16 %v2890_v29, %v2889_v25  ;;  %v953_v32 = vpop.f32.mrb[51].mxu0  ;;  %v1209_v33 = vpop.f32.mrb[51].mxu1 }
 0x15d   : > { %v2427_v34 = vpack.c.bf16 %v953_v32, %v950_v26  ;;  %v2587_v35 = vpack.c.bf16 %v1209_v33, %v1206_v27 }
 0x15e   : > { %2648 = vst [vmem:[%s3133_s6 + $0xc8] sm:$0xff] %v2432_v30   ;;  %2680 = vst [vmem:[%s3133_s6 + $0x1c8] sm:$0xff] %v2592_v31  }
 0x15f   : > { %2647 = vst [vmem:[%s3133_s6 + $0xc0] sm:$0xff] %v2427_v34   ;;  %2679 = vst [vmem:[%s3133_s6 + $0x1c0] sm:$0xff] %v2587_v35  }
 0x161   : > { %v2829_v36 = vpop.f32.mrb[52].mxu0  ;;  %v2893_v37 = vpop.f32.mrb[52].mxu1 }
 0x162   : > { %v966_v38 = vpop.f32.mrb[53].mxu0  ;;  %v1222_v39 = vpop.f32.mrb[53].mxu1 }
 0x163   : > { %v2830_v40 = vpop.f32.mrb[54].mxu0  ;;  %v2894_v41 = vpop.f32.mrb[54].mxu1 }
 0x164   : > { %v2442_v42 = vpack.c.bf16 %v2830_v40, %v2829_v36  ;;  %v2602_v43 = vpack.c.bf16 %v2894_v41, %v2893_v37  ;;  %v969_v44 = vpop.f32.mrb[55].mxu0  ;;  %v1225_v45 = vpop.f32.mrb[55].mxu1 }
 0x165   : > { %v2437_v46 = vpack.c.bf16 %v969_v44, %v966_v38  ;;  %v2597_v47 = vpack.c.bf16 %v1225_v45, %v1222_v39 }
 0x166   : > { %2650 = vst [vmem:[%s3133_s6 + $0xd8] sm:$0xff] %v2442_v42   ;;  %2682 = vst [vmem:[%s3133_s6 + $0x1d8] sm:$0xff] %v2602_v43  }
 0x167   : > { %2649 = vst [vmem:[%s3133_s6 + $0xd0] sm:$0xff] %v2437_v46   ;;  %2681 = vst [vmem:[%s3133_s6 + $0x1d0] sm:$0xff] %v2597_v47  }
 0x169   : > { %v2833_v48 = vpop.f32.mrb[56].mxu0  ;;  %v2897_v49 = vpop.f32.mrb[56].mxu1 }
 0x16a   : > { %v982_v50 = vpop.f32.mrb[57].mxu0  ;;  %v1238_v51 = vpop.f32.mrb[57].mxu1 }
 0x16b   : > { %v2834_v52 = vpop.f32.mrb[58].mxu0  ;;  %v2898_v53 = vpop.f32.mrb[58].mxu1 }
 0x16c   : > { %v2452_v54 = vpack.c.bf16 %v2834_v52, %v2833_v48  ;;  %v2612_v55 = vpack.c.bf16 %v2898_v53, %v2897_v49  ;;  %v985_v56 = vpop.f32.mrb[59].mxu0  ;;  %v1241_v57 = vpop.f32.mrb[59].mxu1 }
 0x16d   : > { %v2447_v58 = vpack.c.bf16 %v985_v56, %v982_v50  ;;  %v2607_v59 = vpack.c.bf16 %v1241_v57, %v1238_v51 }
 0x16e   : > { %2652 = vst [vmem:[%s3133_s6 + $0xe8] sm:$0xff] %v2452_v54   ;;  %2684 = vst [vmem:[%s3133_s6 + $0x1e8] sm:$0xff] %v2612_v55  }
 0x16f   : > { %2651 = vst [vmem:[%s3133_s6 + $0xe0] sm:$0xff] %v2447_v58   ;;  %2683 = vst [vmem:[%s3133_s6 + $0x1e0] sm:$0xff] %v2607_v59  }
 0x171   : > { %v2837_v60 = vpop.f32.mrb[60].mxu0  ;;  %v2901_v61 = vpop.f32.mrb[60].mxu1 }
 0x172   : > { %v998_v62 = vpop.f32.mrb[61].mxu0  ;;  %v1254_v63 = vpop.f32.mrb[61].mxu1 }
 0x173   : > { %v2838_v0 = vpop.f32.mrb[62].mxu0  ;;  %v2902_v1 = vpop.f32.mrb[62].mxu1 }
 0x174   : > { %v2462_v2 = vpack.c.bf16 %v2838_v0, %v2837_v60  ;;  %v2622_v3 = vpack.c.bf16 %v2902_v1, %v2901_v61  ;;  %v1001_v4 = vpop.f32.mrb[63].mxu0  ;;  %v1257_v5 = vpop.f32.mrb[63].mxu1 }
 0x175   : > { %v2457_v6 = vpack.c.bf16 %v1001_v4, %v998_v62  ;;  %v2617_v7 = vpack.c.bf16 %v1257_v5, %v1254_v63 }
 0x176   : > { %2654 = vst [vmem:[%s3133_s6 + $0xf8] sm:$0xff] %v2462_v2   ;;  %2686 = vst [vmem:[%s3133_s6 + $0x1f8] sm:$0xff] %v2622_v3  }
 0x177   : > { %2653 = vst [vmem:[%s3133_s6 + $0xf0] sm:$0xff] %v2457_v6   ;;  %2685 = vst [vmem:[%s3133_s6 + $0x1f0] sm:$0xff] %v2617_v7  }
 0x178 PF: > { %s12_s9 = sadd.s32 1, %s3005_s9  }
 0x179   : > { %p9_p4 = scmp.ge.s32.totalorder %s12_s9, 4  }
 0x17b   :  { %11 = sbr.rel (!%p9_p4) target bundleno = 1 (0x1), region = 58 }

// kernel: unet_encoder_forward.14
= control target key start
LH: loop header
LB: loop body
LE: loop exit
PB: predicated region body
PF: predicated region fallthrough
CT: control target
= control target key end

     0   :  { %s1348_s12 = smov 0   ;;  %s1685_s0 = inlined_call_operand.vmem [shape: bf16[512,128], index: 0, kind: input, shape index: {}]   ;;  %s1686_s1 = inlined_call_operand.vmem [shape: bf16[128,256], index: 1, kind: input, shape index: {}]   ;;  %s1687_s2 = inlined_call_operand.vmem [shape: bf16[512,256], index: 2, kind: output, shape index: {0}]   ;;  %s1688_s3 = inlined_call_operand.vmem [shape: f32[16,256], index: 3, kind: output, shape index: {1}]  }
   0x1 LB: > { %s1354_s13 = sadd.s32 4294967295, %s1325_s12   ;;  %p1146_p0 = scmp.ge.s32.totalorder %s1325_s12, 1  ;;  %s1325_s12 = sphi %s1348_s12, %s14_s12  }
   0x2   : > { %p141_p1 = scmp.lt.s32.totalorder %s1325_s12, 3 }
   0x4   : > { %p142_p2 = pnand %p1146_p0, %p141_p1 }
   0x5   : > { %v1279_v0 = vld [vmem:[%s1686_s1 + $0x4] ss:$8 sps:$4 sm:$0xff] (!%p142_p2)   ;;  %s1147_s16 = sshll.u32 (!%p142_p2), %s1354_s13, 5  ;;  %v1281_v1 = vld [vmem:[%s1686_s1] ss:$8 sps:$4 sm:$0xff] (!%p142_p2)   ;;  %v1327_v2 = vmov (!%p142_p2), 0  }
   0x6   : > { %145 = sbr.rel (%p142_p2) target bundleno = 361 (0x169), region = 28  ;;  %446 = vmatprep.mubr.bf16.mxu0 (!%p142_p2), %v1327_v2  ;;  %p172_p3 = scmp.lt.s32.totalorder (!%p142_p2), %s1147_s16, 63  ;;  %526 = vmatprep.mubr.bf16.mxu1 (!%p142_p2), %v1327_v2  ;;  %v1282_v3 = vld [vmem:[%s1686_s1 + $0x14] ss:$8 sps:$4 sm:$0xff] (!%p142_p2)   ;;  %v1284_v4 = vld [vmem:[%s1686_s1 + $0x10] ss:$8 sps:$4 sm:$0xff] (!%p142_p2)  }
   0x7   : > { %414 = vmatprep.subr.bf16.mxu0 (!%p142_p2), %v1279_v0  ;;  %1254 = vmatprep.subr.bf16.mxu1 (!%p142_p2), %v1279_v0  ;;  %v1285_v5 = vld [vmem:[%s1686_s1 + $0x24] ss:$8 sps:$4 sm:$0xff] (!%p142_p2)   ;;  %v1287_v6 = vld [vmem:[%s1686_s1 + $0x20] ss:$8 sps:$4 sm:$0xff] (!%p142_p2)   ;;  %v1288_v7 = vld [vmem:[%s1686_s1 + $0x34] ss:$8 sps:$4 sm:$0xff] (!%p142_p2)  }
   0x8   : > { %415 = vmatpush1.bf16.msra.mxu0 (!%p142_p2), %v1281_v1  ;;  %1262 = vmatpush1.bf16.msra.mxu1 (!%p142_p2), %v1281_v1  ;;  %v1290_v8 = vld [vmem:[%s1686_s1 + $0x30] ss:$8 sps:$4 sm:$0xff] (!%p142_p2)   ;;  %v1291_v9 = vld [vmem:[%s1686_s1 + $0x44] ss:$8 sps:$4 sm:$0xff] (!%p142_p2)   ;;  %v1293_v10 = vld [vmem:[%s1686_s1 + $0x40] ss:$8 sps:$4 sm:$0xff] (!%p142_p2)  }
   0x9   : > { %416 = vmatprep.subr.bf16.mxu0 (!%p142_p2), %v1282_v3  ;;  %1255 = vmatprep.subr.bf16.mxu1 (!%p142_p2), %v1282_v3  ;;  %v1294_v11 = vld [vmem:[%s1686_s1 + $0x54] ss:$8 sps:$4 sm:$0xff] (!%p142_p2)   ;;  %v1296_v12 = vld [vmem:[%s1686_s1 + $0x50] ss:$8 sps:$4 sm:$0xff] (!%p142_p2)   ;;  %v1297_v13 = vld [vmem:[%s1686_s1 + $0x64] ss:$8 sps:$4 sm:$0xff] (!%p142_p2)  }
   0xa   : > { %v1299_v14 = vld [vmem:[%s1686_s1 + $0x60] ss:$8 sps:$4 sm:$0xff] (!%p142_p2)   ;;  %v1300_v15 = vld [vmem:[%s1686_s1 + $0x74] ss:$8 sps:$4 sm:$0xff] (!%p142_p2)   ;;  %v1302_v16 = vld [vmem:[%s1686_s1 + $0x70] ss:$8 sps:$4 sm:$0xff] (!%p142_p2)  }
   0xb   : > { %p184_p4 = scmp.lt.s32.totalorder (!%p142_p2), %s1354_s13, 1  ;;  %vm1043_vm0 = vcmask (!%p142_p2), 1040384   ;;  %vm1046_vm1 = vcmask (!%p142_p2), 1041408  }
   0xc   : > { %417 = vmatpush1.bf16.msra.mxu0 (!%p142_p2), %v1284_v4  ;;  %1263 = vmatpush1.bf16.msra.mxu1 (!%p142_p2), %v1284_v4 }
   0xd   : > { %s1690_s16 = smov (!%p172_p3, %s1147_s16), 63  ;;  %418 = vmatprep.subr.bf16.mxu0 %v1285_v5  ;;  %1256 = vmatprep.subr.bf16.mxu1 %v1285_v5  ;;  %s1692_s13 = smov (!%p184_p4, %s1354_s13), 1 }
   0xe   : > { %s1148_s25 = sshll.u32 %s1690_s16, 2  ;;  %s1220_s27 = sshll.u32 %s1690_s16, 3 }
   0xf   : > { %s1388_s5 = scalar_lea.vmem %s1685_s0, %s1148_s25  ;;  %s1453_s30 = scalar_lea.vmem %s1687_s2, %s1220_s27 }
  0x10   : > { %419 = vmatpush1.bf16.msra.mxu0 %v1287_v6  ;;  %1264 = vmatpush1.bf16.msra.mxu1 %v1287_v6  ;;  %v1303_v17 = vld [vmem:[%s1388_s5] sm:$0xff]   ;;  %v1304_v19 = vld [vmem:[%s1388_s5 + $0x8] sm:$0xff]   ;;  %v1305_v21 = vld [vmem:[%s1388_s5 + $0x10] sm:$0xff]   ;;  %s1221_s16 = sshll.u32 %s1692_s13, 4 }
  0x11   : > { %420 = vmatprep.subr.bf16.mxu0 %v1288_v7  ;;  %1257 = vmatprep.subr.bf16.mxu1 %v1288_v7  ;;  %v1307_v18 = vld [vmem:[%s1388_s5 + $0x40] sm:$0xff]   ;;  %v1309_v20 = vld [vmem:[%s1388_s5 + $0x48] sm:$0xff]   ;;  %v1311_v22 = vld [vmem:[%s1388_s5 + $0x50] sm:$0xff]   ;;  %s188_s6 = scalar_lea.vmem %s1688_s3, %s1221_s16 }
  0x12   : > { %v1306_v23 = vld [vmem:[%s1388_s5 + $0x18] sm:$0xff]   ;;  %v1308_v25 = vld [vmem:[%s1388_s5 + $0x20] sm:$0xff]   ;;  %v1310_v27 = vld [vmem:[%s1388_s5 + $0x28] sm:$0xff]  }
  0x13   : > { %v1313_v24 = vld [vmem:[%s1388_s5 + $0x58] sm:$0xff]   ;;  %v1315_v26 = vld [vmem:[%s1388_s5 + $0x60] sm:$0xff]   ;;  %v1316_v28 = vld [vmem:[%s1388_s5 + $0x68] sm:$0xff]  }
  0x14   : > { %421 = vmatpush1.bf16.msra.mxu0 %v1290_v8  ;;  %1265 = vmatpush1.bf16.msra.mxu1 %v1290_v8  ;;  %v1312_v29 = vld [vmem:[%s1388_s5 + $0x30] sm:$0xff]   ;;  %v1314_v31 = vld [vmem:[%s1388_s5 + $0x38] sm:$0xff]  }
  0x15   : > { %422 = vmatprep.subr.bf16.mxu0 %v1291_v9  ;;  %1258 = vmatprep.subr.bf16.mxu1 %v1291_v9  ;;  %v1317_v30 = vld [vmem:[%s1388_s5 + $0x70] sm:$0xff]   ;;  %v1318_v32 = vld [vmem:[%s1388_s5 + $0x78] sm:$0xff]  }
  0x18   : > { %423 = vmatpush1.bf16.msra.mxu0 %v1293_v10  ;;  %1266 = vmatpush1.bf16.msra.mxu1 %v1293_v10 }
  0x19   : > { %424 = vmatprep.subr.bf16.mxu0 %v1294_v11  ;;  %1259 = vmatprep.subr.bf16.mxu1 %v1294_v11 }
  0x1c   : > { %425 = vmatpush1.bf16.msra.mxu0 %v1296_v12  ;;  %1267 = vmatpush1.bf16.msra.mxu1 %v1296_v12 }
  0x1d   : > { %426 = vmatprep.subr.bf16.mxu0 %v1297_v13  ;;  %1260 = vmatprep.subr.bf16.mxu1 %v1297_v13 }
  0x20   : > { %427 = vmatpush1.bf16.msra.mxu0 %v1299_v14  ;;  %1268 = vmatpush1.bf16.msra.mxu1 %v1299_v14 }
  0x21   : > { %428 = vmatprep.subr.bf16.mxu0 %v1300_v15  ;;  %1261 = vmatprep.subr.bf16.mxu1 %v1300_v15 }
  0x24   : > { %429 = vmatpush1.bf16.msra.mxu0 %v1302_v16  ;;  %1269 = vmatpush1.bf16.msra.mxu1 %v1302_v16 }
  0x27   : > { %447 = vmatmul.mubr.bf16.vlgmr.msra.gmra.mrb[0].mxu0 %v1303_v17  ;;  %527 = vmatmul.mubr.bf16.vlgmr.msra.gmra.mrb[0].mxu1 %v1307_v18 }
  0x28   : > { %456 = vmatprep.mubr.bf16.mxu0 %v1327_v2  ;;  %536 = vmatprep.mubr.bf16.mxu1 %v1327_v2 }
  0x2f   : > { %457 = vmatmul.mubr.bf16.gmra.mrb[4].mxu0 %v1304_v19  ;;  %537 = vmatmul.mubr.bf16.gmra.mrb[4].mxu1 %v1309_v20 }
  0x30   : > { %466 = vmatprep.mubr.bf16.mxu0 %v1327_v2  ;;  %546 = vmatprep.mubr.bf16.mxu1 %v1327_v2 }
  0x37   : > { %467 = vmatmul.mubr.bf16.gmra.mrb[8].mxu0 %v1305_v21  ;;  %547 = vmatmul.mubr.bf16.gmra.mrb[8].mxu1 %v1311_v22 }
  0x38   : > { %476 = vmatprep.mubr.bf16.mxu0 %v1327_v2  ;;  %556 = vmatprep.mubr.bf16.mxu1 %v1327_v2 }
  0x3f   : > { %477 = vmatmul.mubr.bf16.gmra.mrb[12].mxu0 %v1306_v23  ;;  %557 = vmatmul.mubr.bf16.gmra.mrb[12].mxu1 %v1313_v24 }
  0x40   : > { %486 = vmatprep.mubr.bf16.mxu0 %v1327_v2  ;;  %566 = vmatprep.mubr.bf16.mxu1 %v1327_v2 }
  0x47   : > { %487 = vmatmul.mubr.bf16.gmra.mrb[16].mxu0 %v1308_v25  ;;  %567 = vmatmul.mubr.bf16.gmra.mrb[16].mxu1 %v1315_v26 }
  0x48   : > { %496 = vmatprep.mubr.bf16.mxu0 %v1327_v2  ;;  %576 = vmatprep.mubr.bf16.mxu1 %v1327_v2 }
  0x4f   : > { %497 = vmatmul.mubr.bf16.gmra.mrb[20].mxu0 %v1310_v27  ;;  %577 = vmatmul.mubr.bf16.gmra.mrb[20].mxu1 %v1316_v28 }
  0x50   : > { %506 = vmatprep.mubr.bf16.mxu0 %v1327_v2  ;;  %586 = vmatprep.mubr.bf16.mxu1 %v1327_v2 }
  0x57   : > { %507 = vmatmul.mubr.bf16.gmra.mrb[24].mxu0 %v1312_v29  ;;  %587 = vmatmul.mubr.bf16.gmra.mrb[24].mxu1 %v1317_v30 }
  0x58   : > { %516 = vmatprep.mubr.bf16.mxu0 %v1327_v2  ;;  %596 = vmatprep.mubr.bf16.mxu1 %v1327_v2 }
  0x5f   : > { %517 = vmatmul.mubr.bf16.gmra.mrb[28].mxu0 %v1314_v31  ;;  %597 = vmatmul.mubr.bf16.gmra.mrb[28].mxu1 %v1318_v32 }
  0xfa   : > { %v448_v33 = vpop.f32.mrb[0].mxu0  ;;  %v1448_v34 = vpop.f32.mrb[0].mxu1 }
  0xfb   : > { %v450_v35 = vpop.f32.mrb[1].mxu0  ;;  %v1455_v36 = vpop.f32.mrb[1].mxu1  ;;  %v905_v41 = vmul.f32 %v448_v33, %v448_v33 }
  0xfc   : > { %v1222_v37 = vpack.c.bf16 %v450_v35, %v448_v33  ;;  %v452_v38 = vpop.f32.mrb[2].mxu0  ;;  %v1238_v39 = vpack.c.bf16 %v1455_v36, %v1448_v34  ;;  %v1459_v40 = vpop.f32.mrb[2].mxu1  ;;  %v906_v42 = vmul.f32 %v450_v35, %v450_v35 }
  0xfd   : > { %v831_v43 = vadd.f32 %v452_v38, %v448_v33  ;;  %v907_v44 = vmul.f32 %v452_v38, %v452_v38  ;;  %v454_v45 = vpop.f32.mrb[3].mxu0  ;;  %v1461_v46 = vpop.f32.mrb[3].mxu1 }
  0xfe   : > { %799 = vst [vmem:[%s1453_s30] sm:$0xff] %v1222_v37  ;;  %v1223_v47 = vpack.c.bf16 %v454_v45, %v452_v38  ;;  %v868_v48 = vadd.f32 %v454_v45, %v450_v35  ;;  %v908_v49 = vmul.f32 %v454_v45, %v454_v45  ;;  %815 = vst [vmem:[%s1453_s30 + $0x80] sm:$0xff] %v1238_v39 }
  0xff   : > { %v1239_v50 = vpack.c.bf16 %v1461_v46, %v1459_v40  ;;  %v969_v51 = vadd.f32 %v907_v44, %v905_v41 }
 0x100   : > { %800 = vst [vmem:[%s1453_s30 + $0x8] sm:$0xff] %v1223_v47  ;;  %v1006_v52 = vadd.f32 %v908_v49, %v906_v42 }
 0x101   : > { %816 = vst [vmem:[%s1453_s30 + $0x88] sm:$0xff] %v1239_v50 }
 0x102   : > { %v458_v53 = vpop.f32.mrb[4].mxu0  ;;  %v1469_v54 = vpop.f32.mrb[4].mxu1 }
 0x103   : > { %v832_v55 = vadd.f32 %v831_v43, %v458_v53  ;;  %v909_v56 = vmul.f32 %v458_v53, %v458_v53  ;;  %v460_v57 = vpop.f32.mrb[5].mxu0  ;;  %v1471_v58 = vpop.f32.mrb[5].mxu1 }
 0x104   : > { %v1224_v59 = vpack.c.bf16 %v460_v57, %v458_v53  ;;  %v869_v60 = vadd.f32 %v868_v48, %v460_v57  ;;  %v910_v61 = vmul.f32 %v460_v57, %v460_v57  ;;  %v462_v62 = vpop.f32.mrb[6].mxu0  ;;  %v1240_v63 = vpack.c.bf16 %v1471_v58, %v1469_v54  ;;  %v1475_v0 = vpop.f32.mrb[6].mxu1 }
 0x105   : > { %v970_v1 = vadd.f32 %v969_v51, %v909_v56  ;;  %v833_v2 = vadd.f32 %v832_v55, %v462_v62  ;;  %v911_v3 = vmul.f32 %v462_v62, %v462_v62  ;;  %v464_v4 = vpop.f32.mrb[7].mxu0  ;;  %v1477_v5 = vpop.f32.mrb[7].mxu1 }
 0x106   : > { %801 = vst [vmem:[%s1453_s30 + $0x10] sm:$0xff] %v1224_v59  ;;  %v1007_v6 = vadd.f32 %v1006_v52, %v910_v61  ;;  %v1225_v7 = vpack.c.bf16 %v464_v4, %v462_v62  ;;  %v870_v8 = vadd.f32 %v869_v60, %v464_v4  ;;  %v912_v9 = vmul.f32 %v464_v4, %v464_v4 }
 0x107   : > { %817 = vst [vmem:[%s1453_s30 + $0x90] sm:$0xff] %v1240_v63  ;;  %v971_v10 = vadd.f32 %v970_v1, %v911_v3  ;;  %v1241_v11 = vpack.c.bf16 %v1477_v5, %v1475_v0 }
 0x108   : > { %802 = vst [vmem:[%s1453_s30 + $0x18] sm:$0xff] %v1225_v7  ;;  %v1008_v12 = vadd.f32 %v1007_v6, %v912_v9 }
 0x109   : > { %818 = vst [vmem:[%s1453_s30 + $0x98] sm:$0xff] %v1241_v11 }
 0x10a   : > { %v468_v13 = vpop.f32.mrb[8].mxu0  ;;  %v1485_v14 = vpop.f32.mrb[8].mxu1 }
 0x10b   : > { %v834_v15 = vadd.f32 %v833_v2, %v468_v13  ;;  %v913_v16 = vmul.f32 %v468_v13, %v468_v13  ;;  %v470_v17 = vpop.f32.mrb[9].mxu0  ;;  %v1487_v18 = vpop.f32.mrb[9].mxu1 }
 0x10c   : > { %v1226_v19 = vpack.c.bf16 %v470_v17, %v468_v13  ;;  %v871_v20 = vadd.f32 %v870_v8, %v470_v17  ;;  %v914_v21 = vmul.f32 %v470_v17, %v470_v17  ;;  %v472_v22 = vpop.f32.mrb[10].mxu0  ;;  %v1242_v23 = vpack.c.bf16 %v1487_v18, %v1485_v14  ;;  %v1491_v24 = vpop.f32.mrb[10].mxu1 }
 0x10d   : > { %v972_v25 = vadd.f32 %v971_v10, %v913_v16  ;;  %v835_v26 = vadd.f32 %v834_v15, %v472_v22  ;;  %v915_v27 = vmul.f32 %v472_v22, %v472_v22  ;;  %v474_v28 = vpop.f32.mrb[11].mxu0  ;;  %v1493_v29 = vpop.f32.mrb[11].mxu1 }
 0x10e   : > { %803 = vst [vmem:[%s1453_s30 + $0x20] sm:$0xff] %v1226_v19  ;;  %v1009_v30 = vadd.f32 %v1008_v12, %v914_v21  ;;  %v1227_v31 = vpack.c.bf16 %v474_v28, %v472_v22  ;;  %v872_v32 = vadd.f32 %v871_v20, %v474_v28  ;;  %v916_v33 = vmul.f32 %v474_v28, %v474_v28 }
 0x10f   : > { %819 = vst [vmem:[%s1453_s30 + $0xa0] sm:$0xff] %v1242_v23  ;;  %v973_v35 = vadd.f32 %v972_v25, %v915_v27  ;;  %v1243_v37 = vpack.c.bf16 %v1493_v29, %v1491_v24 }
 0x110   : > { %804 = vst [vmem:[%s1453_s30 + $0x28] sm:$0xff] %v1227_v31  ;;  %v1010_v38 = vadd.f32 %v1009_v30, %v916_v33 }
 0x111   : > { %820 = vst [vmem:[%s1453_s30 + $0xa8] sm:$0xff] %v1243_v37 }
 0x112   : > { %v478_v39 = vpop.f32.mrb[12].mxu0  ;;  %v1501_v41 = vpop.f32.mrb[12].mxu1 }
 0x113   : > { %v836_v42 = vadd.f32 %v835_v26, %v478_v39  ;;  %v917_v43 = vmul.f32 %v478_v39, %v478_v39  ;;  %v480_v44 = vpop.f32.mrb[13].mxu0  ;;  %v1503_v45 = vpop.f32.mrb[13].mxu1 }
 0x114   : > { %v1228_v47 = vpack.c.bf16 %v480_v44, %v478_v39  ;;  %v873_v48 = vadd.f32 %v872_v32, %v480_v44  ;;  %v918_v49 = vmul.f32 %v480_v44, %v480_v44  ;;  %v482_v50 = vpop.f32.mrb[14].mxu0  ;;  %v1244_v51 = vpack.c.bf16 %v1503_v45, %v1501_v41  ;;  %v1507_v52 = vpop.f32.mrb[14].mxu1 }
 0x115   : > { %v974_v53 = vadd.f32 %v973_v35, %v917_v43  ;;  %v837_v55 = vadd.f32 %v836_v42, %v482_v50  ;;  %v919_v56 = vmul.f32 %v482_v50, %v482_v50  ;;  %v484_v57 = vpop.f32.mrb[15].mxu0  ;;  %v1509_v59 = vpop.f32.mrb[15].mxu1 }
 0x116   : > { %805 = vst [vmem:[%s1453_s30 + $0x30] sm:$0xff] %v1228_v47  ;;  %v1011_v60 = vadd.f32 %v1010_v38, %v918_v49  ;;  %v1229_v61 = vpack.c.bf16 %v484_v57, %v482_v50  ;;  %v874_v62 = vadd.f32 %v873_v48, %v484_v57  ;;  %v920_v63 = vmul.f32 %v484_v57, %v484_v57 }
 0x117   : > { %821 = vst [vmem:[%s1453_s30 + $0xb0] sm:$0xff] %v1244_v51  ;;  %v975_v1 = vadd.f32 %v974_v53, %v919_v56  ;;  %v1245_v2 = vpack.c.bf16 %v1509_v59, %v1507_v52 }
 0x118   : > { %806 = vst [vmem:[%s1453_s30 + $0x38] sm:$0xff] %v1229_v61  ;;  %v1012_v3 = vadd.f32 %v1011_v60, %v920_v63 }
 0x119   : > { %822 = vst [vmem:[%s1453_s30 + $0xb8] sm:$0xff] %v1245_v2 }
 0x11a   : > { %v488_v4 = vpop.f32.mrb[16].mxu0  ;;  %v1517_v6 = vpop.f32.mrb[16].mxu1 }
 0x11b   : > { %v838_v7 = vadd.f32 %v837_v55, %v488_v4  ;;  %v921_v8 = vmul.f32 %v488_v4, %v488_v4  ;;  %v490_v9 = vpop.f32.mrb[17].mxu0  ;;  %v1519_v10 = vpop.f32.mrb[17].mxu1 }
 0x11c   : > { %v1230_v11 = vpack.c.bf16 %v490_v9, %v488_v4  ;;  %v875_v12 = vadd.f32 %v874_v62, %v490_v9  ;;  %v922_v13 = vmul.f32 %v490_v9, %v490_v9  ;;  %v492_v15 = vpop.f32.mrb[18].mxu0  ;;  %v1246_v16 = vpack.c.bf16 %v1519_v10, %v1517_v6  ;;  %v1523_v17 = vpop.f32.mrb[18].mxu1 }
 0x11d   : > { %v976_v19 = vadd.f32 %v975_v1, %v921_v8  ;;  %v839_v20 = vadd.f32 %v838_v7, %v492_v15  ;;  %v923_v21 = vmul.f32 %v492_v15, %v492_v15  ;;  %v494_v22 = vpop.f32.mrb[19].mxu0  ;;  %v1525_v23 = vpop.f32.mrb[19].mxu1 }
 0x11e   : > { %807 = vst [vmem:[%s1453_s30 + $0x40] sm:$0xff] %v1230_v11  ;;  %v1013_v25 = vadd.f32 %v1012_v3, %v922_v13  ;;  %v1231_v26 = vpack.c.bf16 %v494_v22, %v492_v15  ;;  %v876_v27 = vadd.f32 %v875_v12, %v494_v22  ;;  %v924_v28 = vmul.f32 %v494_v22, %v494_v22 }
 0x11f   : > { %823 = vst [vmem:[%s1453_s30 + $0xc0] sm:$0xff] %v1246_v16  ;;  %v977_v30 = vadd.f32 %v976_v19, %v923_v21  ;;  %v1247_v31 = vpack.c.bf16 %v1525_v23, %v1523_v17 }
 0x120   : > { %808 = vst [vmem:[%s1453_s30 + $0x48] sm:$0xff] %v1231_v26  ;;  %v1014_v32 = vadd.f32 %v1013_v25, %v924_v28 }
 0x121   : > { %824 = vst [vmem:[%s1453_s30 + $0xc8] sm:$0xff] %v1247_v31 }
 0x122   : > { %v498_v33 = vpop.f32.mrb[20].mxu0  ;;  %v1533_v35 = vpop.f32.mrb[20].mxu1 }
 0x123   : > { %v840_v37 = vadd.f32 %v839_v20, %v498_v33  ;;  %v925_v38 = vmul.f32 %v498_v33, %v498_v33  ;;  %v500_v39 = vpop.f32.mrb[21].mxu0  ;;  %v1535_v42 = vpop.f32.mrb[21].mxu1 }
 0x124   : > { %v1232_v43 = vpack.c.bf16 %v500_v39, %v498_v33  ;;  %v877_v44 = vadd.f32 %v876_v27, %v500_v39  ;;  %v926_v47 = vmul.f32 %v500_v39, %v500_v39  ;;  %v502_v48 = vpop.f32.mrb[22].mxu0  ;;  %v1248_v49 = vpack.c.bf16 %v1535_v42, %v1533_v35  ;;  %v1539_v50 = vpop.f32.mrb[22].mxu1 }
 0x125   : > { %v978_v51 = vadd.f32 %v977_v30, %v925_v38  ;;  %v841_v53 = vadd.f32 %v840_v37, %v502_v48  ;;  %v927_v55 = vmul.f32 %v502_v48, %v502_v48  ;;  %v504_v56 = vpop.f32.mrb[23].mxu0  ;;  %v1541_v57 = vpop.f32.mrb[23].mxu1 }
 0x126   : > { %809 = vst [vmem:[%s1453_s30 + $0x50] sm:$0xff] %v1232_v43  ;;  %v1015_v60 = vadd.f32 %v1014_v32, %v926_v47  ;;  %v1233_v61 = vpack.c.bf16 %v504_v56, %v502_v48  ;;  %v878_v62 = vadd.f32 %v877_v44, %v504_v56  ;;  %v928_v63 = vmul.f32 %v504_v56, %v504_v56 }
 0x127   : > { %825 = vst [vmem:[%s1453_s30 + $0xd0] sm:$0xff] %v1248_v49  ;;  %v979_v1 = vadd.f32 %v978_v51, %v927_v55  ;;  %v1249_v2 = vpack.c.bf16 %v1541_v57, %v1539_v50 }
 0x128   : > { %810 = vst [vmem:[%s1453_s30 + $0x58] sm:$0xff] %v1233_v61  ;;  %v1016_v3 = vadd.f32 %v1015_v60, %v928_v63 }
 0x129   : > { %826 = vst [vmem:[%s1453_s30 + $0xd8] sm:$0xff] %v1249_v2 }
 0x12a   : > { %v508_v4 = vpop.f32.mrb[24].mxu0  ;;  %v1549_v7 = vpop.f32.mrb[24].mxu1 }
 0x12b   : > { %v842_v8 = vadd.f32 %v841_v53, %v508_v4  ;;  %v929_v9 = vmul.f32 %v508_v4, %v508_v4  ;;  %v510_v11 = vpop.f32.mrb[25].mxu0  ;;  %v1551_v12 = vpop.f32.mrb[25].mxu1 }
 0x12c   : > { %v1234_v13 = vpack.c.bf16 %v510_v11, %v508_v4  ;;  %v879_v15 = vadd.f32 %v878_v62, %v510_v11  ;;  %v930_v16 = vmul.f32 %v510_v11, %v510_v11  ;;  %v512_v19 = vpop.f32.mrb[26].mxu0  ;;  %v1250_v20 = vpack.c.bf16 %v1551_v12, %v1549_v7  ;;  %v1555_v21 = vpop.f32.mrb[26].mxu1 }
 0x12d   : > { %v980_v22 = vadd.f32 %v979_v1, %v929_v9  ;;  %v843_v25 = vadd.f32 %v842_v8, %v512_v19  ;;  %v931_v26 = vmul.f32 %v512_v19, %v512_v19  ;;  %v514_v27 = vpop.f32.mrb[27].mxu0  ;;  %v1557_v28 = vpop.f32.mrb[27].mxu1 }
 0x12e   : > { %811 = vst [vmem:[%s1453_s30 + $0x60] sm:$0xff] %v1234_v13  ;;  %v1017_v30 = vadd.f32 %v1016_v3, %v930_v16  ;;  %v1235_v31 = vpack.c.bf16 %v514_v27, %v512_v19  ;;  %v880_v32 = vadd.f32 %v879_v15, %v514_v27  ;;  %v932_v33 = vmul.f32 %v514_v27, %v514_v27 }
 0x12f   : > { %827 = vst [vmem:[%s1453_s30 + $0xe0] sm:$0xff] %v1250_v20  ;;  %v981_v37 = vadd.f32 %v980_v22, %v931_v26  ;;  %v1251_v38 = vpack.c.bf16 %v1557_v28, %v1555_v21  ;;  %v937_v15 = vmul.f32 %v1448_v34, %v1448_v34  ;;  %v938_v22 = vmul.f32 %v1455_v36, %v1455_v36 }
 0x130   : > { %812 = vst [vmem:[%s1453_s30 + $0x68] sm:$0xff] %v1235_v31  ;;  %v1018_v39 = vadd.f32 %v1017_v30, %v932_v33  ;;  %v939_v27 = vmul.f32 %v1459_v40, %v1459_v40 }
 0x131   : > { %828 = vst [vmem:[%s1453_s30 + $0xe8] sm:$0xff] %v1251_v38 }
 0x132   : > { %v518_v43 = vpop.f32.mrb[28].mxu0  ;;  %v1565_v44 = vpop.f32.mrb[28].mxu1 }
 0x133   : > { %v844_v47 = vadd.f32 %v843_v25, %v518_v43  ;;  %v933_v48 = vmul.f32 %v518_v43, %v518_v43  ;;  %v520_v49 = vpop.f32.mrb[29].mxu0  ;;  %v1567_v51 = vpop.f32.mrb[29].mxu1 }
 0x134   : > { %v1236_v53 = vpack.c.bf16 %v520_v49, %v518_v43  ;;  %v881_v55 = vadd.f32 %v880_v32, %v520_v49  ;;  %v934_v56 = vmul.f32 %v520_v49, %v520_v49  ;;  %v522_v60 = vpop.f32.mrb[30].mxu0  ;;  %v1252_v61 = vpack.c.bf16 %v1567_v51, %v1565_v44  ;;  %v1571_v62 = vpop.f32.mrb[30].mxu1 }
 0x135   : > { %v982_v63 = vadd.f32 %v981_v37, %v933_v48  ;;  %v845_v1 = vadd.f32 %v844_v47, %v522_v60  ;;  %v935_v2 = vmul.f32 %v522_v60, %v522_v60  ;;  %v524_v3 = vpop.f32.mrb[31].mxu0  ;;  %v1573_v4 = vpop.f32.mrb[31].mxu1  ;;  %v941_v37 = vmul.f32 %v1469_v54, %v1469_v54 }
 0x136   : > { %813 = vst [vmem:[%s1453_s30 + $0x70] sm:$0xff] %v1236_v53  ;;  %v1019_v8 = vadd.f32 %v1018_v39, %v934_v56  ;;  %v1237_v9 = vpack.c.bf16 %v524_v3, %v522_v60  ;;  %v882_v11 = vadd.f32 %v881_v55, %v524_v3  ;;  %v936_v13 = vmul.f32 %v524_v3, %v524_v3 }
 0x137   : > { %829 = vst [vmem:[%s1453_s30 + $0xf0] sm:$0xff] %v1252_v61  ;;  %v846_v16 = vadd.f32 %v845_v1, %v1448_v34  ;;  %v983_v19 = vadd.f32 %v982_v63, %v935_v2  ;;  %v1253_v20 = vpack.c.bf16 %v1573_v4, %v1571_v62  ;;  %v940_v34 = vmul.f32 %v1461_v46, %v1461_v46 }
 0x138   : > { %814 = vst [vmem:[%s1453_s30 + $0x78] sm:$0xff] %v1237_v9  ;;  %v883_v25 = vadd.f32 %v882_v11, %v1455_v36  ;;  %v1020_v26 = vadd.f32 %v1019_v8, %v936_v13  ;;  %v942_v39 = vmul.f32 %v1471_v58, %v1471_v58  ;;  %v943_v47 = vmul.f32 %v1475_v0, %v1475_v0 }
 0x139   : > { %v847_v30 = vadd.f32 %v846_v16, %v1459_v40  ;;  %v984_v31 = vadd.f32 %v983_v19, %v937_v15  ;;  %830 = vst [vmem:[%s1453_s30 + $0xf8] sm:$0xff] %v1253_v20 }
 0x13a   : > { %v884_v32 = vadd.f32 %v883_v25, %v1461_v46  ;;  %v1021_v33 = vadd.f32 %v1020_v26, %v938_v22  ;;  %v944_v46 = vmul.f32 %v1477_v5, %v1477_v5  ;;  %v953_v25 = vmul.f32 %v1517_v6, %v1517_v6 }
 0x13b   : > { %v848_v38 = vadd.f32 %v847_v30, %v1469_v54  ;;  %v985_v36 = vadd.f32 %v984_v31, %v939_v27  ;;  %v945_v54 = vmul.f32 %v1485_v14, %v1485_v14  ;;  %v954_v27 = vmul.f32 %v1519_v10, %v1519_v10 }
 0x13c   : > { %v885_v43 = vadd.f32 %v884_v32, %v1471_v58  ;;  %v1022_v40 = vadd.f32 %v1021_v33, %v940_v34  ;;  %v946_v58 = vmul.f32 %v1487_v18, %v1487_v18  ;;  %v955_v34 = vmul.f32 %v1523_v17, %v1523_v17 }
 0x13d   : > { %v849_v48 = vadd.f32 %v848_v38, %v1475_v0  ;;  %v986_v49 = vadd.f32 %v985_v36, %v941_v37  ;;  %v947_v0 = vmul.f32 %v1491_v24, %v1491_v24  ;;  %v956_v33 = vmul.f32 %v1525_v23, %v1525_v23 }
 0x13e   : > { %v886_v53 = vadd.f32 %v885_v43, %v1477_v5  ;;  %v1023_v55 = vadd.f32 %v1022_v40, %v942_v39  ;;  %v948_v5 = vmul.f32 %v1493_v29, %v1493_v29  ;;  %v957_v38 = vmul.f32 %v1533_v35, %v1533_v35 }
 0x13f   : > { %v987_v56 = vadd.f32 %v986_v49, %v943_v47  ;;  %v850_v60 = vadd.f32 %v849_v48, %v1485_v14  ;;  %v949_v14 = vmul.f32 %v1501_v41, %v1501_v41  ;;  %v958_v39 = vmul.f32 %v1535_v42, %v1535_v42 }
 0x140   : > { %v1024_v61 = vadd.f32 %v1023_v55, %v944_v46  ;;  %v887_v63 = vadd.f32 %v886_v53, %v1487_v18  ;;  %v950_v18 = vmul.f32 %v1503_v45, %v1503_v45  ;;  %v959_v40 = vmul.f32 %v1539_v50, %v1539_v50 }
 0x141   : > { %v851_v1 = vadd.f32 %v850_v60, %v1491_v24  ;;  %v988_v2 = vadd.f32 %v987_v56, %v945_v54  ;;  %v951_v24 = vmul.f32 %v1507_v52, %v1507_v52  ;;  %v960_v48 = vmul.f32 %v1541_v57, %v1541_v57 }
 0x142   : > { %v888_v3 = vadd.f32 %v887_v63, %v1493_v29  ;;  %v1025_v8 = vadd.f32 %v1024_v61, %v946_v58  ;;  %v952_v29 = vmul.f32 %v1509_v59, %v1509_v59  ;;  %v961_v46 = vmul.f32 %v1549_v7, %v1549_v7 }
 0x143   : > { %v852_v9 = vadd.f32 %v851_v1, %v1501_v41  ;;  %v989_v11 = vadd.f32 %v988_v2, %v947_v0  ;;  %v962_v55 = vmul.f32 %v1551_v12, %v1551_v12  ;;  %v963_v56 = vmul.f32 %v1555_v21, %v1555_v21 }
 0x144   : > { %v889_v13 = vadd.f32 %v888_v3, %v1503_v45  ;;  %v1026_v15 = vadd.f32 %v1025_v8, %v948_v5  ;;  %v966_v61 = vmul.f32 %v1567_v51, %v1567_v51  ;;  %v967_v5 = vmul.f32 %v1571_v62, %v1571_v62 }
 0x145   : > { %v853_v16 = vadd.f32 %v852_v9, %v1507_v52  ;;  %v990_v19 = vadd.f32 %v989_v11, %v949_v14 }
 0x146   : > { %v890_v20 = vadd.f32 %v889_v13, %v1509_v59  ;;  %v1027_v22 = vadd.f32 %v1026_v15, %v950_v18 }
 0x147   : > { %v854_v41 = vadd.f32 %v853_v16, %v1517_v6  ;;  %v991_v26 = vadd.f32 %v990_v19, %v951_v24 }
 0x148   : > { %v891_v45 = vadd.f32 %v890_v20, %v1519_v10  ;;  %v1028_v30 = vadd.f32 %v1027_v22, %v952_v29 }
 0x149   : > { %v992_v52 = vadd.f32 %v991_v26, %v953_v25  ;;  %v855_v31 = vadd.f32 %v854_v41, %v1523_v17 }
 0x14a   : > { %v1029_v59 = vadd.f32 %v1028_v30, %v954_v27  ;;  %v892_v32 = vadd.f32 %v891_v45, %v1525_v23 }
 0x14b   : > { %v993_v6 = vadd.f32 %v992_v52, %v955_v34  ;;  %v856_v37 = vadd.f32 %v855_v31, %v1533_v35 }
 0x14c   : > { %v1030_v10 = vadd.f32 %v1029_v59, %v956_v33  ;;  %v893_v36 = vadd.f32 %v892_v32, %v1535_v42 }
 0x14d   : > { %v994_v43 = vadd.f32 %v993_v6, %v957_v38  ;;  %v857_v17 = vadd.f32 %v856_v37, %v1539_v50 }
 0x14e   : > { %v1031_v47 = vadd.f32 %v1030_v10, %v958_v39  ;;  %v894_v23 = vadd.f32 %v893_v36, %v1541_v57  ;;  %v965_v57 = vmul.f32 %v1565_v44, %v1565_v44 }
 0x14f   : > { %v995_v49 = vadd.f32 %v994_v43, %v959_v40  ;;  %v858_v35 = vadd.f32 %v857_v17, %v1549_v7  ;;  %v964_v7 = vmul.f32 %v1557_v28, %v1557_v28 }
 0x150   : > { %v1032_v53 = vadd.f32 %v1031_v47, %v960_v48  ;;  %v895_v42 = vadd.f32 %v894_v23, %v1551_v12 }
 0x151   : > { %v996_v54 = vadd.f32 %v995_v49, %v961_v46  ;;  %v859_v50 = vadd.f32 %v858_v35, %v1555_v21 }
 0x152   : > { %v1033_v60 = vadd.f32 %v1032_v53, %v962_v55  ;;  %v896_v58 = vadd.f32 %v895_v42, %v1557_v28  ;;  %v968_v28 = vmul.f32 %v1573_v4, %v1573_v4 }
 0x153   : > { %v997_v63 = vadd.f32 %v996_v54, %v963_v56  ;;  %v860_v12 = vadd.f32 %v859_v50, %v1565_v44 }
 0x154   : > { %v1034_v0 = vadd.f32 %v1033_v60, %v964_v7  ;;  %v897_v1 = vadd.f32 %v896_v58, %v1567_v51 }
 0x155   : > { %v998_v21 = vadd.f32 %v997_v63, %v965_v57  ;;  %v861_v2 = vadd.f32 %v860_v12, %v1571_v62 }
 0x156   : > { %v1035_v3 = vadd.f32 %v1034_v0, %v966_v61  ;;  %v898_v8 = vadd.f32 %v897_v1, %v1573_v4 }
 0x157   : > { %v862_v14 = vrot.slane %v861_v2, 4  ;;  %v999_v9 = vadd.f32 %v998_v21, %v967_v5 }
 0x158   : > { %v899_v11 = vrot.slane %v898_v8, 4  ;;  %v1036_v44 = vadd.f32 %v1035_v3, %v968_v28 }
 0x159   : > { %v863_v18 = vadd.f32 %v862_v14, %v861_v2  ;;  %v1000_v13 = vrot.slane %v999_v9, 4 }
 0x15a   : > { %v900_v51 = vadd.f32 %v899_v11, %v898_v8  ;;  %v1037_v15 = vrot.slane %v1036_v44, 4 }
 0x15b   : > { %v864_v24 = vrot.slane %v863_v18, 2  ;;  %v1001_v16 = vadd.f32 %v1000_v13, %v999_v9 }
 0x15c   : > { %v901_v19 = vrot.slane %v900_v51, 2  ;;  %v1038_v62 = vadd.f32 %v1037_v15, %v1036_v44 }
 0x15d   : > { %v865_v29 = vadd.f32 %v864_v24, %v863_v18  ;;  %v1002_v20 = vrot.slane %v1001_v16, 2 }
 0x15e   : > { %v902_v22 = vadd.f32 %v901_v19, %v900_v51  ;;  %v1039_v41 = vrot.slane %v1038_v62, 2 }
 0x15f   : > { %v866_v4 = vrot.slane %v865_v29, 1  ;;  %v1003_v25 = vadd.f32 %v1002_v20, %v1001_v16 }
 0x160   : > { %v903_v26 = vrot.slane %v902_v22, 1  ;;  %v1040_v45 = vadd.f32 %v1039_v41, %v1038_v62 }
 0x161   : > { %v1004_v27 = vrot.slane %v1003_v25, 1  ;;  %v867_v52 = vadd.f32 %v866_v4, %v865_v29 }
 0x162   : > { %v1041_v30 = vrot.slane %v1040_v45, 1  ;;  %v904_v34 = vadd.f32 %v903_v26, %v902_v22 }
 0x163   : > { %v1005_v31 = vadd.f32 %v1004_v27, %v1003_v25 }
 0x164   : > { %v1042_v59 = vadd.f32 %v1041_v30, %v1040_v45 }
 0x165   : > { %v1044_v32 = vsel %vm1043_vm0, %v867_v52, %v1005_v31 }
 0x166   : > { %v1045_v33 = vsel %vm1043_vm0, %v904_v34, %v1042_v59  ;;  %v1047_v6 = vsel %vm1046_vm1, %v1044_v32, 0.0 }
 0x167   : > { %v1048_v37 = vsel %vm1046_vm1, %v1045_v33, 0.0  ;;  %1049 = vst [vmem:[%s188_s6] sm:$0xff] %v1047_v6 }
 0x168   : > { %1050 = vst [vmem:[%s188_s6 + $0x8] sm:$0xff] %v1048_v37 }
 0x169 PF: > { %s14_s12 = sadd.s32 1, %s1325_s12  }
 0x16a   : > { %p11_p5 = scmp.ge.s32.totalorder %s14_s12, 4  }
 0x16c   :  { %13 = sbr.rel (!%p11_p5) target bundleno = 1 (0x1), region = 70 }

// kernel: unet_encoder_forward.15
= control target key start
LH: loop header
LB: loop body
LE: loop exit
PB: predicated region body
PF: predicated region fallthrough
CT: control target
= control target key end

     0   :  { %s1060_s12 = smov 0   ;;  %s1062_s13 = smov 0   ;;  %s1293_s0 = inlined_call_operand.vmem [shape: bf16[512,256], index: 0, kind: input, shape index: {}]   ;;  %s1294_s1 = inlined_call_operand.vmem [shape: f32[1,128], index: 1, kind: input, shape index: {}]   ;;  %s1295_s2 = inlined_call_operand.vmem [shape: f32[1,128], index: 2, kind: input, shape index: {}]   ;;  %s1296_s3 = inlined_call_operand.vmem [shape: bf16[512,128], index: 3, kind: output, shape index: {}]  }
   0x1   :  { %s1064_s14 = smov 0  }
   0x2 LB: > { %s736_s15 = sadd.s32 4294967295, %s1038_s14   ;;  %s1077_s16 = sadd.s32 1, %s1038_s14   ;;  %s1038_s14 = sphi %s1064_s14, %s1299_s14   ;;  %s1034_s13 = sphi %s1062_s13, %s1298_s13   ;;  %s1030_s12 = sphi %s1060_s12, %s1297_s12  }
   0x3   : > { %s17_s17 = ssub.s32 %s1038_s14, %s1077_s16  ;;  %s20_s18 = sadd.s32 1, %s1034_s13 }
   0x4   : > { %p18_p0 = scmp.eq.s32.totalorder %s17_s17, 0  ;;  %p27_p1 = scmp.ne.s32.totalorder %s1034_s13, %s1030_s12 }
   0x5   : > { %p28_p2 = scmp.eq.s32.totalorder %s1038_s14, 0  ;;  %p739_p4 = scmp.ge.s32.totalorder %s1038_s14, 2 }
   0x6   : > { %s1086_s19 = scalar_select %p18_p0, %s1034_s13, %s20_s18  }
   0x7   : > { %p29_p3 = por %p28_p2, %p27_p1  ;;  %127 = sbr.rel (%p739_p4) target bundleno = 39 (0x27), region = 24 }
   0xe   : > { %130 = sbr.rel (!%p29_p3) target bundleno = 39 (0x27), region = 28  ;;  %s132_s20 = sand.u32 (%p29_p3), 1, %s1034_s13  }
   0xf   : > { %s785_s21 = sshll.u32 (%p29_p3), %s1038_s14, 8  ;;  %s740_s22 = sshll.u32 (%p29_p3), %s132_s20, 7 }
  0x10   : > { %s1094_s25 = scalar_lea.vmem (%p29_p3), %s1293_s0, %s785_s21  ;;  %s1098_s26 = scalar_lea.vmem (%p29_p3), [#allocation2], %s740_s22 }
  0x11   : > { %v154_v0 = vld [vmem:[%s1094_s25] sm:$0xf] (%p29_p3)  ;;  %v156_v1 = vld [vmem:[%s1094_s25 + $0x8] sm:$0xf] (%p29_p3)  ;;  %v158_v2 = vld [vmem:[%s1094_s25 + $0x10] sm:$0xf] (%p29_p3) }
  0x12   : > { %155 = vst [vmem:[%s1098_s26] sm:$0xf] (%p29_p3), %v154_v0  ;;  %157 = vst [vmem:[%s1098_s26 + $0x4] sm:$0xf] (%p29_p3), %v156_v1  ;;  %v160_v3 = vld [vmem:[%s1094_s25 + $0x18] sm:$0xf] (%p29_p3) }
  0x13   : > { %v162_v4 = vld [vmem:[%s1094_s25 + $0x20] sm:$0xf] (%p29_p3)  ;;  %159 = vst [vmem:[%s1098_s26 + $0x8] sm:$0xf] (%p29_p3), %v158_v2  ;;  %161 = vst [vmem:[%s1098_s26 + $0xc] sm:$0xf] (%p29_p3), %v160_v3 }
  0x14   : > { %163 = vst [vmem:[%s1098_s26 + $0x10] sm:$0xf] (%p29_p3), %v162_v4  ;;  %v164_v5 = vld [vmem:[%s1094_s25 + $0x28] sm:$0xf] (%p29_p3)  ;;  %v166_v6 = vld [vmem:[%s1094_s25 + $0x30] sm:$0xf] (%p29_p3) }
  0x15   : > { %v168_v7 = vld [vmem:[%s1094_s25 + $0x38] sm:$0xf]  ;;  %165 = vst [vmem:[%s1098_s26 + $0x14] sm:$0xf] %v164_v5  ;;  %167 = vst [vmem:[%s1098_s26 + $0x18] sm:$0xf] %v166_v6 }
  0x16   : > { %169 = vst [vmem:[%s1098_s26 + $0x1c] sm:$0xf] %v168_v7  ;;  %v170_v8 = vld [vmem:[%s1094_s25 + $0x40] sm:$0xf]  ;;  %v172_v9 = vld [vmem:[%s1094_s25 + $0x48] sm:$0xf] }
  0x17   : > { %v174_v10 = vld [vmem:[%s1094_s25 + $0x50] sm:$0xf]  ;;  %171 = vst [vmem:[%s1098_s26 + $0x20] sm:$0xf] %v170_v8  ;;  %173 = vst [vmem:[%s1098_s26 + $0x24] sm:$0xf] %v172_v9 }
  0x18   : > { %175 = vst [vmem:[%s1098_s26 + $0x28] sm:$0xf] %v174_v10  ;;  %v176_v11 = vld [vmem:[%s1094_s25 + $0x58] sm:$0xf]  ;;  %v178_v12 = vld [vmem:[%s1094_s25 + $0x60] sm:$0xf] }
  0x19   : > { %v180_v13 = vld [vmem:[%s1094_s25 + $0x68] sm:$0xf]  ;;  %177 = vst [vmem:[%s1098_s26 + $0x2c] sm:$0xf] %v176_v11  ;;  %179 = vst [vmem:[%s1098_s26 + $0x30] sm:$0xf] %v178_v12 }
  0x1a   : > { %181 = vst [vmem:[%s1098_s26 + $0x34] sm:$0xf] %v180_v13  ;;  %v182_v14 = vld [vmem:[%s1094_s25 + $0x70] sm:$0xf]  ;;  %v184_v15 = vld [vmem:[%s1094_s25 + $0x78] sm:$0xf] }
  0x1b   : > { %v186_v16 = vld [vmem:[%s1094_s25 + $0x80] sm:$0xf]  ;;  %183 = vst [vmem:[%s1098_s26 + $0x38] sm:$0xf] %v182_v14  ;;  %185 = vst [vmem:[%s1098_s26 + $0x3c] sm:$0xf] %v184_v15 }
  0x1c   : > { %187 = vst [vmem:[%s1098_s26 + $0x40] sm:$0xf] %v186_v16  ;;  %v188_v17 = vld [vmem:[%s1094_s25 + $0x88] sm:$0xf]  ;;  %v190_v18 = vld [vmem:[%s1094_s25 + $0x90] sm:$0xf] }
  0x1d   : > { %v192_v19 = vld [vmem:[%s1094_s25 + $0x98] sm:$0xf]  ;;  %189 = vst [vmem:[%s1098_s26 + $0x44] sm:$0xf] %v188_v17  ;;  %191 = vst [vmem:[%s1098_s26 + $0x48] sm:$0xf] %v190_v18 }
  0x1e   : > { %193 = vst [vmem:[%s1098_s26 + $0x4c] sm:$0xf] %v192_v19  ;;  %v194_v20 = vld [vmem:[%s1094_s25 + $0xa0] sm:$0xf]  ;;  %v196_v21 = vld [vmem:[%s1094_s25 + $0xa8] sm:$0xf] }
  0x1f   : > { %v198_v22 = vld [vmem:[%s1094_s25 + $0xb0] sm:$0xf]  ;;  %195 = vst [vmem:[%s1098_s26 + $0x50] sm:$0xf] %v194_v20  ;;  %197 = vst [vmem:[%s1098_s26 + $0x54] sm:$0xf] %v196_v21 }
  0x20   : > { %199 = vst [vmem:[%s1098_s26 + $0x58] sm:$0xf] %v198_v22  ;;  %v200_v23 = vld [vmem:[%s1094_s25 + $0xb8] sm:$0xf]  ;;  %v202_v24 = vld [vmem:[%s1094_s25 + $0xc0] sm:$0xf] }
  0x21   : > { %v204_v25 = vld [vmem:[%s1094_s25 + $0xc8] sm:$0xf]  ;;  %201 = vst [vmem:[%s1098_s26 + $0x5c] sm:$0xf] %v200_v23  ;;  %203 = vst [vmem:[%s1098_s26 + $0x60] sm:$0xf] %v202_v24 }
  0x22   : > { %205 = vst [vmem:[%s1098_s26 + $0x64] sm:$0xf] %v204_v25  ;;  %v206_v26 = vld [vmem:[%s1094_s25 + $0xd0] sm:$0xf]  ;;  %v208_v27 = vld [vmem:[%s1094_s25 + $0xd8] sm:$0xf] }
  0x23   : > { %v210_v28 = vld [vmem:[%s1094_s25 + $0xe0] sm:$0xf]  ;;  %207 = vst [vmem:[%s1098_s26 + $0x68] sm:$0xf] %v206_v26  ;;  %209 = vst [vmem:[%s1098_s26 + $0x6c] sm:$0xf] %v208_v27 }
  0x24   : > { %211 = vst [vmem:[%s1098_s26 + $0x70] sm:$0xf] %v210_v28  ;;  %v212_v29 = vld [vmem:[%s1094_s25 + $0xe8] sm:$0xf]  ;;  %v214_v30 = vld [vmem:[%s1094_s25 + $0xf0] sm:$0xf] }
  0x25   : > { %v216_v31 = vld [vmem:[%s1094_s25 + $0xf8] sm:$0xf]  ;;  %213 = vst [vmem:[%s1098_s26 + $0x74] sm:$0xf] %v212_v29  ;;  %215 = vst [vmem:[%s1098_s26 + $0x78] sm:$0xf] %v214_v30 }
  0x26   : > { %217 = vst [vmem:[%s1098_s26 + $0x7c] sm:$0xf] %v216_v31 }
  0x27 PF: > { %p744_p5 = scmp.ge.s32.totalorder %s1038_s14, 1  ;;  %p303_p6 = scmp.lt.s32.totalorder %s1038_s14, 3 }
  0x29   : > { %p304_p7 = pnand %p744_p5, %p303_p6 }
  0x2a   : > { %s310_s27 = sand.u32 (!%p304_p7), 1, %s1030_s12   ;;  %s746_s28 = sshll.u32 (!%p304_p7), %s736_s15, 5  ;;  %v1170_v32 = vld [vmem:[%s1294_s1] ss:$0 sm:$0xff] (!%p304_p7) }
  0x2b   : > { %307 = sbr.rel (%p304_p7) target bundleno = 88 (0x58), region = 69  ;;  %s745_s29 = sshll.u32 (!%p304_p7), %s310_s27, 7  ;;  %v1183_v41 = vld [vmem:[%s1295_s2] ss:$0 sm:$0xff] (!%p304_p7) }
  0x2c   : > { %p335_p8 = scmp.lt.s32.totalorder (!%p304_p7), %s746_s28, 63  ;;  %s1172_s5 = scalar_lea.vmem (!%p304_p7), [#allocation2], %s745_s29 }
  0x2d   : > { %v819_v33 = vld [vmem:[%s1172_s5] sm:$0xff] (!%p304_p7)   ;;  %v962_v34 = vld [vmem:[%s1172_s5 + $0x8] sm:$0xff] (!%p304_p7)   ;;  %v963_v35 = vld [vmem:[%s1172_s5 + $0x10] sm:$0xff] (!%p304_p7)  }
  0x2e   : > { %v820_v36 = vunpack.c.l.bf16 (!%p304_p7), %v819_v33  ;;  %v821_v37 = vunpack.c.h.bf16 (!%p304_p7), %v819_v33  ;;  %v824_v38 = vunpack.c.l.bf16 (!%p304_p7), %v962_v34  ;;  %v825_v39 = vunpack.c.h.bf16 (!%p304_p7), %v962_v34  ;;  %v964_v40 = vld [vmem:[%s1172_s5 + $0x18] sm:$0xff] (!%p304_p7)   ;;  %v965_v62 = vld [vmem:[%s1172_s5 + $0x20] sm:$0xff] (!%p304_p7)   ;;  %v966_v3 = vld [vmem:[%s1172_s5 + $0x28] sm:$0xff] (!%p304_p7)  }
  0x2f   : > { %v828_v42 = vunpack.c.l.bf16 (!%p304_p7), %v963_v35  ;;  %v829_v43 = vunpack.c.h.bf16 (!%p304_p7), %v963_v35  ;;  %v832_v44 = vunpack.c.l.bf16 (!%p304_p7), %v964_v40  ;;  %v833_v45 = vunpack.c.h.bf16 (!%p304_p7), %v964_v40  ;;  %v967_v8 = vld [vmem:[%s1172_s5 + $0x30] sm:$0xff] (!%p304_p7)   ;;  %v968_v13 = vld [vmem:[%s1172_s5 + $0x38] sm:$0xff] (!%p304_p7)   ;;  %v969_v35 = vld [vmem:[%s1172_s5 + $0x40] sm:$0xff] (!%p304_p7)  }
  0x30   : > { %v411_v46 = vmul.f32 (!%p304_p7), %v820_v36, %v1170_v32  ;;  %v412_v47 = vmul.f32 (!%p304_p7), %v821_v37, %v1170_v32  ;;  %v413_v48 = vmul.f32 (!%p304_p7), %v824_v38, %v1170_v32  ;;  %v414_v49 = vmul.f32 (!%p304_p7), %v825_v39, %v1170_v32 }
  0x31   : > { %v415_v50 = vmul.f32 (!%p304_p7), %v828_v42, %v1170_v32  ;;  %v416_v51 = vmul.f32 (!%p304_p7), %v829_v43, %v1170_v32  ;;  %v417_v52 = vmul.f32 (!%p304_p7), %v832_v44, %v1170_v32  ;;  %v418_v53 = vmul.f32 (!%p304_p7), %v833_v45, %v1170_v32  ;;  %v970_v45 = vld [vmem:[%s1172_s5 + $0x48] sm:$0xff] (!%p304_p7)  }
  0x32   : > { %s1301_s28 = smov (!%p335_p8, %s746_s28), 63  ;;  %v450_v54 = vadd.f32 %v1183_v41, %v411_v46  ;;  %v451_v55 = vadd.f32 %v1183_v41, %v412_v47  ;;  %v452_v56 = vadd.f32 %v1183_v41, %v413_v48  ;;  %v453_v57 = vadd.f32 %v1183_v41, %v414_v49 }
  0x33   : > { %s747_s8 = sshll.u32 %s1301_s28, 2  ;;  %v454_v58 = vadd.f32 %v1183_v41, %v415_v50  ;;  %v455_v59 = vadd.f32 %v1183_v41, %v416_v51  ;;  %v456_v60 = vadd.f32 %v1183_v41, %v417_v52  ;;  %v457_v61 = vadd.f32 %v1183_v41, %v418_v53  ;;  %v971_v50 = vld [vmem:[%s1172_s5 + $0x50] sm:$0xff]  }
  0x34   : > { %v482_v63 = vmax.f32 %v450_v54, 0.0  ;;  %v483_v0 = vmax.f32 %v451_v55, 0.0  ;;  %v484_v1 = vmax.f32 %v452_v56, 0.0  ;;  %v485_v2 = vmax.f32 %v453_v57, 0.0  ;;  %s1207_s11 = scalar_lea.vmem %s1296_s3, %s747_s8  ;;  %v972_v55 = vld [vmem:[%s1172_s5 + $0x58] sm:$0xff]  }
  0x35   : > { %v486_v4 = vmax.f32 %v454_v58, 0.0  ;;  %v487_v5 = vmax.f32 %v455_v59, 0.0  ;;  %v488_v6 = vmax.f32 %v456_v60, 0.0  ;;  %v489_v7 = vmax.f32 %v457_v61, 0.0 }
  0x36   : > { %v885_v9 = vpack.c.bf16 %v483_v0, %v482_v63  ;;  %v890_v10 = vpack.c.bf16 %v485_v2, %v484_v1  ;;  %v836_v11 = vunpack.c.l.bf16 %v965_v62  ;;  %v837_v12 = vunpack.c.h.bf16 %v965_v62 }
  0x37   : > { %v895_v14 = vpack.c.bf16 %v487_v5, %v486_v4  ;;  %v900_v15 = vpack.c.bf16 %v489_v7, %v488_v6  ;;  %v840_v16 = vunpack.c.l.bf16 %v966_v3  ;;  %v841_v17 = vunpack.c.h.bf16 %v966_v3 }
  0x38   : > { %886 = vst [vmem:[%s1207_s11] sm:$0xff] %v885_v9   ;;  %977 = vst [vmem:[%s1207_s11 + $0x8] sm:$0xff] %v890_v10   ;;  %v419_v18 = vmul.f32 %v836_v11, %v1170_v32  ;;  %v420_v19 = vmul.f32 %v837_v12, %v1170_v32  ;;  %v844_v20 = vunpack.c.l.bf16 %v967_v8  ;;  %v845_v21 = vunpack.c.h.bf16 %v967_v8  ;;  %v973_v8 = vld [vmem:[%s1172_s5 + $0x60] sm:$0xff]  }
  0x39   : > { %978 = vst [vmem:[%s1207_s11 + $0x10] sm:$0xff] %v895_v14   ;;  %979 = vst [vmem:[%s1207_s11 + $0x18] sm:$0xff] %v900_v15   ;;  %v421_v22 = vmul.f32 %v840_v16, %v1170_v32  ;;  %v422_v23 = vmul.f32 %v841_v17, %v1170_v32  ;;  %v848_v24 = vunpack.c.l.bf16 %v968_v13  ;;  %v849_v25 = vunpack.c.h.bf16 %v968_v13 }
  0x3a   : > { %v458_v26 = vadd.f32 %v1183_v41, %v419_v18  ;;  %v459_v27 = vadd.f32 %v1183_v41, %v420_v19  ;;  %v423_v28 = vmul.f32 %v844_v20, %v1170_v32  ;;  %v424_v29 = vmul.f32 %v845_v21, %v1170_v32  ;;  %v974_v21 = vld [vmem:[%s1172_s5 + $0x68] sm:$0xff]  }
  0x3b   : > { %v460_v30 = vadd.f32 %v1183_v41, %v421_v22  ;;  %v461_v31 = vadd.f32 %v1183_v41, %v422_v23  ;;  %v425_v33 = vmul.f32 %v848_v24, %v1170_v32  ;;  %v426_v34 = vmul.f32 %v849_v25, %v1170_v32 }
  0x3c   : > { %v490_v36 = vmax.f32 %v458_v26, 0.0  ;;  %v491_v37 = vmax.f32 %v459_v27, 0.0  ;;  %v462_v38 = vadd.f32 %v1183_v41, %v423_v28  ;;  %v463_v39 = vadd.f32 %v1183_v41, %v424_v29  ;;  %v975_v26 = vld [vmem:[%s1172_s5 + $0x70] sm:$0xff]  }
  0x3d   : > { %v492_v40 = vmax.f32 %v460_v30, 0.0  ;;  %v493_v42 = vmax.f32 %v461_v31, 0.0  ;;  %v464_v43 = vadd.f32 %v1183_v41, %v425_v33  ;;  %v465_v44 = vadd.f32 %v1183_v41, %v426_v34  ;;  %v976_v31 = vld [vmem:[%s1172_s5 + $0x78] sm:$0xff]  }
  0x3e   : > { %v905_v46 = vpack.c.bf16 %v491_v37, %v490_v36  ;;  %v494_v47 = vmax.f32 %v462_v38, 0.0  ;;  %v495_v48 = vmax.f32 %v463_v39, 0.0  ;;  %v852_v49 = vunpack.c.l.bf16 %v969_v35 }
  0x3f   : > { %v910_v51 = vpack.c.bf16 %v493_v42, %v492_v40  ;;  %v496_v52 = vmax.f32 %v464_v43, 0.0  ;;  %v497_v53 = vmax.f32 %v465_v44, 0.0  ;;  %v853_v54 = vunpack.c.h.bf16 %v969_v35 }
  0x40   : > { %980 = vst [vmem:[%s1207_s11 + $0x20] sm:$0xff] %v905_v46   ;;  %v915_v56 = vpack.c.bf16 %v495_v48, %v494_v47  ;;  %v427_v57 = vmul.f32 %v852_v49, %v1170_v32  ;;  %v856_v58 = vunpack.c.l.bf16 %v970_v45  ;;  %v857_v59 = vunpack.c.h.bf16 %v970_v45 }
  0x41   : > { %981 = vst [vmem:[%s1207_s11 + $0x28] sm:$0xff] %v910_v51   ;;  %v920_v60 = vpack.c.bf16 %v497_v53, %v496_v52  ;;  %v428_v61 = vmul.f32 %v853_v54, %v1170_v32  ;;  %v860_v62 = vunpack.c.l.bf16 %v971_v50  ;;  %v861_v63 = vunpack.c.h.bf16 %v971_v50 }
  0x42   : > { %982 = vst [vmem:[%s1207_s11 + $0x30] sm:$0xff] %v915_v56   ;;  %v466_v0 = vadd.f32 %v1183_v41, %v427_v57  ;;  %v429_v1 = vmul.f32 %v856_v58, %v1170_v32  ;;  %v430_v2 = vmul.f32 %v857_v59, %v1170_v32  ;;  %v864_v3 = vunpack.c.l.bf16 %v972_v55 }
  0x43   : > { %983 = vst [vmem:[%s1207_s11 + $0x38] sm:$0xff] %v920_v60   ;;  %v467_v4 = vadd.f32 %v1183_v41, %v428_v61  ;;  %v431_v5 = vmul.f32 %v860_v62, %v1170_v32  ;;  %v432_v6 = vmul.f32 %v861_v63, %v1170_v32  ;;  %v865_v7 = vunpack.c.h.bf16 %v972_v55 }
  0x44   : > { %v498_v9 = vmax.f32 %v466_v0, 0.0  ;;  %v468_v10 = vadd.f32 %v1183_v41, %v429_v1  ;;  %v469_v11 = vadd.f32 %v1183_v41, %v430_v2  ;;  %v433_v12 = vmul.f32 %v864_v3, %v1170_v32 }
  0x45   : > { %v499_v13 = vmax.f32 %v467_v4, 0.0  ;;  %v470_v14 = vadd.f32 %v1183_v41, %v431_v5  ;;  %v471_v15 = vadd.f32 %v1183_v41, %v432_v6  ;;  %v434_v16 = vmul.f32 %v865_v7, %v1170_v32 }
  0x46   : > { %v500_v17 = vmax.f32 %v468_v10, 0.0  ;;  %v501_v18 = vmax.f32 %v469_v11, 0.0  ;;  %v472_v19 = vadd.f32 %v1183_v41, %v433_v12  ;;  %v868_v20 = vunpack.c.l.bf16 %v973_v8 }
  0x47   : > { %v925_v22 = vpack.c.bf16 %v499_v13, %v498_v9  ;;  %v502_v23 = vmax.f32 %v470_v14, 0.0  ;;  %v503_v24 = vmax.f32 %v471_v15, 0.0  ;;  %v473_v25 = vadd.f32 %v1183_v41, %v434_v16 }
  0x48   : > { %v930_v27 = vpack.c.bf16 %v501_v18, %v500_v17  ;;  %v504_v28 = vmax.f32 %v472_v19, 0.0  ;;  %v869_v29 = vunpack.c.h.bf16 %v973_v8  ;;  %v435_v30 = vmul.f32 %v868_v20, %v1170_v32 }
  0x49   : > { %984 = vst [vmem:[%s1207_s11 + $0x40] sm:$0xff] %v925_v22   ;;  %v935_v33 = vpack.c.bf16 %v503_v24, %v502_v23  ;;  %v505_v34 = vmax.f32 %v473_v25, 0.0  ;;  %v872_v35 = vunpack.c.l.bf16 %v974_v21  ;;  %v873_v36 = vunpack.c.h.bf16 %v974_v21 }
  0x4a   : > { %985 = vst [vmem:[%s1207_s11 + $0x48] sm:$0xff] %v930_v27   ;;  %v436_v37 = vmul.f32 %v869_v29, %v1170_v32  ;;  %v474_v38 = vadd.f32 %v1183_v41, %v435_v30  ;;  %v876_v39 = vunpack.c.l.bf16 %v975_v26  ;;  %v877_v40 = vunpack.c.h.bf16 %v975_v26 }
  0x4b   : > { %986 = vst [vmem:[%s1207_s11 + $0x50] sm:$0xff] %v935_v33   ;;  %v940_v42 = vpack.c.bf16 %v505_v34, %v504_v28  ;;  %v437_v43 = vmul.f32 %v872_v35, %v1170_v32  ;;  %v438_v44 = vmul.f32 %v873_v36, %v1170_v32  ;;  %v880_v45 = vunpack.c.l.bf16 %v976_v31 }
  0x4c   : > { %v475_v46 = vadd.f32 %v1183_v41, %v436_v37  ;;  %v506_v47 = vmax.f32 %v474_v38, 0.0  ;;  %v439_v48 = vmul.f32 %v876_v39, %v1170_v32  ;;  %v440_v49 = vmul.f32 %v877_v40, %v1170_v32 }
  0x4d   : > { %987 = vst [vmem:[%s1207_s11 + $0x58] sm:$0xff] %v940_v42   ;;  %v476_v50 = vadd.f32 %v1183_v41, %v437_v43  ;;  %v477_v51 = vadd.f32 %v1183_v41, %v438_v44  ;;  %v881_v52 = vunpack.c.h.bf16 %v976_v31  ;;  %v441_v53 = vmul.f32 %v880_v45, %v1170_v32 }
  0x4e   : > { %v507_v54 = vmax.f32 %v475_v46, 0.0  ;;  %v478_v55 = vadd.f32 %v1183_v41, %v439_v48  ;;  %v479_v56 = vadd.f32 %v1183_v41, %v440_v49 }
  0x4f   : > { %v508_v57 = vmax.f32 %v476_v50, 0.0  ;;  %v509_v58 = vmax.f32 %v477_v51, 0.0  ;;  %v442_v59 = vmul.f32 %v881_v52, %v1170_v32  ;;  %v480_v60 = vadd.f32 %v1183_v41, %v441_v53 }
  0x50   : > { %v945_v61 = vpack.c.bf16 %v507_v54, %v506_v47  ;;  %v510_v62 = vmax.f32 %v478_v55, 0.0  ;;  %v511_v63 = vmax.f32 %v479_v56, 0.0 }
  0x51   : > { %v950_v0 = vpack.c.bf16 %v509_v58, %v508_v57  ;;  %v481_v1 = vadd.f32 %v1183_v41, %v442_v59  ;;  %v512_v2 = vmax.f32 %v480_v60, 0.0 }
  0x52   : > { %988 = vst [vmem:[%s1207_s11 + $0x60] sm:$0xff] %v945_v61   ;;  %v955_v3 = vpack.c.bf16 %v511_v63, %v510_v62 }
  0x53   : > { %989 = vst [vmem:[%s1207_s11 + $0x68] sm:$0xff] %v950_v0   ;;  %v513_v4 = vmax.f32 %v481_v1, 0.0 }
  0x54   : > { %990 = vst [vmem:[%s1207_s11 + $0x70] sm:$0xff] %v955_v3  }
  0x55   : > { %v960_v5 = vpack.c.bf16 %v513_v4, %v512_v2 }
  0x57   : > { %991 = vst [vmem:[%s1207_s11 + $0x78] sm:$0xff] %v960_v5  }
  0x58 PF: > { %p10_p9 = scmp.ge.s32.totalorder %s1077_s16, 4   ;;  %s1297_s12 = smov %s1034_s13 }
  0x59   : > { %s1298_s13 = smov %s1086_s19  ;;  %s1299_s14 = smov %s1077_s16 }
  0x5a   :  { %12 = sbr.rel (!%p10_p9) target bundleno = 2 (0x2), region = 108 }

// kernel: unet_encoder_forward.16
= control target key start
LH: loop header
LB: loop body
LE: loop exit
PB: predicated region body
PF: predicated region fallthrough
CT: control target
= control target key end

     0   :  { %s1240_s12 = smov 0   ;;  %s1416_s0 = inlined_call_operand.vmem [shape: bf16[512,128], index: 0, kind: input, shape index: {}]   ;;  %s1417_s1 = inlined_call_operand.vmem [shape: bf16[128,128], index: 1, kind: input, shape index: {}]   ;;  %s1418_s2 = inlined_call_operand.vmem [shape: bf16[512,128], index: 2, kind: output, shape index: {0}]   ;;  %s1419_s3 = inlined_call_operand.vmem [shape: f32[16,128], index: 3, kind: output, shape index: {1}]  }
   0x1 LB: > { %s1246_s13 = sadd.s32 4294967295, %s1218_s12   ;;  %p901_p0 = scmp.ge.s32.totalorder %s1218_s12, 1  ;;  %s1218_s12 = sphi %s1240_s12, %s14_s12  }
   0x2   : > { %p141_p1 = scmp.lt.s32.totalorder %s1218_s12, 3 }
   0x4   : > { %p142_p2 = pnand %p901_p0, %p141_p1 }
   0x5   : > { %v1188_v0 = vld [vmem:[%s1417_s1] sm:$0xff] (!%p142_p2)   ;;  %s902_s16 = sshll.u32 (!%p142_p2), %s1246_s13, 5  ;;  %v1189_v1 = vld [vmem:[%s1417_s1 + $0x8] sm:$0xff] (!%p142_p2)   ;;  %v1190_v2 = vld [vmem:[%s1417_s1 + $0x10] sm:$0xff] (!%p142_p2)   ;;  %p181_p4 = scmp.lt.s32.totalorder (!%p142_p2), %s1246_s13, 1  ;;  %vm805_vm0 = vcmask (!%p142_p2), 1040384  }
   0x6   : > { %145 = sbr.rel (%p142_p2) target bundleno = 332 (0x14c), region = 28  ;;  %p170_p3 = scmp.lt.s32.totalorder (!%p142_p2), %s902_s16, 63  ;;  %1116 = vmatprep.subr.bf16.mxu0 (!%p142_p2), %v1188_v0  ;;  %1164 = vmatprep.subr.bf16.mxu1 (!%p142_p2), %v1188_v0  ;;  %v1191_v3 = vld [vmem:[%s1417_s1 + $0x18] sm:$0xff] (!%p142_p2)   ;;  %v1192_v5 = vld [vmem:[%s1417_s1 + $0x20] sm:$0xff] (!%p142_p2)   ;;  %v1193_v6 = vld [vmem:[%s1417_s1 + $0x28] sm:$0xff] (!%p142_p2)   ;;  %vm807_vm1 = vcmask (!%p142_p2), 1041408  }
   0x7   : > { %1117 = vmatpush3.bf16.msra.mxu0 (!%p142_p2), %v1188_v0  ;;  %1172 = vmatpush3.bf16.msra.mxu1 (!%p142_p2), %v1188_v0  ;;  %v1194_v8 = vld [vmem:[%s1417_s1 + $0x30] sm:$0xff] (!%p142_p2)   ;;  %v1195_v9 = vld [vmem:[%s1417_s1 + $0x38] sm:$0xff] (!%p142_p2)  }
   0x8   : > { %1118 = vmatprep.subr.bf16.mxu0 (!%p142_p2), %v1189_v1  ;;  %1165 = vmatprep.subr.bf16.mxu1 (!%p142_p2), %v1189_v1 }
   0xb   : > { %1119 = vmatpush3.bf16.msra.mxu0 (!%p142_p2), %v1189_v1  ;;  %1173 = vmatpush3.bf16.msra.mxu1 (!%p142_p2), %v1189_v1 }
   0xc   : > { %1120 = vmatprep.subr.bf16.mxu0 (!%p142_p2), %v1190_v2  ;;  %1166 = vmatprep.subr.bf16.mxu1 (!%p142_p2), %v1190_v2 }
   0xd   : > { %s1421_s16 = smov (!%p170_p3, %s902_s16), 63  ;;  %s1423_s13 = smov (!%p181_p4, %s1246_s13), 1 }
   0xe   : > { %s903_s21 = sshll.u32 %s1421_s16, 2  ;;  %s906_s11 = sshll.u32 %s1423_s13, 3 }
   0xf   : > { %s1268_s24 = scalar_lea.vmem %s1416_s0, %s903_s21  ;;  %1121 = vmatpush3.bf16.msra.mxu0 %v1190_v2  ;;  %1174 = vmatpush3.bf16.msra.mxu1 %v1190_v2  ;;  %s1310_s10 = scalar_lea.vmem %s1418_s2, %s903_s21 }
  0x10   : > { %v1196_v4 = vld [vmem:[%s1268_s24] sm:$0xff]   ;;  %1122 = vmatprep.subr.bf16.mxu0 %v1191_v3  ;;  %1167 = vmatprep.subr.bf16.mxu1 %v1191_v3  ;;  %v1197_v10 = vld [vmem:[%s1268_s24 + $0x8] sm:$0xff]   ;;  %v1198_v12 = vld [vmem:[%s1268_s24 + $0x10] sm:$0xff]   ;;  %s184_s16 = scalar_lea.vmem %s1419_s3, %s906_s11 }
  0x11   : > { %1132 = vmatprep.mubr.bf16.mxu0 %v1196_v4  ;;  %v1204_v7 = vld [vmem:[%s1268_s24 + $0x40] sm:$0xff]   ;;  %v1205_v11 = vld [vmem:[%s1268_s24 + $0x48] sm:$0xff]   ;;  %v1206_v13 = vld [vmem:[%s1268_s24 + $0x50] sm:$0xff]  }
  0x12   : > { %1148 = vmatprep.mubr.bf16.mxu1 %v1204_v7  ;;  %v1199_v14 = vld [vmem:[%s1268_s24 + $0x18] sm:$0xff]   ;;  %v1200_v16 = vld [vmem:[%s1268_s24 + $0x20] sm:$0xff]   ;;  %v1201_v18 = vld [vmem:[%s1268_s24 + $0x28] sm:$0xff]  }
  0x13   : > { %1123 = vmatpush3.bf16.msra.mxu0 %v1191_v3  ;;  %1175 = vmatpush3.bf16.msra.mxu1 %v1191_v3  ;;  %v1207_v15 = vld [vmem:[%s1268_s24 + $0x58] sm:$0xff]   ;;  %v1208_v17 = vld [vmem:[%s1268_s24 + $0x60] sm:$0xff]   ;;  %v1209_v19 = vld [vmem:[%s1268_s24 + $0x68] sm:$0xff]  }
  0x14   : > { %1124 = vmatprep.subr.bf16.mxu0 %v1192_v5  ;;  %1168 = vmatprep.subr.bf16.mxu1 %v1192_v5  ;;  %v1202_v20 = vld [vmem:[%s1268_s24 + $0x30] sm:$0xff]   ;;  %v1203_v22 = vld [vmem:[%s1268_s24 + $0x38] sm:$0xff]  }
  0x15   : > { %v1210_v21 = vld [vmem:[%s1268_s24 + $0x70] sm:$0xff]   ;;  %v1211_v23 = vld [vmem:[%s1268_s24 + $0x78] sm:$0xff]  }
  0x17   : > { %1125 = vmatpush3.bf16.msra.mxu0 %v1192_v5  ;;  %1176 = vmatpush3.bf16.msra.mxu1 %v1192_v5 }
  0x18   : > { %1126 = vmatprep.subr.bf16.mxu0 %v1193_v6  ;;  %1169 = vmatprep.subr.bf16.mxu1 %v1193_v6 }
  0x1b   : > { %1127 = vmatpush3.bf16.msra.mxu0 %v1193_v6  ;;  %1177 = vmatpush3.bf16.msra.mxu1 %v1193_v6 }
  0x1c   : > { %1128 = vmatprep.subr.bf16.mxu0 %v1194_v8  ;;  %1170 = vmatprep.subr.bf16.mxu1 %v1194_v8 }
  0x1f   : > { %1129 = vmatpush3.bf16.msra.mxu0 %v1194_v8  ;;  %1178 = vmatpush3.bf16.msra.mxu1 %v1194_v8 }
  0x20   : > { %1130 = vmatprep.subr.bf16.mxu0 %v1195_v9  ;;  %1171 = vmatprep.subr.bf16.mxu1 %v1195_v9 }
  0x23   : > { %1131 = vmatpush3.bf16.msra.mxu0 %v1195_v9  ;;  %1179 = vmatpush3.bf16.msra.mxu1 %v1195_v9 }
  0x26   : > { %1133 = vmatmul.mubr.bf16.vlgmr.msra.gmra.mrb[0].mxu0 %v1197_v10  ;;  %1149 = vmatmul.mubr.bf16.vlgmr.msra.gmra.mrb[0].mxu1 %v1205_v11 }
  0x27   : > { %1136 = vmatprep.mubr.bf16.mxu0 %v1198_v12  ;;  %1152 = vmatprep.mubr.bf16.mxu1 %v1206_v13 }
  0x2e   : > { %1137 = vmatmul.mubr.bf16.gmra.mrb[4].mxu0 %v1199_v14  ;;  %1153 = vmatmul.mubr.bf16.gmra.mrb[4].mxu1 %v1207_v15 }
  0x2f   : > { %1140 = vmatprep.mubr.bf16.mxu0 %v1200_v16  ;;  %1156 = vmatprep.mubr.bf16.mxu1 %v1208_v17 }
  0x36   : > { %1141 = vmatmul.mubr.bf16.gmra.mrb[8].mxu0 %v1201_v18  ;;  %1157 = vmatmul.mubr.bf16.gmra.mrb[8].mxu1 %v1209_v19 }
  0x37   : > { %1144 = vmatprep.mubr.bf16.mxu0 %v1202_v20  ;;  %1160 = vmatprep.mubr.bf16.mxu1 %v1210_v21 }
  0x3e   : > { %1145 = vmatmul.mubr.bf16.gmra.mrb[12].mxu0 %v1203_v22  ;;  %1161 = vmatmul.mubr.bf16.gmra.mrb[12].mxu1 %v1211_v23 }
  0xf9   : > { %v1134_v24 = vpop.f32.mrb[0].mxu0  ;;  %v1301_v25 = vpop.f32.mrb[0].mxu1 }
  0xfa   : > { %v412_v26 = vpop.f32.mrb[1].mxu0  ;;  %v1303_v27 = vpop.f32.mrb[1].mxu1  ;;  %v738_v39 = vmul.f32 %v1134_v24, %v1134_v24 }
  0xfb   : > { %v1135_v28 = vpop.f32.mrb[2].mxu0  ;;  %v1312_v29 = vpop.f32.mrb[2].mxu1  ;;  %v736_v30 = vmul.f32 %v412_v26, %v412_v26 }
  0xfc   : > { %v1005_v31 = vpack.c.bf16 %v1135_v28, %v1134_v24  ;;  %v415_v32 = vpop.f32.mrb[3].mxu0  ;;  %v1045_v33 = vpack.c.bf16 %v1312_v29, %v1301_v25  ;;  %v1316_v34 = vpop.f32.mrb[3].mxu1  ;;  %v739_v42 = vmul.f32 %v1135_v28, %v1135_v28 }
  0xfd   : > { %v1000_v35 = vpack.c.bf16 %v415_v32, %v412_v26  ;;  %v699_v36 = vadd.f32 %v415_v32, %v412_v26  ;;  %v737_v37 = vmul.f32 %v415_v32, %v415_v32  ;;  %v1040_v38 = vpack.c.bf16 %v1316_v34, %v1303_v27 }
  0xfe   : > { %1077 = vst [vmem:[%s1310_s10 + $0x8] sm:$0xff] %v1005_v31   ;;  %1085 = vst [vmem:[%s1310_s10 + $0x48] sm:$0xff] %v1045_v33  }
  0xff   : > { %1001 = vst [vmem:[%s1310_s10] sm:$0xff] %v1000_v35   ;;  %v700_v40 = vadd.f32 %v1134_v24, %v699_v36  ;;  %v768_v41 = vadd.f32 %v737_v37, %v736_v30  ;;  %1084 = vst [vmem:[%s1310_s10 + $0x40] sm:$0xff] %v1040_v38  }
 0x101   : > { %v769_v43 = vadd.f32 %v768_v41, %v738_v39  ;;  %v1138_v44 = vpop.f32.mrb[4].mxu0  ;;  %v701_v45 = vadd.f32 %v1135_v28, %v700_v40  ;;  %v1324_v46 = vpop.f32.mrb[4].mxu1 }
 0x102   : > { %v428_v47 = vpop.f32.mrb[5].mxu0  ;;  %v1326_v48 = vpop.f32.mrb[5].mxu1  ;;  %v742_v63 = vmul.f32 %v1138_v44, %v1138_v44 }
 0x103   : > { %v702_v49 = vadd.f32 %v701_v45, %v428_v47  ;;  %v740_v50 = vmul.f32 %v428_v47, %v428_v47  ;;  %v770_v51 = vadd.f32 %v769_v43, %v739_v42  ;;  %v1139_v52 = vpop.f32.mrb[6].mxu0  ;;  %v1328_v53 = vpop.f32.mrb[6].mxu1 }
 0x104   : > { %v1015_v54 = vpack.c.bf16 %v1139_v52, %v1138_v44  ;;  %v431_v55 = vpop.f32.mrb[7].mxu0  ;;  %v1055_v56 = vpack.c.bf16 %v1328_v53, %v1324_v46  ;;  %v1332_v57 = vpop.f32.mrb[7].mxu1  ;;  %v743_v2 = vmul.f32 %v1139_v52, %v1139_v52 }
 0x105   : > { %v771_v58 = vadd.f32 %v770_v51, %v740_v50  ;;  %v1010_v59 = vpack.c.bf16 %v431_v55, %v428_v47  ;;  %v703_v60 = vadd.f32 %v702_v49, %v431_v55  ;;  %v741_v61 = vmul.f32 %v431_v55, %v431_v55 }
 0x106   : > { %1079 = vst [vmem:[%s1310_s10 + $0x18] sm:$0xff] %v1015_v54   ;;  %1087 = vst [vmem:[%s1310_s10 + $0x58] sm:$0xff] %v1055_v56   ;;  %v1050_v62 = vpack.c.bf16 %v1332_v57, %v1326_v48 }
 0x107   : > { %1078 = vst [vmem:[%s1310_s10 + $0x10] sm:$0xff] %v1010_v59   ;;  %v704_v0 = vadd.f32 %v1138_v44, %v703_v60  ;;  %v772_v1 = vadd.f32 %v771_v58, %v741_v61  ;;  %v752_v61 = vmul.f32 %v1303_v27, %v1303_v27 }
 0x108   : > { %1086 = vst [vmem:[%s1310_s10 + $0x50] sm:$0xff] %v1050_v62  }
 0x109   : > { %v773_v3 = vadd.f32 %v772_v1, %v742_v63  ;;  %v1142_v4 = vpop.f32.mrb[8].mxu0  ;;  %v705_v5 = vadd.f32 %v1139_v52, %v704_v0  ;;  %v1340_v6 = vpop.f32.mrb[8].mxu1 }
 0x10a   : > { %v444_v7 = vpop.f32.mrb[9].mxu0  ;;  %v1342_v8 = vpop.f32.mrb[9].mxu1  ;;  %v746_v23 = vmul.f32 %v1142_v4, %v1142_v4 }
 0x10b   : > { %v706_v9 = vadd.f32 %v705_v5, %v444_v7  ;;  %v744_v10 = vmul.f32 %v444_v7, %v444_v7  ;;  %v774_v11 = vadd.f32 %v773_v3, %v743_v2  ;;  %v1143_v12 = vpop.f32.mrb[10].mxu0  ;;  %v1344_v13 = vpop.f32.mrb[10].mxu1  ;;  %v753_v2 = vmul.f32 %v1316_v34, %v1316_v34 }
 0x10c   : > { %v1025_v14 = vpack.c.bf16 %v1143_v12, %v1142_v4  ;;  %v447_v15 = vpop.f32.mrb[11].mxu0  ;;  %v1065_v16 = vpack.c.bf16 %v1344_v13, %v1340_v6  ;;  %v1348_v17 = vpop.f32.mrb[11].mxu1  ;;  %v747_v28 = vmul.f32 %v1143_v12, %v1143_v12  ;;  %v754_v3 = vmul.f32 %v1301_v25, %v1301_v25 }
 0x10d   : > { %v775_v18 = vadd.f32 %v774_v11, %v744_v10  ;;  %v1020_v19 = vpack.c.bf16 %v447_v15, %v444_v7  ;;  %v707_v20 = vadd.f32 %v706_v9, %v447_v15  ;;  %v745_v21 = vmul.f32 %v447_v15, %v447_v15 }
 0x10e   : > { %1081 = vst [vmem:[%s1310_s10 + $0x28] sm:$0xff] %v1025_v14   ;;  %1089 = vst [vmem:[%s1310_s10 + $0x68] sm:$0xff] %v1065_v16   ;;  %v1060_v22 = vpack.c.bf16 %v1348_v17, %v1342_v8  ;;  %v755_v7 = vmul.f32 %v1312_v29, %v1312_v29  ;;  %v757_v15 = vmul.f32 %v1332_v57, %v1332_v57 }
 0x10f   : > { %1080 = vst [vmem:[%s1310_s10 + $0x20] sm:$0xff] %v1020_v19   ;;  %v708_v24 = vadd.f32 %v1142_v4, %v707_v20  ;;  %v776_v26 = vadd.f32 %v775_v18, %v745_v21 }
 0x110   : > { %1088 = vst [vmem:[%s1310_s10 + $0x60] sm:$0xff] %v1060_v22  }
 0x111   : > { %v777_v30 = vadd.f32 %v776_v26, %v746_v23  ;;  %v1146_v31 = vpop.f32.mrb[12].mxu0  ;;  %v709_v32 = vadd.f32 %v1143_v12, %v708_v24  ;;  %v1356_v33 = vpop.f32.mrb[12].mxu1  ;;  %v761_v24 = vmul.f32 %v1348_v17, %v1348_v17 }
 0x112   : > { %v460_v35 = vpop.f32.mrb[13].mxu0  ;;  %v524_v36 = vpop.f32.mrb[13].mxu1  ;;  %v750_v54 = vmul.f32 %v1146_v31, %v1146_v31 }
 0x113   : > { %v710_v37 = vadd.f32 %v709_v32, %v460_v35  ;;  %v748_v38 = vmul.f32 %v460_v35, %v460_v35  ;;  %v778_v39 = vadd.f32 %v777_v30, %v747_v28  ;;  %v1147_v40 = vpop.f32.mrb[14].mxu0  ;;  %v1358_v41 = vpop.f32.mrb[14].mxu1 }
 0x114   : > { %v1035_v42 = vpack.c.bf16 %v1147_v40, %v1146_v31  ;;  %v463_v43 = vpop.f32.mrb[15].mxu0  ;;  %v1075_v44 = vpack.c.bf16 %v1358_v41, %v1356_v33  ;;  %v527_v45 = vpop.f32.mrb[15].mxu1  ;;  %v751_v58 = vmul.f32 %v1147_v40, %v1147_v40 }
 0x115   : > { %v779_v47 = vadd.f32 %v778_v39, %v748_v38  ;;  %v1030_v49 = vpack.c.bf16 %v463_v43, %v460_v35  ;;  %v711_v50 = vadd.f32 %v710_v37, %v463_v43  ;;  %v749_v51 = vmul.f32 %v463_v43, %v463_v43 }
 0x116   : > { %1083 = vst [vmem:[%s1310_s10 + $0x38] sm:$0xff] %v1035_v42   ;;  %1091 = vst [vmem:[%s1310_s10 + $0x78] sm:$0xff] %v1075_v44   ;;  %v1070_v52 = vpack.c.bf16 %v527_v45, %v524_v36  ;;  %v766_v39 = vmul.f32 %v1356_v33, %v1356_v33  ;;  %v767_v42 = vmul.f32 %v1358_v41, %v1358_v41 }
 0x117   : > { %1082 = vst [vmem:[%s1310_s10 + $0x30] sm:$0xff] %v1030_v49   ;;  %v712_v55 = vadd.f32 %v1146_v31, %v711_v50  ;;  %v780_v56 = vadd.f32 %v779_v47, %v749_v51  ;;  %v764_v31 = vmul.f32 %v524_v36, %v524_v36 }
 0x118   : > { %1090 = vst [vmem:[%s1310_s10 + $0x70] sm:$0xff] %v1070_v52  }
 0x119   : > { %v781_v59 = vadd.f32 %v780_v56, %v750_v54  ;;  %v713_v60 = vadd.f32 %v1147_v40, %v712_v55 }
 0x11b   : > { %v714_v62 = vadd.f32 %v713_v60, %v1303_v27  ;;  %v782_v63 = vadd.f32 %v781_v59, %v751_v58  ;;  %v756_v27 = vmul.f32 %v1326_v48, %v1326_v48 }
 0x11d   : > { %v783_v0 = vadd.f32 %v782_v63, %v752_v61  ;;  %v715_v1 = vadd.f32 %v714_v62, %v1316_v34 }
 0x11f   : > { %v716_v4 = vadd.f32 %v1301_v25, %v715_v1  ;;  %v784_v5 = vadd.f32 %v783_v0, %v753_v2  ;;  %v758_v25 = vmul.f32 %v1324_v46, %v1324_v46 }
 0x121   : > { %v785_v9 = vadd.f32 %v784_v5, %v754_v3  ;;  %v717_v10 = vadd.f32 %v1312_v29, %v716_v4  ;;  %v759_v29 = vmul.f32 %v1328_v53, %v1328_v53 }
 0x123   : > { %v718_v11 = vadd.f32 %v717_v10, %v1326_v48  ;;  %v786_v12 = vadd.f32 %v785_v9, %v755_v7  ;;  %v760_v48 = vmul.f32 %v1342_v8, %v1342_v8 }
 0x125   : > { %v787_v14 = vadd.f32 %v786_v12, %v756_v27  ;;  %v719_v34 = vadd.f32 %v718_v11, %v1332_v57 }
 0x127   : > { %v720_v16 = vadd.f32 %v1324_v46, %v719_v34  ;;  %v788_v18 = vadd.f32 %v787_v14, %v757_v15  ;;  %v762_v46 = vmul.f32 %v1340_v6, %v1340_v6 }
 0x129   : > { %v789_v19 = vadd.f32 %v788_v18, %v758_v25  ;;  %v721_v20 = vadd.f32 %v1328_v53, %v720_v16  ;;  %v763_v53 = vmul.f32 %v1344_v13, %v1344_v13 }
 0x12b   : > { %v722_v21 = vadd.f32 %v721_v20, %v1342_v8  ;;  %v790_v22 = vadd.f32 %v789_v19, %v759_v29 }
 0x12d   : > { %v791_v23 = vadd.f32 %v790_v22, %v760_v48  ;;  %v723_v57 = vadd.f32 %v722_v21, %v1348_v17  ;;  %v765_v17 = vmul.f32 %v527_v45, %v527_v45 }
 0x12f   : > { %v724_v26 = vadd.f32 %v1340_v6, %v723_v57  ;;  %v792_v28 = vadd.f32 %v791_v23, %v761_v24 }
 0x131   : > { %v793_v30 = vadd.f32 %v792_v28, %v762_v46  ;;  %v725_v8 = vadd.f32 %v1344_v13, %v724_v26 }
 0x133   : > { %v726_v32 = vadd.f32 %v725_v8, %v524_v36  ;;  %v794_v35 = vadd.f32 %v793_v30, %v763_v53 }
 0x135   : > { %v795_v37 = vadd.f32 %v794_v35, %v764_v31  ;;  %v727_v38 = vadd.f32 %v726_v32, %v527_v45 }
 0x137   : > { %v728_v6 = vadd.f32 %v1356_v33, %v727_v38  ;;  %v796_v40 = vadd.f32 %v795_v37, %v765_v17 }
 0x139   : > { %v729_v43 = vadd.f32 %v1358_v41, %v728_v6  ;;  %v797_v44 = vadd.f32 %v796_v40, %v766_v39 }
 0x13b   : > { %v730_v13 = vrot.slane %v729_v43, 4  ;;  %v798_v47 = vadd.f32 %v797_v44, %v767_v42 }
 0x13d   : > { %v731_v36 = vadd.f32 %v730_v13, %v729_v43  ;;  %v799_v49 = vrot.slane %v798_v47, 4 }
 0x13f   : > { %v732_v50 = vrot.slane %v731_v36, 2  ;;  %v800_v51 = vadd.f32 %v799_v49, %v798_v47 }
 0x141   : > { %v733_v45 = vadd.f32 %v732_v50, %v731_v36  ;;  %v801_v52 = vrot.slane %v800_v51, 2 }
 0x143   : > { %v734_v54 = vrot.slane %v733_v45, 1  ;;  %v802_v55 = vadd.f32 %v801_v52, %v800_v51 }
 0x145   : > { %v803_v33 = vrot.slane %v802_v55, 1  ;;  %v735_v56 = vadd.f32 %v734_v54, %v733_v45 }
 0x147   : > { %v804_v58 = vadd.f32 %v803_v33, %v802_v55 }
 0x149   : > { %v806_v41 = vsel %vm805_vm0, %v735_v56, %v804_v58 }
 0x14a   : > { %v808_v59 = vsel %vm807_vm1, %v806_v41, 0.0 }
 0x14b   : > { %809 = vst [vmem:[%s184_s16] sm:$0xff] %v808_v59 }
 0x14c PF: > { %s14_s12 = sadd.s32 1, %s1218_s12  }
 0x14d   : > { %p11_p5 = scmp.ge.s32.totalorder %s14_s12, 4  }
 0x14f   :  { %13 = sbr.rel (!%p11_p5) target bundleno = 1 (0x1), region = 70 }

// kernel: unet_encoder_forward.18
= control target key start
LH: loop header
LB: loop body
LE: loop exit
PB: predicated region body
PF: predicated region fallthrough
CT: control target
= control target key end

     0   :  { %s562_s9 = smov 0   ;;  %s616_s0 = inlined_call_operand.vmem [shape: bf16[128,128], index: 0, kind: input, shape index: {}]   ;;  %s617_s1 = inlined_call_operand.vmem [shape: bf16[128,128], index: 1, kind: input, shape index: {}]   ;;  %s618_s2 = inlined_call_operand.vmem [shape: bf16[128,128], index: 2, kind: output, shape index: {}]  }
   0x1 LB: > { %s405_s10 = sadd.s32 4294967295, %s545_s9   ;;  %p409_p0 = scmp.ge.s32.totalorder %s545_s9, 1  ;;  %s545_s9 = sphi %s562_s9, %s12_s9  }
   0x2   : > { %p113_p1 = scmp.lt.s32.totalorder %s545_s9, 3 }
   0x4   : > { %p114_p2 = pnand %p409_p0, %p113_p1 }
   0x5   : > { %v527_v0 = vld [vmem:[%s617_s1] sm:$0xff] (!%p114_p2)   ;;  %s410_s13 = sshll.u32 (!%p114_p2), %s405_s10, 3  ;;  %v528_v1 = vld [vmem:[%s617_s1 + $0x8] sm:$0xff] (!%p114_p2)   ;;  %v529_v2 = vld [vmem:[%s617_s1 + $0x10] sm:$0xff] (!%p114_p2)  }
   0x6   : > { %117 = sbr.rel (%p114_p2) target bundleno = 256 (0x100), region = 28  ;;  %p136_p3 = scmp.lt.s32.totalorder (!%p114_p2), %s410_s13, 15  ;;  %479 = vmatprep.subr.bf16.mxu0 (!%p114_p2), %v527_v0  ;;  %503 = vmatprep.subr.bf16.mxu1 (!%p114_p2), %v527_v0  ;;  %v530_v3 = vld [vmem:[%s617_s1 + $0x18] sm:$0xff] (!%p114_p2)   ;;  %v531_v6 = vld [vmem:[%s617_s1 + $0x20] sm:$0xff] (!%p114_p2)   ;;  %v532_v7 = vld [vmem:[%s617_s1 + $0x28] sm:$0xff] (!%p114_p2)  }
   0x7   : > { %480 = vmatpush3.bf16.msra.mxu0 (!%p114_p2), %v527_v0  ;;  %511 = vmatpush3.bf16.msra.mxu1 (!%p114_p2), %v527_v0  ;;  %v533_v8 = vld [vmem:[%s617_s1 + $0x30] sm:$0xff] (!%p114_p2)   ;;  %v534_v9 = vld [vmem:[%s617_s1 + $0x38] sm:$0xff] (!%p114_p2)  }
   0x8   : > { %481 = vmatprep.subr.bf16.mxu0 (!%p114_p2), %v528_v1  ;;  %504 = vmatprep.subr.bf16.mxu1 (!%p114_p2), %v528_v1 }
   0xb   : > { %482 = vmatpush3.bf16.msra.mxu0 (!%p114_p2), %v528_v1  ;;  %512 = vmatpush3.bf16.msra.mxu1 (!%p114_p2), %v528_v1 }
   0xc   : > { %483 = vmatprep.subr.bf16.mxu0 (!%p114_p2), %v529_v2  ;;  %505 = vmatprep.subr.bf16.mxu1 (!%p114_p2), %v529_v2 }
   0xd   : > { %s620_s13 = smov (!%p136_p3, %s410_s13), 15 }
   0xe   : > { %s411_s18 = sshll.u32 %s620_s13, 2 }
   0xf   : > { %s587_s21 = scalar_lea.vmem %s616_s0, %s411_s18  ;;  %484 = vmatpush3.bf16.msra.mxu0 %v529_v2  ;;  %513 = vmatpush3.bf16.msra.mxu1 %v529_v2  ;;  %s145_s6 = scalar_lea.vmem %s618_s2, %s411_s18 }
  0x10   : > { %v535_v4 = vld [vmem:[%s587_s21] sm:$0xff]   ;;  %v536_v5 = vld [vmem:[%s587_s21 + $0x10] sm:$0xff]   ;;  %485 = vmatprep.subr.bf16.mxu0 %v530_v3  ;;  %506 = vmatprep.subr.bf16.mxu1 %v530_v3  ;;  %v537_v10 = vld [vmem:[%s587_s21 + $0x8] sm:$0xff]  }
  0x11   : > { %495 = vmatprep.mubr.bf16.mxu0 %v535_v4  ;;  %499 = vmatprep.mubr.bf16.mxu1 %v536_v5  ;;  %v538_v11 = vld [vmem:[%s587_s21 + $0x18] sm:$0xff]  }
  0x13   : > { %486 = vmatpush3.bf16.msra.mxu0 %v530_v3  ;;  %514 = vmatpush3.bf16.msra.mxu1 %v530_v3 }
  0x14   : > { %487 = vmatprep.subr.bf16.mxu0 %v531_v6  ;;  %507 = vmatprep.subr.bf16.mxu1 %v531_v6 }
  0x17   : > { %488 = vmatpush3.bf16.msra.mxu0 %v531_v6  ;;  %515 = vmatpush3.bf16.msra.mxu1 %v531_v6 }
  0x18   : > { %489 = vmatprep.subr.bf16.mxu0 %v532_v7  ;;  %508 = vmatprep.subr.bf16.mxu1 %v532_v7 }
  0x1b   : > { %490 = vmatpush3.bf16.msra.mxu0 %v532_v7  ;;  %516 = vmatpush3.bf16.msra.mxu1 %v532_v7 }
  0x1c   : > { %491 = vmatprep.subr.bf16.mxu0 %v533_v8  ;;  %509 = vmatprep.subr.bf16.mxu1 %v533_v8 }
  0x1f   : > { %492 = vmatpush3.bf16.msra.mxu0 %v533_v8  ;;  %517 = vmatpush3.bf16.msra.mxu1 %v533_v8 }
  0x20   : > { %493 = vmatprep.subr.bf16.mxu0 %v534_v9  ;;  %510 = vmatprep.subr.bf16.mxu1 %v534_v9 }
  0x23   : > { %494 = vmatpush3.bf16.msra.mxu0 %v534_v9  ;;  %518 = vmatpush3.bf16.msra.mxu1 %v534_v9 }
  0x26   : > { %496 = vmatmul.mubr.bf16.vlgmr.msra.gmra.mrb[0].mxu0 %v537_v10  ;;  %500 = vmatmul.mubr.bf16.vlgmr.msra.gmra.mrb[0].mxu1 %v538_v11 }
  0xf9   : > { %v497_v12 = vpop.f32.mrb[0].mxu0  ;;  %v501_v13 = vpop.f32.mrb[0].mxu1 }
  0xfa   : > { %v278_v14 = vpop.f32.mrb[1].mxu0  ;;  %v294_v15 = vpop.f32.mrb[1].mxu1 }
  0xfb   : > { %v498_v16 = vpop.f32.mrb[2].mxu0  ;;  %v502_v17 = vpop.f32.mrb[2].mxu1 }
  0xfc   : > { %v452_v18 = vpack.c.bf16 %v498_v16, %v497_v12  ;;  %v462_v19 = vpack.c.bf16 %v502_v17, %v501_v13  ;;  %v281_v20 = vpop.f32.mrb[3].mxu0  ;;  %v297_v21 = vpop.f32.mrb[3].mxu1 }
  0xfd   : > { %v447_v22 = vpack.c.bf16 %v281_v20, %v278_v14  ;;  %v457_v23 = vpack.c.bf16 %v297_v21, %v294_v15 }
  0xfe   : > { %464 = vst [vmem:[%s145_s6 + $0x8] sm:$0xff] %v452_v18   ;;  %466 = vst [vmem:[%s145_s6 + $0x18] sm:$0xff] %v462_v19  }
  0xff   : > { %448 = vst [vmem:[%s145_s6] sm:$0xff] %v447_v22   ;;  %465 = vst [vmem:[%s145_s6 + $0x10] sm:$0xff] %v457_v23  }
 0x100 PF: > { %s12_s9 = sadd.s32 1, %s545_s9  }
 0x101   : > { %p9_p4 = scmp.ge.s32.totalorder %s12_s9, 4  }
 0x103   :  { %11 = sbr.rel (!%p9_p4) target bundleno = 1 (0x1), region = 58 }

// kernel: unet_encoder_forward.17
= control target key start
LH: loop header
LB: loop body
LE: loop exit
PB: predicated region body
PF: predicated region fallthrough
CT: control target
= control target key end

     0   :  { %s1512_s21 = smov 0   ;;  %s1514_s22 = smov 0   ;;  %s1844_s0 = inlined_call_operand.vmem [shape: bf16[512,128], index: 0, kind: input, shape index: {}]   ;;  %s1845_s1 = inlined_call_operand.vmem [shape: bf16[512,256], index: 1, kind: input, shape index: {}]   ;;  %s1846_s2 = inlined_call_operand.vmem [shape: f32[1,128], index: 2, kind: input, shape index: {}]   ;;  %s1847_s3 = inlined_call_operand.vmem [shape: f32[1,128], index: 3, kind: input, shape index: {}]   ;;  %s1848_s4 = inlined_call_operand.vmem [shape: f32[1,128], index: 4, kind: input, shape index: {}]   ;;  %s1849_s5 = inlined_call_operand.vmem [shape: f32[1,128], index: 5, kind: input, shape index: {}]   ;;  %s1850_s6 = inlined_call_operand.vmem [shape: bf16[512,128], index: 6, kind: output, shape index: {}]  }
   0x1   :  { %s1516_s23 = smov 0  }
   0x2 LB: > { %s1060_s24 = sadd.s32 4294967295, %s1475_s23   ;;  %s1529_s25 = sadd.s32 1, %s1475_s23   ;;  %s1475_s23 = sphi %s1516_s23, %s1853_s23   ;;  %s1471_s22 = sphi %s1514_s22, %s1852_s22   ;;  %s1467_s21 = sphi %s1512_s21, %s1851_s21  }
   0x3   : > { %s46_s26 = ssub.s32 %s1475_s23, %s1529_s25  ;;  %s49_s27 = sadd.s32 1, %s1471_s22 }
   0x4   : > { %p47_p0 = scmp.eq.s32.totalorder %s46_s26, 0  ;;  %p56_p1 = scmp.ne.s32.totalorder %s1471_s22, %s1467_s21 }
   0x5   : > { %p57_p2 = scmp.eq.s32.totalorder %s1475_s23, 0  ;;  %p1063_p4 = scmp.ge.s32.totalorder %s1475_s23, 2 }
   0x6   : > { %s1538_s28 = scalar_select %p47_p0, %s1471_s22, %s49_s27  }
   0x7   : > { %p58_p3 = por %p57_p2, %p56_p1  ;;  %204 = sbr.rel (%p1063_p4) target bundleno = 39 (0x27), region = 32 }
   0xe   : > { %216 = sbr.rel (!%p58_p3) target bundleno = 39 (0x27), region = 40  ;;  %s218_s29 = sand.u32 (%p58_p3), 1, %s1471_s22  }
   0xf   : > { %s1143_s30 = sshll.u32 (%p58_p3), %s1475_s23, 8  ;;  %s1064_s7 = sshll.u32 (%p58_p3), %s218_s29, 7 }
  0x10   : > { %s1546_s10 = scalar_lea.vmem (%p58_p3), %s1845_s1, %s1143_s30  ;;  %s1550_s11 = scalar_lea.vmem (%p58_p3), [#allocation2], %s1064_s7 }
  0x11   : > { %v1067_v0 = vld [vmem:[%s1546_s10 + $0x4] sm:$0xf] (%p58_p3)  ;;  %v1068_v1 = vld [vmem:[%s1546_s10 + $0xc] sm:$0xf] (%p58_p3)  ;;  %v1069_v2 = vld [vmem:[%s1546_s10 + $0x14] sm:$0xf] (%p58_p3) }
  0x12   : > { %242 = vst [vmem:[%s1550_s11] sm:$0xf] (%p58_p3), %v1067_v0  ;;  %244 = vst [vmem:[%s1550_s11 + $0x4] sm:$0xf] (%p58_p3), %v1068_v1  ;;  %v1070_v3 = vld [vmem:[%s1546_s10 + $0x1c] sm:$0xf] (%p58_p3) }
  0x13   : > { %v1071_v4 = vld [vmem:[%s1546_s10 + $0x24] sm:$0xf] (%p58_p3)  ;;  %246 = vst [vmem:[%s1550_s11 + $0x8] sm:$0xf] (%p58_p3), %v1069_v2  ;;  %248 = vst [vmem:[%s1550_s11 + $0xc] sm:$0xf] (%p58_p3), %v1070_v3 }
  0x14   : > { %250 = vst [vmem:[%s1550_s11 + $0x10] sm:$0xf] (%p58_p3), %v1071_v4  ;;  %v1072_v5 = vld [vmem:[%s1546_s10 + $0x2c] sm:$0xf] (%p58_p3)  ;;  %v1073_v6 = vld [vmem:[%s1546_s10 + $0x34] sm:$0xf] (%p58_p3) }
  0x15   : > { %v1074_v7 = vld [vmem:[%s1546_s10 + $0x3c] sm:$0xf]  ;;  %252 = vst [vmem:[%s1550_s11 + $0x14] sm:$0xf] %v1072_v5  ;;  %254 = vst [vmem:[%s1550_s11 + $0x18] sm:$0xf] %v1073_v6 }
  0x16   : > { %256 = vst [vmem:[%s1550_s11 + $0x1c] sm:$0xf] %v1074_v7  ;;  %v1075_v8 = vld [vmem:[%s1546_s10 + $0x44] sm:$0xf]  ;;  %v1076_v9 = vld [vmem:[%s1546_s10 + $0x4c] sm:$0xf] }
  0x17   : > { %v1077_v10 = vld [vmem:[%s1546_s10 + $0x54] sm:$0xf]  ;;  %258 = vst [vmem:[%s1550_s11 + $0x20] sm:$0xf] %v1075_v8  ;;  %260 = vst [vmem:[%s1550_s11 + $0x24] sm:$0xf] %v1076_v9 }
  0x18   : > { %262 = vst [vmem:[%s1550_s11 + $0x28] sm:$0xf] %v1077_v10  ;;  %v1078_v11 = vld [vmem:[%s1546_s10 + $0x5c] sm:$0xf]  ;;  %v1079_v12 = vld [vmem:[%s1546_s10 + $0x64] sm:$0xf] }
  0x19   : > { %v1080_v13 = vld [vmem:[%s1546_s10 + $0x6c] sm:$0xf]  ;;  %264 = vst [vmem:[%s1550_s11 + $0x2c] sm:$0xf] %v1078_v11  ;;  %266 = vst [vmem:[%s1550_s11 + $0x30] sm:$0xf] %v1079_v12 }
  0x1a   : > { %268 = vst [vmem:[%s1550_s11 + $0x34] sm:$0xf] %v1080_v13  ;;  %v1081_v14 = vld [vmem:[%s1546_s10 + $0x74] sm:$0xf]  ;;  %v1082_v15 = vld [vmem:[%s1546_s10 + $0x7c] sm:$0xf] }
  0x1b   : > { %v1083_v16 = vld [vmem:[%s1546_s10 + $0x84] sm:$0xf]  ;;  %270 = vst [vmem:[%s1550_s11 + $0x38] sm:$0xf] %v1081_v14  ;;  %272 = vst [vmem:[%s1550_s11 + $0x3c] sm:$0xf] %v1082_v15 }
  0x1c   : > { %274 = vst [vmem:[%s1550_s11 + $0x40] sm:$0xf] %v1083_v16  ;;  %v1084_v17 = vld [vmem:[%s1546_s10 + $0x8c] sm:$0xf]  ;;  %v1085_v18 = vld [vmem:[%s1546_s10 + $0x94] sm:$0xf] }
  0x1d   : > { %v1086_v19 = vld [vmem:[%s1546_s10 + $0x9c] sm:$0xf]  ;;  %276 = vst [vmem:[%s1550_s11 + $0x44] sm:$0xf] %v1084_v17  ;;  %278 = vst [vmem:[%s1550_s11 + $0x48] sm:$0xf] %v1085_v18 }
  0x1e   : > { %280 = vst [vmem:[%s1550_s11 + $0x4c] sm:$0xf] %v1086_v19  ;;  %v1087_v20 = vld [vmem:[%s1546_s10 + $0xa4] sm:$0xf]  ;;  %v1088_v21 = vld [vmem:[%s1546_s10 + $0xac] sm:$0xf] }
  0x1f   : > { %v1089_v22 = vld [vmem:[%s1546_s10 + $0xb4] sm:$0xf]  ;;  %282 = vst [vmem:[%s1550_s11 + $0x50] sm:$0xf] %v1087_v20  ;;  %284 = vst [vmem:[%s1550_s11 + $0x54] sm:$0xf] %v1088_v21 }
  0x20   : > { %286 = vst [vmem:[%s1550_s11 + $0x58] sm:$0xf] %v1089_v22  ;;  %v1090_v23 = vld [vmem:[%s1546_s10 + $0xbc] sm:$0xf]  ;;  %v1091_v24 = vld [vmem:[%s1546_s10 + $0xc4] sm:$0xf] }
  0x21   : > { %v1092_v25 = vld [vmem:[%s1546_s10 + $0xcc] sm:$0xf]  ;;  %288 = vst [vmem:[%s1550_s11 + $0x5c] sm:$0xf] %v1090_v23  ;;  %290 = vst [vmem:[%s1550_s11 + $0x60] sm:$0xf] %v1091_v24 }
  0x22   : > { %292 = vst [vmem:[%s1550_s11 + $0x64] sm:$0xf] %v1092_v25  ;;  %v1093_v26 = vld [vmem:[%s1546_s10 + $0xd4] sm:$0xf]  ;;  %v1094_v27 = vld [vmem:[%s1546_s10 + $0xdc] sm:$0xf] }
  0x23   : > { %v1095_v28 = vld [vmem:[%s1546_s10 + $0xe4] sm:$0xf]  ;;  %294 = vst [vmem:[%s1550_s11 + $0x68] sm:$0xf] %v1093_v26  ;;  %296 = vst [vmem:[%s1550_s11 + $0x6c] sm:$0xf] %v1094_v27 }
  0x24   : > { %298 = vst [vmem:[%s1550_s11 + $0x70] sm:$0xf] %v1095_v28  ;;  %v1096_v29 = vld [vmem:[%s1546_s10 + $0xec] sm:$0xf]  ;;  %v1097_v30 = vld [vmem:[%s1546_s10 + $0xf4] sm:$0xf] }
  0x25   : > { %v1098_v31 = vld [vmem:[%s1546_s10 + $0xfc] sm:$0xf]  ;;  %300 = vst [vmem:[%s1550_s11 + $0x74] sm:$0xf] %v1096_v29  ;;  %302 = vst [vmem:[%s1550_s11 + $0x78] sm:$0xf] %v1097_v30 }
  0x26   : > { %304 = vst [vmem:[%s1550_s11 + $0x7c] sm:$0xf] %v1098_v31 }
  0x27 PF: > { %p1099_p5 = scmp.ge.s32.totalorder %s1475_s23, 1  ;;  %p390_p6 = scmp.lt.s32.totalorder %s1475_s23, 3 }
  0x29   : > { %p391_p7 = pnand %p1099_p5, %p390_p6 }
  0x2a   : > { %s397_s12 = sand.u32 (!%p391_p7), 1, %s1467_s21   ;;  %s1101_s13 = sshll.u32 (!%p391_p7), %s1060_s24, 5  ;;  %v1622_v32 = vld [vmem:[%s1848_s4] ss:$0 sm:$0xff] (!%p391_p7) }
  0x2b   : > { %394 = sbr.rel (%p391_p7) target bundleno = 130 (0x82), region = 81  ;;  %s1100_s14 = sshll.u32 (!%p391_p7), %s397_s12, 7  ;;  %v1636_v41 = vld [vmem:[%s1849_s5] ss:$0 sm:$0xff] (!%p391_p7) }
  0x2c   : > { %p432_p8 = scmp.lt.s32.totalorder (!%p391_p7), %s1101_s13, 63  ;;  %s1626_s17 = scalar_lea.vmem (!%p391_p7), [#allocation2], %s1100_s14  ;;  %v1653_v51 = vld [vmem:[%s1846_s2] ss:$0 sm:$0xff] (!%p391_p7) }
  0x2d   : > { %v1241_v33 = vld [vmem:[%s1626_s17] sm:$0xff] (!%p391_p7)   ;;  %v1399_v34 = vld [vmem:[%s1626_s17 + $0x8] sm:$0xff] (!%p391_p7)   ;;  %v1400_v35 = vld [vmem:[%s1626_s17 + $0x10] sm:$0xff] (!%p391_p7)  }
  0x2e   : > { %v1242_v36 = vunpack.c.l.bf16 (!%p391_p7), %v1241_v33  ;;  %v1243_v37 = vunpack.c.h.bf16 (!%p391_p7), %v1241_v33  ;;  %v1246_v38 = vunpack.c.l.bf16 (!%p391_p7), %v1399_v34  ;;  %v1247_v39 = vunpack.c.h.bf16 (!%p391_p7), %v1399_v34  ;;  %v1401_v40 = vld [vmem:[%s1626_s17 + $0x18] sm:$0xff] (!%p391_p7)   ;;  %v1665_v61 = vld [vmem:[%s1847_s3] ss:$0 sm:$0xff] (!%p391_p7) }
  0x2f   : > { %v1250_v42 = vunpack.c.l.bf16 (!%p391_p7), %v1400_v35  ;;  %v1251_v43 = vunpack.c.h.bf16 (!%p391_p7), %v1400_v35  ;;  %v1254_v44 = vunpack.c.l.bf16 (!%p391_p7), %v1401_v40  ;;  %v1255_v45 = vunpack.c.h.bf16 (!%p391_p7), %v1401_v40 }
  0x30   : > { %v689_v46 = vmul.f32 (!%p391_p7), %v1242_v36, %v1622_v32  ;;  %v690_v47 = vmul.f32 (!%p391_p7), %v1243_v37, %v1622_v32  ;;  %v691_v48 = vmul.f32 (!%p391_p7), %v1246_v38, %v1622_v32  ;;  %v692_v49 = vmul.f32 (!%p391_p7), %v1247_v39, %v1622_v32 }
  0x31   : > { %v693_v53 = vmul.f32 (!%p391_p7), %v1250_v42, %v1622_v32  ;;  %v694_v54 = vmul.f32 (!%p391_p7), %v1251_v43, %v1622_v32  ;;  %v695_v55 = vmul.f32 (!%p391_p7), %v1254_v44, %v1622_v32  ;;  %v696_v56 = vmul.f32 (!%p391_p7), %v1255_v45, %v1622_v32 }
  0x32   : > { %s1855_s13 = smov (!%p432_p8, %s1101_s13), 63  ;;  %v728_v59 = vadd.f32 %v1636_v41, %v689_v46  ;;  %v729_v60 = vadd.f32 %v1636_v41, %v690_v47  ;;  %v730_v0 = vadd.f32 %v1636_v41, %v691_v48  ;;  %v731_v1 = vadd.f32 %v1636_v41, %v692_v49  ;;  %v1402_v47 = vld [vmem:[%s1626_s17 + $0x20] sm:$0xff]  }
  0x33   : > { %s1102_s18 = sshll.u32 %s1855_s13, 2  ;;  %v732_v17 = vadd.f32 %v1636_v41, %v693_v53  ;;  %v733_v18 = vadd.f32 %v1636_v41, %v694_v54  ;;  %v734_v42 = vadd.f32 %v1636_v41, %v695_v55  ;;  %v735_v46 = vadd.f32 %v1636_v41, %v696_v56 }
  0x34   : > { %s1643_s24 = scalar_lea.vmem %s1844_s0, %s1102_s18  ;;  %v760_v5 = vmax.f32 %v728_v59, 0.0  ;;  %v761_v6 = vmax.f32 %v729_v60, 0.0  ;;  %v762_v9 = vmax.f32 %v730_v0, 0.0  ;;  %v763_v10 = vmax.f32 %v731_v1, 0.0  ;;  %s1690_s9 = scalar_lea.vmem %s1850_s6, %s1102_s18 }
  0x35   : > { %v1177_v50 = vld [vmem:[%s1643_s24] sm:$0xff]   ;;  %v1384_v52 = vld [vmem:[%s1643_s24 + $0x8] sm:$0xff]   ;;  %v1385_v2 = vld [vmem:[%s1643_s24 + $0x10] sm:$0xff]   ;;  %v764_v26 = vmax.f32 %v732_v17, 0.0  ;;  %v765_v27 = vmax.f32 %v733_v18, 0.0  ;;  %v1258_v56 = vunpack.c.l.bf16 %v1402_v47 }
  0x36   : > { %v1178_v57 = vunpack.c.l.bf16 %v1177_v50  ;;  %v1179_v58 = vunpack.c.h.bf16 %v1177_v50  ;;  %v1182_v62 = vunpack.c.l.bf16 %v1384_v52  ;;  %v1183_v63 = vunpack.c.h.bf16 %v1384_v52  ;;  %v1386_v23 = vld [vmem:[%s1643_s24 + $0x18] sm:$0xff]   ;;  %v1387_v37 = vld [vmem:[%s1643_s24 + $0x20] sm:$0xff]   ;;  %v1388_v53 = vld [vmem:[%s1643_s24 + $0x28] sm:$0xff]  }
  0x37   : > { %v1186_v13 = vunpack.c.l.bf16 %v1385_v2  ;;  %v1187_v14 = vunpack.c.h.bf16 %v1385_v2  ;;  %v1190_v35 = vunpack.c.l.bf16 %v1386_v23  ;;  %v1191_v36 = vunpack.c.h.bf16 %v1386_v23 }
  0x38   : > { %v515_v3 = vmul.f32 %v1178_v57, %v1653_v51  ;;  %v516_v4 = vmul.f32 %v1179_v58, %v1653_v51  ;;  %v517_v7 = vmul.f32 %v1182_v62, %v1653_v51  ;;  %v518_v8 = vmul.f32 %v1183_v63, %v1653_v51 }
  0x39   : > { %v519_v21 = vmul.f32 %v1186_v13, %v1653_v51  ;;  %v520_v22 = vmul.f32 %v1187_v14, %v1653_v51  ;;  %v521_v44 = vmul.f32 %v1190_v35, %v1653_v51  ;;  %v522_v45 = vmul.f32 %v1191_v36, %v1653_v51 }
  0x3a   : > { %v554_v11 = vadd.f32 %v1665_v61, %v515_v3  ;;  %v555_v12 = vadd.f32 %v1665_v61, %v516_v4  ;;  %v556_v15 = vadd.f32 %v1665_v61, %v517_v7  ;;  %v557_v16 = vadd.f32 %v1665_v61, %v518_v8  ;;  %v1403_v7 = vld [vmem:[%s1626_s17 + $0x28] sm:$0xff]  }
  0x3b   : > { %v558_v30 = vadd.f32 %v1665_v61, %v519_v21  ;;  %v559_v31 = vadd.f32 %v1665_v61, %v520_v22  ;;  %v766_v50 = vmax.f32 %v734_v42, 0.0  ;;  %v1194_v52 = vunpack.c.l.bf16 %v1387_v37 }
  0x3c   : > { %v586_v19 = vmax.f32 %v554_v11, 0.0  ;;  %v587_v20 = vmax.f32 %v555_v12, 0.0  ;;  %v588_v24 = vmax.f32 %v556_v15, 0.0  ;;  %v589_v25 = vmax.f32 %v557_v16, 0.0  ;;  %v1389_v16 = vld [vmem:[%s1643_s24 + $0x30] sm:$0xff]  }
  0x3d   : > { %v590_v39 = vmax.f32 %v558_v30, 0.0  ;;  %v591_v40 = vmax.f32 %v559_v31, 0.0  ;;  %v560_v54 = vadd.f32 %v1665_v61, %v521_v44  ;;  %v561_v55 = vadd.f32 %v1665_v61, %v522_v45  ;;  %v1390_v30 = vld [vmem:[%s1643_s24 + $0x38] sm:$0xff]  }
  0x3e   : > { %v792_v28 = vadd.f32 %v760_v5, %v586_v19  ;;  %v793_v29 = vadd.f32 %v761_v6, %v587_v20  ;;  %v794_v33 = vadd.f32 %v762_v9, %v588_v24  ;;  %v795_v34 = vadd.f32 %v763_v10, %v589_v25  ;;  %v1404_v25 = vld [vmem:[%s1626_s17 + $0x30] sm:$0xff]  }
  0x3f   : > { %v796_v48 = vadd.f32 %v764_v26, %v590_v39  ;;  %v797_v49 = vadd.f32 %v765_v27, %v591_v40  ;;  %v767_v57 = vmax.f32 %v735_v46, 0.0  ;;  %v1195_v58 = vunpack.c.h.bf16 %v1387_v37 }
  0x40   : > { %v1307_v38 = vpack.c.bf16 %v793_v29, %v792_v28  ;;  %v1312_v43 = vpack.c.bf16 %v795_v34, %v794_v33  ;;  %v523_v60 = vmul.f32 %v1194_v52, %v1653_v51  ;;  %v1259_v62 = vunpack.c.h.bf16 %v1402_v47 }
  0x41   : > { %v1317_v59 = vpack.c.bf16 %v797_v49, %v796_v48  ;;  %v592_v63 = vmax.f32 %v560_v54, 0.0  ;;  %v593_v0 = vmax.f32 %v561_v55, 0.0  ;;  %v524_v1 = vmul.f32 %v1195_v58, %v1653_v51  ;;  %v1405_v54 = vld [vmem:[%s1626_s17 + $0x38] sm:$0xff]   ;;  %v1391_v55 = vld [vmem:[%s1643_s24 + $0x40] sm:$0xff]  }
  0x42   : > { %1308 = vst [vmem:[%s1690_s9] sm:$0xff] %v1307_v38   ;;  %1414 = vst [vmem:[%s1690_s9 + $0x8] sm:$0xff] %v1312_v43   ;;  %v1198_v2 = vunpack.c.l.bf16 %v1388_v53  ;;  %v562_v3 = vadd.f32 %v1665_v61, %v523_v60  ;;  %v697_v4 = vmul.f32 %v1258_v56, %v1622_v32  ;;  %v698_v5 = vmul.f32 %v1259_v62, %v1622_v32 }
  0x43   : > { %1415 = vst [vmem:[%s1690_s9 + $0x10] sm:$0xff] %v1317_v59   ;;  %v1199_v6 = vunpack.c.h.bf16 %v1388_v53  ;;  %v798_v8 = vadd.f32 %v766_v50, %v592_v63  ;;  %v799_v9 = vadd.f32 %v767_v57, %v593_v0  ;;  %v563_v10 = vadd.f32 %v1665_v61, %v524_v1 }
  0x44   : > { %v525_v11 = vmul.f32 %v1198_v2, %v1653_v51  ;;  %v594_v12 = vmax.f32 %v562_v3, 0.0  ;;  %v736_v13 = vadd.f32 %v1636_v41, %v697_v4  ;;  %v737_v14 = vadd.f32 %v1636_v41, %v698_v5  ;;  %v1406_v5 = vld [vmem:[%s1626_s17 + $0x40] sm:$0xff]  }
  0x45   : > { %v526_v15 = vmul.f32 %v1199_v6, %v1653_v51  ;;  %v1322_v17 = vpack.c.bf16 %v799_v9, %v798_v8  ;;  %v595_v18 = vmax.f32 %v563_v10, 0.0  ;;  %v1262_v20 = vunpack.c.l.bf16 %v1403_v7 }
  0x46   : > { %v564_v19 = vadd.f32 %v1665_v61, %v525_v11  ;;  %v768_v21 = vmax.f32 %v736_v13, 0.0  ;;  %v769_v22 = vmax.f32 %v737_v14, 0.0  ;;  %v1263_v24 = vunpack.c.h.bf16 %v1403_v7  ;;  %v1392_v14 = vld [vmem:[%s1643_s24 + $0x48] sm:$0xff]  }
  0x47   : > { %v565_v23 = vadd.f32 %v1665_v61, %v526_v15  ;;  %1416 = vst [vmem:[%s1690_s9 + $0x18] sm:$0xff] %v1322_v17   ;;  %v699_v27 = vmul.f32 %v1262_v20, %v1622_v32  ;;  %v1202_v28 = vunpack.c.l.bf16 %v1389_v16  ;;  %v1203_v29 = vunpack.c.h.bf16 %v1389_v16 }
  0x48   : > { %v596_v26 = vmax.f32 %v564_v19, 0.0  ;;  %v800_v31 = vadd.f32 %v768_v21, %v594_v12  ;;  %v801_v33 = vadd.f32 %v769_v22, %v595_v18  ;;  %v700_v35 = vmul.f32 %v1263_v24, %v1622_v32 }
  0x49   : > { %v597_v34 = vmax.f32 %v565_v23, 0.0  ;;  %v738_v36 = vadd.f32 %v1636_v41, %v699_v27  ;;  %v527_v37 = vmul.f32 %v1202_v28, %v1653_v51  ;;  %v528_v38 = vmul.f32 %v1203_v29, %v1653_v51 }
  0x4a   : > { %v1266_v39 = vunpack.c.l.bf16 %v1404_v25  ;;  %v1327_v40 = vpack.c.bf16 %v801_v33, %v800_v31  ;;  %v739_v42 = vadd.f32 %v1636_v41, %v700_v35  ;;  %v1267_v43 = vunpack.c.h.bf16 %v1404_v25  ;;  %v1407_v31 = vld [vmem:[%s1626_s17 + $0x48] sm:$0xff]  }
  0x4b   : > { %v1206_v44 = vunpack.c.l.bf16 %v1390_v30  ;;  %v770_v45 = vmax.f32 %v738_v36, 0.0  ;;  %v566_v46 = vadd.f32 %v1665_v61, %v527_v37  ;;  %v567_v47 = vadd.f32 %v1665_v61, %v528_v38  ;;  %v1393_v37 = vld [vmem:[%s1643_s24 + $0x50] sm:$0xff]  }
  0x4c   : > { %v701_v48 = vmul.f32 %v1266_v39, %v1622_v32  ;;  %1417 = vst [vmem:[%s1690_s9 + $0x20] sm:$0xff] %v1327_v40   ;;  %v771_v49 = vmax.f32 %v739_v42, 0.0  ;;  %v702_v50 = vmul.f32 %v1267_v43, %v1622_v32  ;;  %v1207_v52 = vunpack.c.h.bf16 %v1390_v30 }
  0x4d   : > { %v529_v53 = vmul.f32 %v1206_v44, %v1653_v51  ;;  %v802_v57 = vadd.f32 %v770_v45, %v596_v26  ;;  %v598_v58 = vmax.f32 %v566_v46, 0.0  ;;  %v599_v59 = vmax.f32 %v567_v47, 0.0 }
  0x4e   : > { %v740_v60 = vadd.f32 %v1636_v41, %v701_v48  ;;  %v803_v56 = vadd.f32 %v771_v49, %v597_v34  ;;  %v741_v62 = vadd.f32 %v1636_v41, %v702_v50  ;;  %v530_v63 = vmul.f32 %v1207_v52, %v1653_v51  ;;  %v1408_v52 = vld [vmem:[%s1626_s17 + $0x50] sm:$0xff]  }
  0x4f   : > { %v568_v0 = vadd.f32 %v1665_v61, %v529_v53  ;;  %v1270_v2 = vunpack.c.l.bf16 %v1405_v54  ;;  %v1271_v3 = vunpack.c.h.bf16 %v1405_v54  ;;  %v1210_v4 = vunpack.c.l.bf16 %v1391_v55 }
  0x50   : > { %v772_v1 = vmax.f32 %v740_v60, 0.0  ;;  %v1332_v6 = vpack.c.bf16 %v803_v56, %v802_v57  ;;  %v773_v7 = vmax.f32 %v741_v62, 0.0  ;;  %v569_v8 = vadd.f32 %v1665_v61, %v530_v63  ;;  %v1394_v62 = vld [vmem:[%s1643_s24 + $0x58] sm:$0xff]  }
  0x51   : > { %v600_v9 = vmax.f32 %v568_v0, 0.0  ;;  %v703_v11 = vmul.f32 %v1270_v2, %v1622_v32  ;;  %v704_v12 = vmul.f32 %v1271_v3, %v1622_v32  ;;  %v1211_v13 = vunpack.c.h.bf16 %v1391_v55 }
  0x52   : > { %v804_v10 = vadd.f32 %v772_v1, %v598_v58  ;;  %1418 = vst [vmem:[%s1690_s9 + $0x28] sm:$0xff] %v1332_v6   ;;  %v805_v15 = vadd.f32 %v773_v7, %v599_v59  ;;  %v601_v16 = vmax.f32 %v569_v8, 0.0  ;;  %v531_v17 = vmul.f32 %v1210_v4, %v1653_v51 }
  0x53   : > { %v1274_v18 = vunpack.c.l.bf16 %v1406_v5  ;;  %v742_v19 = vadd.f32 %v1636_v41, %v703_v11  ;;  %v743_v20 = vadd.f32 %v1636_v41, %v704_v12  ;;  %v532_v21 = vmul.f32 %v1211_v13, %v1653_v51  ;;  %v1409_v11 = vld [vmem:[%s1626_s17 + $0x58] sm:$0xff]  }
  0x54   : > { %v1275_v22 = vunpack.c.h.bf16 %v1406_v5  ;;  %v1337_v23 = vpack.c.bf16 %v805_v15, %v804_v10  ;;  %v570_v24 = vadd.f32 %v1665_v61, %v531_v17  ;;  %v1214_v26 = vunpack.c.l.bf16 %v1392_v14 }
  0x55   : > { %v705_v25 = vmul.f32 %v1274_v18, %v1622_v32  ;;  %v774_v27 = vmax.f32 %v742_v19, 0.0  ;;  %v775_v28 = vmax.f32 %v743_v20, 0.0  ;;  %v571_v29 = vadd.f32 %v1665_v61, %v532_v21  ;;  %v1395_v20 = vld [vmem:[%s1643_s24 + $0x60] sm:$0xff]  }
  0x56   : > { %v706_v30 = vmul.f32 %v1275_v22, %v1622_v32  ;;  %1419 = vst [vmem:[%s1690_s9 + $0x30] sm:$0xff] %v1337_v23   ;;  %v602_v33 = vmax.f32 %v570_v24, 0.0  ;;  %v1215_v35 = vunpack.c.h.bf16 %v1392_v14  ;;  %v533_v36 = vmul.f32 %v1214_v26, %v1653_v51 }
  0x57   : > { %v744_v34 = vadd.f32 %v1636_v41, %v705_v25  ;;  %v806_v38 = vadd.f32 %v774_v27, %v600_v9  ;;  %v807_v39 = vadd.f32 %v775_v28, %v601_v16  ;;  %v603_v40 = vmax.f32 %v571_v29, 0.0 }
  0x58   : > { %v745_v42 = vadd.f32 %v1636_v41, %v706_v30  ;;  %v534_v44 = vmul.f32 %v1215_v35, %v1653_v51  ;;  %v572_v45 = vadd.f32 %v1665_v61, %v533_v36  ;;  %v1278_v46 = vunpack.c.l.bf16 %v1407_v31 }
  0x59   : > { %v776_v43 = vmax.f32 %v744_v34, 0.0  ;;  %v1342_v47 = vpack.c.bf16 %v807_v39, %v806_v38  ;;  %v1279_v49 = vunpack.c.h.bf16 %v1407_v31  ;;  %v1218_v50 = vunpack.c.l.bf16 %v1393_v37  ;;  %v1410_v34 = vld [vmem:[%s1626_s17 + $0x60] sm:$0xff]   ;;  %v1396_v39 = vld [vmem:[%s1643_s24 + $0x68] sm:$0xff]  }
  0x5a   : > { %v777_v48 = vmax.f32 %v745_v42, 0.0  ;;  %v573_v54 = vadd.f32 %v1665_v61, %v534_v44  ;;  %v604_v55 = vmax.f32 %v572_v45, 0.0  ;;  %v707_v57 = vmul.f32 %v1278_v46, %v1622_v32 }
  0x5b   : > { %v808_v53 = vadd.f32 %v776_v43, %v602_v33  ;;  %1420 = vst [vmem:[%s1690_s9 + $0x38] sm:$0xff] %v1342_v47   ;;  %v708_v59 = vmul.f32 %v1279_v49, %v1622_v32  ;;  %v1219_v60 = vunpack.c.h.bf16 %v1393_v37  ;;  %v535_v56 = vmul.f32 %v1218_v50, %v1653_v51 }
  0x5c   : > { %v809_v58 = vadd.f32 %v777_v48, %v603_v40  ;;  %v605_v63 = vmax.f32 %v573_v54, 0.0  ;;  %v746_v0 = vadd.f32 %v1636_v41, %v707_v57  ;;  %v1282_v1 = vunpack.c.l.bf16 %v1408_v52 }
  0x5d   : > { %v1283_v2 = vunpack.c.h.bf16 %v1408_v52  ;;  %v747_v4 = vadd.f32 %v1636_v41, %v708_v59  ;;  %v536_v5 = vmul.f32 %v1219_v60, %v1653_v51  ;;  %v574_v6 = vadd.f32 %v1665_v61, %v535_v56  ;;  %v1411_v59 = vld [vmem:[%s1626_s17 + $0x68] sm:$0xff]  }
  0x5e   : > { %v1347_v3 = vpack.c.bf16 %v809_v58, %v808_v53  ;;  %v778_v7 = vmax.f32 %v746_v0, 0.0  ;;  %v709_v8 = vmul.f32 %v1282_v1, %v1622_v32  ;;  %v1222_v10 = vunpack.c.l.bf16 %v1394_v62 }
  0x5f   : > { %v710_v9 = vmul.f32 %v1283_v2, %v1622_v32  ;;  %v779_v12 = vmax.f32 %v747_v4, 0.0  ;;  %v575_v13 = vadd.f32 %v1665_v61, %v536_v5  ;;  %v606_v14 = vmax.f32 %v574_v6, 0.0  ;;  %v1397_v4 = vld [vmem:[%s1643_s24 + $0x70] sm:$0xff]  }
  0x60   : > { %1421 = vst [vmem:[%s1690_s9 + $0x40] sm:$0xff] %v1347_v3   ;;  %v1223_v15 = vunpack.c.h.bf16 %v1394_v62  ;;  %v810_v16 = vadd.f32 %v778_v7, %v604_v55  ;;  %v748_v17 = vadd.f32 %v1636_v41, %v709_v8  ;;  %v537_v19 = vmul.f32 %v1222_v10, %v1653_v51 }
  0x61   : > { %v749_v18 = vadd.f32 %v1636_v41, %v710_v9  ;;  %v811_v21 = vadd.f32 %v779_v12, %v605_v63  ;;  %v607_v22 = vmax.f32 %v575_v13, 0.0  ;;  %v1286_v24 = vunpack.c.l.bf16 %v1409_v11  ;;  %v1412_v13 = vld [vmem:[%s1626_s17 + $0x70] sm:$0xff]  }
  0x62   : > { %v538_v23 = vmul.f32 %v1223_v15, %v1653_v51  ;;  %v780_v25 = vmax.f32 %v748_v17, 0.0  ;;  %v576_v27 = vadd.f32 %v1665_v61, %v537_v19  ;;  %v1287_v28 = vunpack.c.h.bf16 %v1409_v11 }
  0x63   : > { %v781_v26 = vmax.f32 %v749_v18, 0.0  ;;  %v1352_v29 = vpack.c.bf16 %v811_v21, %v810_v16  ;;  %v711_v31 = vmul.f32 %v1286_v24, %v1622_v32  ;;  %v1226_v33 = vunpack.c.l.bf16 %v1395_v20  ;;  %v1398_v18 = vld [vmem:[%s1643_s24 + $0x78] sm:$0xff]  }
  0x64   : > { %v577_v30 = vadd.f32 %v1665_v61, %v538_v23  ;;  %v812_v35 = vadd.f32 %v780_v25, %v606_v14  ;;  %v608_v37 = vmax.f32 %v576_v27, 0.0  ;;  %v712_v38 = vmul.f32 %v1287_v28, %v1622_v32 }
  0x65   : > { %v813_v36 = vadd.f32 %v781_v26, %v607_v22  ;;  %1422 = vst [vmem:[%s1690_s9 + $0x48] sm:$0xff] %v1352_v29   ;;  %v750_v42 = vadd.f32 %v1636_v41, %v711_v31  ;;  %v1227_v43 = vunpack.c.h.bf16 %v1395_v20  ;;  %v539_v44 = vmul.f32 %v1226_v33, %v1653_v51 }
  0x66   : > { %v609_v40 = vmax.f32 %v577_v30, 0.0  ;;  %v751_v46 = vadd.f32 %v1636_v41, %v712_v38  ;;  %v1290_v47 = vunpack.c.l.bf16 %v1410_v34  ;;  %v1291_v48 = vunpack.c.h.bf16 %v1410_v34 }
  0x67   : > { %v1357_v45 = vpack.c.bf16 %v813_v36, %v812_v35  ;;  %v782_v49 = vmax.f32 %v750_v42, 0.0  ;;  %v540_v50 = vmul.f32 %v1227_v43, %v1653_v51  ;;  %v578_v52 = vadd.f32 %v1665_v61, %v539_v44 }
  0x68   : > { %v1230_v53 = vunpack.c.l.bf16 %v1396_v39  ;;  %v783_v54 = vmax.f32 %v751_v46, 0.0  ;;  %v713_v55 = vmul.f32 %v1290_v47, %v1622_v32  ;;  %v714_v57 = vmul.f32 %v1291_v48, %v1622_v32 }
  0x69   : > { %1423 = vst [vmem:[%s1690_s9 + $0x50] sm:$0xff] %v1357_v45   ;;  %v1231_v58 = vunpack.c.h.bf16 %v1396_v39  ;;  %v814_v60 = vadd.f32 %v782_v49, %v608_v37  ;;  %v579_v56 = vadd.f32 %v1665_v61, %v540_v50  ;;  %v610_v62 = vmax.f32 %v578_v52, 0.0 }
  0x6a   : > { %v541_v63 = vmul.f32 %v1230_v53, %v1653_v51  ;;  %v815_v0 = vadd.f32 %v783_v54, %v609_v40  ;;  %v752_v1 = vadd.f32 %v1636_v41, %v713_v55  ;;  %v753_v2 = vadd.f32 %v1636_v41, %v714_v57  ;;  %v1413_v40 = vld [vmem:[%s1626_s17 + $0x78] sm:$0xff]  }
  0x6b   : > { %v542_v3 = vmul.f32 %v1231_v58, %v1653_v51  ;;  %v611_v5 = vmax.f32 %v579_v56, 0.0  ;;  %v1294_v7 = vunpack.c.l.bf16 %v1411_v59  ;;  %v1295_v8 = vunpack.c.h.bf16 %v1411_v59 }
  0x6c   : > { %v580_v6 = vadd.f32 %v1665_v61, %v541_v63  ;;  %v1362_v9 = vpack.c.bf16 %v815_v0, %v814_v60  ;;  %v784_v10 = vmax.f32 %v752_v1, 0.0  ;;  %v785_v11 = vmax.f32 %v753_v2, 0.0 }
  0x6d   : > { %v581_v12 = vadd.f32 %v1665_v61, %v542_v3  ;;  %v715_v15 = vmul.f32 %v1294_v7, %v1622_v32  ;;  %v716_v16 = vmul.f32 %v1295_v8, %v1622_v32  ;;  %v1234_v17 = vunpack.c.l.bf16 %v1397_v4 }
  0x6e   : > { %v612_v14 = vmax.f32 %v580_v6, 0.0  ;;  %1424 = vst [vmem:[%s1690_s9 + $0x58] sm:$0xff] %v1362_v9   ;;  %v816_v19 = vadd.f32 %v784_v10, %v610_v62  ;;  %v817_v20 = vadd.f32 %v785_v11, %v611_v5  ;;  %v1235_v22 = vunpack.c.h.bf16 %v1397_v4 }
  0x6f   : > { %v613_v21 = vmax.f32 %v581_v12, 0.0  ;;  %v754_v23 = vadd.f32 %v1636_v41, %v715_v15  ;;  %v755_v24 = vadd.f32 %v1636_v41, %v716_v16  ;;  %v543_v25 = vmul.f32 %v1234_v17, %v1653_v51 }
  0x70   : > { %v1298_v26 = vunpack.c.l.bf16 %v1412_v13  ;;  %v1367_v27 = vpack.c.bf16 %v817_v20, %v816_v19  ;;  %v544_v28 = vmul.f32 %v1235_v22, %v1653_v51  ;;  %v1299_v29 = vunpack.c.h.bf16 %v1412_v13 }
  0x71   : > { %v1238_v30 = vunpack.c.l.bf16 %v1398_v18  ;;  %v786_v31 = vmax.f32 %v754_v23, 0.0  ;;  %v787_v33 = vmax.f32 %v755_v24, 0.0  ;;  %v582_v34 = vadd.f32 %v1665_v61, %v543_v25 }
  0x72   : > { %v717_v35 = vmul.f32 %v1298_v26, %v1622_v32  ;;  %1425 = vst [vmem:[%s1690_s9 + $0x60] sm:$0xff] %v1367_v27   ;;  %v583_v36 = vadd.f32 %v1665_v61, %v544_v28  ;;  %v718_v37 = vmul.f32 %v1299_v29, %v1622_v32  ;;  %v1239_v38 = vunpack.c.h.bf16 %v1398_v18 }
  0x73   : > { %v545_v39 = vmul.f32 %v1238_v30, %v1653_v51  ;;  %v818_v42 = vadd.f32 %v786_v31, %v612_v14  ;;  %v819_v43 = vadd.f32 %v787_v33, %v613_v21  ;;  %v614_v44 = vmax.f32 %v582_v34, 0.0 }
  0x74   : > { %v756_v45 = vadd.f32 %v1636_v41, %v717_v35  ;;  %v615_v46 = vmax.f32 %v583_v36, 0.0  ;;  %v757_v47 = vadd.f32 %v1636_v41, %v718_v37  ;;  %v546_v48 = vmul.f32 %v1239_v38, %v1653_v51 }
  0x75   : > { %v584_v49 = vadd.f32 %v1665_v61, %v545_v39  ;;  %v1372_v50 = vpack.c.bf16 %v819_v43, %v818_v42  ;;  %v1302_v53 = vunpack.c.l.bf16 %v1413_v40  ;;  %v1303_v54 = vunpack.c.h.bf16 %v1413_v40 }
  0x76   : > { %v788_v52 = vmax.f32 %v756_v45, 0.0  ;;  %v789_v55 = vmax.f32 %v757_v47, 0.0  ;;  %v585_v57 = vadd.f32 %v1665_v61, %v546_v48 }
  0x77   : > { %1426 = vst [vmem:[%s1690_s9 + $0x68] sm:$0xff] %v1372_v50   ;;  %v719_v59 = vmul.f32 %v1302_v53, %v1622_v32  ;;  %v720_v60 = vmul.f32 %v1303_v54, %v1622_v32  ;;  %v616_v62 = vmax.f32 %v584_v49, 0.0 }
  0x78   : > { %v820_v58 = vadd.f32 %v788_v52, %v614_v44  ;;  %v821_v56 = vadd.f32 %v789_v55, %v615_v46  ;;  %v617_v51 = vmax.f32 %v585_v57, 0.0 }
  0x79   : > { %v758_v63 = vadd.f32 %v1636_v41, %v719_v59  ;;  %v759_v0 = vadd.f32 %v1636_v41, %v720_v60 }
  0x7a   : > { %v1377_v1 = vpack.c.bf16 %v821_v56, %v820_v58 }
  0x7b   : > { %v790_v2 = vmax.f32 %v758_v63, 0.0  ;;  %v791_v3 = vmax.f32 %v759_v0, 0.0 }
  0x7c   : > { %1427 = vst [vmem:[%s1690_s9 + $0x70] sm:$0xff] %v1377_v1  }
  0x7d   : > { %v822_v4 = vadd.f32 %v790_v2, %v616_v62  ;;  %v823_v61 = vadd.f32 %v791_v3, %v617_v51 }
  0x7f   : > { %v1382_v5 = vpack.c.bf16 %v823_v61, %v822_v4 }
  0x81   : > { %1428 = vst [vmem:[%s1690_s9 + $0x78] sm:$0xff] %v1382_v5  }
  0x82 PF: > { %p13_p9 = scmp.ge.s32.totalorder %s1529_s25, 4   ;;  %s1851_s21 = smov %s1471_s22 }
  0x83   : > { %s1852_s22 = smov %s1538_s28  ;;  %s1853_s23 = smov %s1529_s25 }
  0x84   :  { %15 = sbr.rel (!%p13_p9) target bundleno = 2 (0x2), region = 123 }

// kernel: unet_encoder_forward.19
= control target key start
LH: loop header
LB: loop body
LE: loop exit
PB: predicated region body
PF: predicated region fallthrough
CT: control target
= control target key end

     0   :  { %s582_s12 = smov 0   ;;  %s659_s0 = inlined_call_operand.vmem [shape: bf16[32,128], index: 0, kind: input, shape index: {}]   ;;  %s660_s1 = inlined_call_operand.vmem [shape: bf16[128,256], index: 1, kind: input, shape index: {}]   ;;  %s661_s2 = inlined_call_operand.vmem [shape: bf16[32,256], index: 2, kind: output, shape index: {0}]   ;;  %s662_s3 = inlined_call_operand.vmem [shape: f32[16,256], index: 3, kind: output, shape index: {1}]  }
   0x1 LB: > { %s588_s13 = sadd.s32 4294967295, %s559_s12   ;;  %p486_p0 = scmp.ge.s32.totalorder %s559_s12, 1  ;;  %s559_s12 = sphi %s582_s12, %s14_s12  }
   0x2   : > { %p141_p1 = scmp.lt.s32.totalorder %s559_s12, 3 }
   0x4   : > { %p142_p2 = pnand %p486_p0, %p141_p1 }
   0x5   : > { %v528_v0 = vld [vmem:[%s660_s1 + $0x4] ss:$8 sps:$4 sm:$0xff] (!%p142_p2)   ;;  %s487_s16 = sshll.u32 (!%p142_p2), %s588_s13, 1  ;;  %v530_v1 = vld [vmem:[%s660_s1] ss:$8 sps:$4 sm:$0xff] (!%p142_p2)   ;;  %v561_v2 = vmov (!%p142_p2), 0  }
   0x6   : > { %145 = sbr.rel (%p142_p2) target bundleno = 272 (0x110), region = 28  ;;  %326 = vmatprep.mubr.bf16.mxu0 (!%p142_p2), %v561_v2  ;;  %p172_p3 = scmp.lt.s32.totalorder (!%p142_p2), %s487_s16, 3  ;;  %294 = vmatprep.subr.bf16.mxu0 (!%p142_p2), %v528_v0  ;;  %v531_v3 = vld [vmem:[%s660_s1 + $0x14] ss:$8 sps:$4 sm:$0xff] (!%p142_p2)   ;;  %v533_v4 = vld [vmem:[%s660_s1 + $0x10] ss:$8 sps:$4 sm:$0xff] (!%p142_p2)  }
   0x7   : > { %295 = vmatpush1.bf16.msra.mxu0 (!%p142_p2), %v530_v1  ;;  %v534_v5 = vld [vmem:[%s660_s1 + $0x24] ss:$8 sps:$4 sm:$0xff] (!%p142_p2)   ;;  %v536_v6 = vld [vmem:[%s660_s1 + $0x20] ss:$8 sps:$4 sm:$0xff] (!%p142_p2)   ;;  %v537_v7 = vld [vmem:[%s660_s1 + $0x34] ss:$8 sps:$4 sm:$0xff] (!%p142_p2)  }
   0x8   : > { %296 = vmatprep.subr.bf16.mxu0 (!%p142_p2), %v531_v3  ;;  %v539_v8 = vld [vmem:[%s660_s1 + $0x30] ss:$8 sps:$4 sm:$0xff] (!%p142_p2)   ;;  %v540_v9 = vld [vmem:[%s660_s1 + $0x44] ss:$8 sps:$4 sm:$0xff] (!%p142_p2)   ;;  %v542_v10 = vld [vmem:[%s660_s1 + $0x40] ss:$8 sps:$4 sm:$0xff] (!%p142_p2)  }
   0x9   : > { %v543_v11 = vld [vmem:[%s660_s1 + $0x54] ss:$8 sps:$4 sm:$0xff] (!%p142_p2)   ;;  %v545_v12 = vld [vmem:[%s660_s1 + $0x50] ss:$8 sps:$4 sm:$0xff] (!%p142_p2)   ;;  %v546_v13 = vld [vmem:[%s660_s1 + $0x64] ss:$8 sps:$4 sm:$0xff] (!%p142_p2)  }
   0xa   : > { %v548_v14 = vld [vmem:[%s660_s1 + $0x60] ss:$8 sps:$4 sm:$0xff] (!%p142_p2)   ;;  %v549_v15 = vld [vmem:[%s660_s1 + $0x74] ss:$8 sps:$4 sm:$0xff] (!%p142_p2)   ;;  %v551_v16 = vld [vmem:[%s660_s1 + $0x70] ss:$8 sps:$4 sm:$0xff] (!%p142_p2)  }
   0xb   : > { %297 = vmatpush1.bf16.msra.mxu0 (!%p142_p2), %v533_v4  ;;  %p184_p4 = scmp.lt.s32.totalorder (!%p142_p2), %s588_s13, 1  ;;  %vm383_vm0 = vcmask (!%p142_p2), 1040384   ;;  %vm386_vm1 = vcmask (!%p142_p2), 1041408  }
   0xc   : > { %298 = vmatprep.subr.bf16.mxu0 (!%p142_p2), %v534_v5 }
   0xd   : > { %s664_s16 = smov (!%p172_p3, %s487_s16), 3  ;;  %s666_s13 = smov (!%p184_p4, %s588_s13), 1 }
   0xe   : > { %s488_s25 = sshll.u32 %s664_s16, 2  ;;  %s515_s27 = sshll.u32 %s664_s16, 3 }
   0xf   : > { %s175_s5 = scalar_lea.vmem %s659_s0, %s488_s25  ;;  %299 = vmatpush1.bf16.msra.mxu0 %v536_v6  ;;  %s182_s30 = scalar_lea.vmem %s661_s2, %s515_s27 }
  0x10   : > { %300 = vmatprep.subr.bf16.mxu0 %v537_v7  ;;  %v552_v17 = vld [vmem:[%s175_s5] sm:$0xff]   ;;  %s516_s16 = sshll.u32 %s666_s13, 4 }
  0x11   : > { %s188_s6 = scalar_lea.vmem %s662_s3, %s516_s16 }
  0x13   : > { %301 = vmatpush1.bf16.msra.mxu0 %v539_v8 }
  0x14   : > { %302 = vmatprep.subr.bf16.mxu0 %v540_v9 }
  0x17   : > { %303 = vmatpush1.bf16.msra.mxu0 %v542_v10 }
  0x18   : > { %304 = vmatprep.subr.bf16.mxu0 %v543_v11 }
  0x1b   : > { %305 = vmatpush1.bf16.msra.mxu0 %v545_v12 }
  0x1c   : > { %306 = vmatprep.subr.bf16.mxu0 %v546_v13 }
  0x1f   : > { %307 = vmatpush1.bf16.msra.mxu0 %v548_v14 }
  0x20   : > { %308 = vmatprep.subr.bf16.mxu0 %v549_v15 }
  0x23   : > { %309 = vmatpush1.bf16.msra.mxu0 %v551_v16 }
  0x26   : > { %327 = vmatmul.mubr.bf16.vlgmr.msra.gmra.mrb[0].mxu0 %v552_v17 }
  0xf9   : > { %v328_v18 = vpop.f32.mrb[0].mxu0 }
  0xfa   : > { %v330_v19 = vpop.f32.mrb[1].mxu0  ;;  %v365_v22 = vmul.f32 %v328_v18, %v328_v18 }
  0xfb   : > { %v517_v20 = vpack.c.bf16 %v330_v19, %v328_v18  ;;  %v332_v21 = vpop.f32.mrb[2].mxu0  ;;  %v366_v26 = vmul.f32 %v330_v19, %v330_v19 }
  0xfc   : > { %v351_v23 = vadd.f32 %v332_v21, %v328_v18  ;;  %v367_v24 = vmul.f32 %v332_v21, %v332_v21  ;;  %v334_v25 = vpop.f32.mrb[3].mxu0 }
  0xfd   : > { %349 = vst [vmem:[%s182_s30] sm:$0xff] %v517_v20  ;;  %v518_v27 = vpack.c.bf16 %v334_v25, %v332_v21  ;;  %v358_v28 = vadd.f32 %v334_v25, %v330_v19  ;;  %v368_v29 = vmul.f32 %v334_v25, %v334_v25 }
  0xfe   : > { %v352_v30 = vrot.slane %v351_v23, 4  ;;  %v369_v31 = vadd.f32 %v367_v24, %v365_v22 }
  0xff   : > { %350 = vst [vmem:[%s182_s30 + $0x8] sm:$0xff] %v518_v27  ;;  %v359_v32 = vrot.slane %v358_v28, 4  ;;  %v376_v33 = vadd.f32 %v368_v29, %v366_v26 }
 0x100   : > { %v353_v34 = vadd.f32 %v352_v30, %v351_v23  ;;  %v370_v35 = vrot.slane %v369_v31, 4 }
 0x101   : > { %v360_v36 = vadd.f32 %v359_v32, %v358_v28  ;;  %v377_v37 = vrot.slane %v376_v33, 4 }
 0x102   : > { %v354_v38 = vrot.slane %v353_v34, 2  ;;  %v371_v39 = vadd.f32 %v370_v35, %v369_v31 }
 0x103   : > { %v361_v40 = vrot.slane %v360_v36, 2  ;;  %v378_v41 = vadd.f32 %v377_v37, %v376_v33 }
 0x104   : > { %v355_v42 = vadd.f32 %v354_v38, %v353_v34  ;;  %v372_v43 = vrot.slane %v371_v39, 2 }
 0x105   : > { %v362_v44 = vadd.f32 %v361_v40, %v360_v36  ;;  %v379_v45 = vrot.slane %v378_v41, 2 }
 0x106   : > { %v356_v46 = vrot.slane %v355_v42, 1  ;;  %v373_v47 = vadd.f32 %v372_v43, %v371_v39 }
 0x107   : > { %v363_v48 = vrot.slane %v362_v44, 1  ;;  %v380_v49 = vadd.f32 %v379_v45, %v378_v41 }
 0x108   : > { %v374_v50 = vrot.slane %v373_v47, 1  ;;  %v357_v52 = vadd.f32 %v356_v46, %v355_v42 }
 0x109   : > { %v381_v51 = vrot.slane %v380_v49, 1  ;;  %v364_v54 = vadd.f32 %v363_v48, %v362_v44 }
 0x10a   : > { %v375_v53 = vadd.f32 %v374_v50, %v373_v47 }
 0x10b   : > { %v382_v55 = vadd.f32 %v381_v51, %v380_v49 }
 0x10c   : > { %v384_v56 = vsel %vm383_vm0, %v357_v52, %v375_v53 }
 0x10d   : > { %v385_v57 = vsel %vm383_vm0, %v364_v54, %v382_v55  ;;  %v387_v58 = vsel %vm386_vm1, %v384_v56, 0.0 }
 0x10e   : > { %v388_v59 = vsel %vm386_vm1, %v385_v57, 0.0  ;;  %389 = vst [vmem:[%s188_s6] sm:$0xff] %v387_v58 }
 0x10f   : > { %390 = vst [vmem:[%s188_s6 + $0x8] sm:$0xff] %v388_v59 }
 0x110 PF: > { %s14_s12 = sadd.s32 1, %s559_s12  }
 0x111   : > { %p11_p5 = scmp.ge.s32.totalorder %s14_s12, 4  }
 0x113   :  { %13 = sbr.rel (!%p11_p5) target bundleno = 1 (0x1), region = 70 }

// kernel: unet_encoder_forward.20
= control target key start
LH: loop header
LB: loop body
LE: loop exit
PB: predicated region body
PF: predicated region fallthrough
CT: control target
= control target key end

     0   :  { %s415_s12 = smov 0   ;;  %s417_s13 = smov 0   ;;  %s471_s0 = inlined_call_operand.vmem [shape: bf16[32,256], index: 0, kind: input, shape index: {}]   ;;  %s472_s1 = inlined_call_operand.vmem [shape: f32[1,128], index: 1, kind: input, shape index: {}]   ;;  %s473_s2 = inlined_call_operand.vmem [shape: f32[1,128], index: 2, kind: input, shape index: {}]   ;;  %s474_s3 = inlined_call_operand.vmem [shape: bf16[32,128], index: 3, kind: output, shape index: {}]  }
   0x1   :  { %s419_s14 = smov 0  }
   0x2 LB: > { %s316_s15 = sadd.s32 4294967295, %s393_s14   ;;  %s432_s16 = sadd.s32 1, %s393_s14   ;;  %s393_s14 = sphi %s419_s14, %s477_s14   ;;  %s389_s13 = sphi %s417_s13, %s476_s13   ;;  %s385_s12 = sphi %s415_s12, %s475_s12  }
   0x3   : > { %s17_s17 = ssub.s32 %s393_s14, %s432_s16  ;;  %s20_s18 = sadd.s32 1, %s389_s13 }
   0x4   : > { %p18_p0 = scmp.eq.s32.totalorder %s17_s17, 0  ;;  %p27_p1 = scmp.ne.s32.totalorder %s389_s13, %s385_s12 }
   0x5   : > { %p28_p2 = scmp.eq.s32.totalorder %s393_s14, 0  ;;  %p319_p4 = scmp.ge.s32.totalorder %s393_s14, 2 }
   0x6   : > { %s441_s19 = scalar_select %p18_p0, %s389_s13, %s20_s18  }
   0x7   : > { %p29_p3 = por %p28_p2, %p27_p1  ;;  %127 = sbr.rel (%p319_p4) target bundleno = 21 (0x15), region = 24 }
   0xe   : > { %130 = sbr.rel (!%p29_p3) target bundleno = 21 (0x15), region = 28  ;;  %s132_s20 = sand.u32 (%p29_p3), 1, %s389_s13  }
   0xf   : > { %s335_s21 = sshll.u32 (%p29_p3), %s393_s14, 4  ;;  %s320_s22 = sshll.u32 (%p29_p3), %s132_s20, 3 }
  0x10   : > { %s138_s25 = scalar_lea.vmem (%p29_p3), %s471_s0, %s335_s21  ;;  %s134_s26 = scalar_lea.vmem (%p29_p3), [#allocation2], %s320_s22 }
  0x11   : > { %v154_v0 = vld [vmem:[%s138_s25] sm:$0xf] (%p29_p3)  ;;  %v156_v1 = vld [vmem:[%s138_s25 + $0x8] sm:$0xf] (%p29_p3) }
  0x12   : > { %155 = vst [vmem:[%s134_s26] sm:$0xf] (%p29_p3), %v154_v0  ;;  %157 = vst [vmem:[%s134_s26 + $0x4] sm:$0xf] (%p29_p3), %v156_v1 }
  0x15 PF: > { %p324_p5 = scmp.ge.s32.totalorder %s393_s14, 1  ;;  %p183_p6 = scmp.lt.s32.totalorder %s393_s14, 3 }
  0x17   : > { %p184_p7 = pnand %p324_p5, %p183_p6 }
  0x18   : > { %s190_s27 = sand.u32 (!%p184_p7), 1, %s385_s12   ;;  %s326_s28 = sshll.u32 (!%p184_p7), %s316_s15, 1  ;;  %v328_v3 = vld [vmem:[%s472_s1] ss:$0 sm:$0xff] (!%p184_p7) }
  0x19   : > { %187 = sbr.rel (%p184_p7) target bundleno = 39 (0x27), region = 69  ;;  %s325_s29 = sshll.u32 (!%p184_p7), %s190_s27, 3  ;;  %v329_v6 = vld [vmem:[%s473_s2] ss:$0 sm:$0xff] (!%p184_p7) }
  0x1a   : > { %p215_p8 = scmp.lt.s32.totalorder (!%p184_p7), %s326_s28, 3  ;;  %s192_s30 = scalar_lea.vmem (!%p184_p7), [#allocation2], %s325_s29 }
  0x1b   : > { %v339_v2 = vld [vmem:[%s192_s30] sm:$0xff] (!%p184_p7)  }
  0x1c   : > { %v340_v4 = vunpack.c.l.bf16 (!%p184_p7), %v339_v2  ;;  %v341_v5 = vunpack.c.h.bf16 (!%p184_p7), %v339_v2 }
  0x1e   : > { %v231_v7 = vmul.f32 (!%p184_p7), %v340_v4, %v328_v3  ;;  %v232_v8 = vmul.f32 (!%p184_p7), %v341_v5, %v328_v3 }
  0x20   : > { %s479_s28 = smov (!%p215_p8, %s326_s28), 3  ;;  %v240_v9 = vadd.f32 %v329_v6, %v231_v7  ;;  %v241_v10 = vadd.f32 %v329_v6, %v232_v8 }
  0x21   : > { %s327_s8 = sshll.u32 %s479_s28, 2 }
  0x22   : > { %v242_v11 = vmax.f32 %v240_v9, 0.0  ;;  %v243_v12 = vmax.f32 %v241_v10, 0.0  ;;  %s218_s11 = scalar_lea.vmem %s474_s3, %s327_s8 }
  0x24   : > { %v345_v13 = vpack.c.bf16 %v243_v12, %v242_v11 }
  0x26   : > { %346 = vst [vmem:[%s218_s11] sm:$0xff] %v345_v13  }
  0x27 PF: > { %p10_p9 = scmp.ge.s32.totalorder %s432_s16, 4   ;;  %s475_s12 = smov %s389_s13 }
  0x28   : > { %s476_s13 = smov %s441_s19  ;;  %s477_s14 = smov %s432_s16 }
  0x29   :  { %12 = sbr.rel (!%p10_p9) target bundleno = 2 (0x2), region = 108 }

// kernel: unet_encoder_forward.22
= control target key start
LH: loop header
LB: loop body
LE: loop exit
PB: predicated region body
PF: predicated region fallthrough
CT: control target
= control target key end

     0   :  { %s582_s21 = smov 0   ;;  %s584_s22 = smov 0   ;;  %s650_s0 = inlined_call_operand.vmem [shape: bf16[32,128], index: 0, kind: input, shape index: {}]   ;;  %s651_s1 = inlined_call_operand.vmem [shape: bf16[32,256], index: 1, kind: input, shape index: {}]   ;;  %s652_s2 = inlined_call_operand.vmem [shape: f32[1,128], index: 2, kind: input, shape index: {}]   ;;  %s653_s3 = inlined_call_operand.vmem [shape: f32[1,128], index: 3, kind: input, shape index: {}]   ;;  %s654_s4 = inlined_call_operand.vmem [shape: f32[1,128], index: 4, kind: input, shape index: {}]   ;;  %s655_s5 = inlined_call_operand.vmem [shape: f32[1,128], index: 5, kind: input, shape index: {}]   ;;  %s656_s6 = inlined_call_operand.vmem [shape: bf16[32,128], index: 6, kind: output, shape index: {}]  }
   0x1   :  { %s586_s23 = smov 0  }
   0x2 LB: > { %s460_s24 = sadd.s32 4294967295, %s545_s23   ;;  %s599_s25 = sadd.s32 1, %s545_s23   ;;  %s545_s23 = sphi %s586_s23, %s659_s23   ;;  %s541_s22 = sphi %s584_s22, %s658_s22   ;;  %s537_s21 = sphi %s582_s21, %s657_s21  }
   0x3   : > { %s46_s26 = ssub.s32 %s545_s23, %s599_s25  ;;  %s49_s27 = sadd.s32 1, %s541_s22 }
   0x4   : > { %p47_p0 = scmp.eq.s32.totalorder %s46_s26, 0  ;;  %p56_p1 = scmp.ne.s32.totalorder %s541_s22, %s537_s21 }
   0x5   : > { %p57_p2 = scmp.eq.s32.totalorder %s545_s23, 0  ;;  %p463_p4 = scmp.ge.s32.totalorder %s545_s23, 2 }
   0x6   : > { %s608_s28 = scalar_select %p47_p0, %s541_s22, %s49_s27  }
   0x7   : > { %p58_p3 = por %p57_p2, %p56_p1  ;;  %204 = sbr.rel (%p463_p4) target bundleno = 21 (0x15), region = 32 }
   0xe   : > { %216 = sbr.rel (!%p58_p3) target bundleno = 21 (0x15), region = 40  ;;  %s218_s29 = sand.u32 (%p58_p3), 1, %s541_s22  }
   0xf   : > { %s483_s30 = sshll.u32 (%p58_p3), %s545_s23, 4  ;;  %s464_s7 = sshll.u32 (%p58_p3), %s218_s29, 3 }
  0x10   : > { %s412_s10 = scalar_lea.vmem (%p58_p3), %s651_s1, %s483_s30  ;;  %s220_s11 = scalar_lea.vmem (%p58_p3), [#allocation2], %s464_s7 }
  0x11   : > { %v467_v0 = vld [vmem:[%s412_s10 + $0x4] sm:$0xf] (%p58_p3)  ;;  %v468_v1 = vld [vmem:[%s412_s10 + $0xc] sm:$0xf] (%p58_p3) }
  0x12   : > { %242 = vst [vmem:[%s220_s11] sm:$0xf] (%p58_p3), %v467_v0  ;;  %244 = vst [vmem:[%s220_s11 + $0x4] sm:$0xf] (%p58_p3), %v468_v1 }
  0x15 PF: > { %p469_p5 = scmp.ge.s32.totalorder %s545_s23, 1  ;;  %p270_p6 = scmp.lt.s32.totalorder %s545_s23, 3 }
  0x17   : > { %p271_p7 = pnand %p469_p5, %p270_p6 }
  0x18   : > { %s277_s12 = sand.u32 (!%p271_p7), 1, %s537_s21   ;;  %s471_s13 = sshll.u32 (!%p271_p7), %s460_s24, 1  ;;  %v477_v3 = vld [vmem:[%s654_s4] ss:$0 sm:$0xff] (!%p271_p7) }
  0x19   : > { %274 = sbr.rel (%p271_p7) target bundleno = 49 (0x31), region = 81  ;;  %s470_s14 = sshll.u32 (!%p271_p7), %s277_s12, 3  ;;  %v478_v6 = vld [vmem:[%s655_s5] ss:$0 sm:$0xff] (!%p271_p7) }
  0x1a   : > { %p312_p8 = scmp.lt.s32.totalorder (!%p271_p7), %s471_s13, 3  ;;  %s279_s15 = scalar_lea.vmem (!%p271_p7), [#allocation2], %s470_s14  ;;  %v475_v10 = vld [vmem:[%s652_s2] ss:$0 sm:$0xff] (!%p271_p7) }
  0x1b   : > { %v491_v2 = vld [vmem:[%s279_s15] sm:$0xff] (!%p271_p7)  }
  0x1c   : > { %v492_v4 = vunpack.c.l.bf16 (!%p271_p7), %v491_v2  ;;  %v493_v5 = vunpack.c.h.bf16 (!%p271_p7), %v491_v2  ;;  %v476_v15 = vld [vmem:[%s653_s3] ss:$0 sm:$0xff] (!%p271_p7) }
  0x1e   : > { %v359_v7 = vmul.f32 (!%p271_p7), %v492_v4, %v477_v3  ;;  %v360_v8 = vmul.f32 (!%p271_p7), %v493_v5, %v477_v3 }
  0x20   : > { %s661_s13 = smov (!%p312_p8, %s471_s13), 3  ;;  %v368_v13 = vadd.f32 %v478_v6, %v359_v7  ;;  %v369_v14 = vadd.f32 %v478_v6, %v360_v8 }
  0x21   : > { %s472_s18 = sshll.u32 %s661_s13, 2 }
  0x22   : > { %s315_s24 = scalar_lea.vmem %s650_s0, %s472_s18  ;;  %v370_v20 = vmax.f32 %v368_v13, 0.0  ;;  %v371_v21 = vmax.f32 %v369_v14, 0.0  ;;  %s322_s9 = scalar_lea.vmem %s656_s6, %s472_s18 }
  0x23   : > { %v487_v9 = vld [vmem:[%s315_s24] sm:$0xff]  }
  0x24   : > { %v488_v11 = vunpack.c.l.bf16 %v487_v9  ;;  %v489_v12 = vunpack.c.h.bf16 %v487_v9 }
  0x26   : > { %v335_v16 = vmul.f32 %v488_v11, %v475_v10  ;;  %v336_v17 = vmul.f32 %v489_v12, %v475_v10 }
  0x28   : > { %v344_v18 = vadd.f32 %v476_v15, %v335_v16  ;;  %v345_v19 = vadd.f32 %v476_v15, %v336_v17 }
  0x2a   : > { %v346_v22 = vmax.f32 %v344_v18, 0.0  ;;  %v347_v23 = vmax.f32 %v345_v19, 0.0 }
  0x2c   : > { %v372_v24 = vadd.f32 %v370_v20, %v346_v22  ;;  %v373_v25 = vadd.f32 %v371_v21, %v347_v23 }
  0x2e   : > { %v497_v26 = vpack.c.bf16 %v373_v25, %v372_v24 }
  0x30   : > { %498 = vst [vmem:[%s322_s9] sm:$0xff] %v497_v26  }
  0x31 PF: > { %p13_p9 = scmp.ge.s32.totalorder %s599_s25, 4   ;;  %s657_s21 = smov %s541_s22 }
  0x32   : > { %s658_s22 = smov %s608_s28  ;;  %s659_s23 = smov %s599_s25 }
  0x33   :  { %15 = sbr.rel (!%p13_p9) target bundleno = 2 (0x2), region = 123 }

// kernel: unet_encoder_forward.21
= control target key start
LH: loop header
LB: loop body
LE: loop exit
PB: predicated region body
PF: predicated region fallthrough
CT: control target
= control target key end

     0   :  { %s525_s12 = smov 0   ;;  %s574_s0 = inlined_call_operand.vmem [shape: bf16[32,128], index: 0, kind: input, shape index: {}]   ;;  %s575_s1 = inlined_call_operand.vmem [shape: bf16[128,128], index: 1, kind: input, shape index: {}]   ;;  %s576_s2 = inlined_call_operand.vmem [shape: bf16[32,128], index: 2, kind: output, shape index: {0}]   ;;  %s577_s3 = inlined_call_operand.vmem [shape: f32[16,128], index: 3, kind: output, shape index: {1}]  }
   0x1 LB: > { %s531_s13 = sadd.s32 4294967295, %s501_s12   ;;  %p421_p0 = scmp.ge.s32.totalorder %s501_s12, 1  ;;  %s501_s12 = sphi %s525_s12, %s14_s12  }
   0x2   : > { %p141_p1 = scmp.lt.s32.totalorder %s501_s12, 3 }
   0x4   : > { %p142_p2 = pnand %p421_p0, %p141_p1 }
   0x5   : > { %v486_v0 = vld [vmem:[%s575_s1] sm:$0xff] (!%p142_p2)   ;;  %v503_v1 = vmov (!%p142_p2), 0.0   ;;  %v487_v2 = vld [vmem:[%s575_s1 + $0x8] sm:$0xff] (!%p142_p2)   ;;  %vm504_vm0 = vmmov (!%p142_p2), 0   ;;  %s422_s18 = sshll.u32 (!%p142_p2), %s531_s13, 1  ;;  %v488_v3 = vld [vmem:[%s575_s1 + $0x10] sm:$0xff] (!%p142_p2)  }
   0x6   : > { %145 = sbr.rel (%p142_p2) target bundleno = 271 (0x10f), region = 28  ;;  %456 = vmatprep.subr.bf16.mxu0 (!%p142_p2), %v503_v1  ;;  %472 = vmatprep.mubr.msk.bf16.mxu0 (!%p142_p2), %vm504_vm0, %v503_v1  ;;  %p170_p3 = scmp.lt.s32.totalorder (!%p142_p2), %s422_s18, 3  ;;  %v489_v4 = vld [vmem:[%s575_s1 + $0x18] sm:$0xff] (!%p142_p2)   ;;  %v490_v5 = vld [vmem:[%s575_s1 + $0x20] sm:$0xff] (!%p142_p2)   ;;  %v491_v6 = vld [vmem:[%s575_s1 + $0x28] sm:$0xff] (!%p142_p2)   ;;  %vm325_vm1 = vcmask (!%p142_p2), 1040384  }
   0x7   : > { %457 = vmatpush3.bf16.msra.mxu0 (!%p142_p2), %v486_v0  ;;  %v492_v7 = vld [vmem:[%s575_s1 + $0x30] sm:$0xff] (!%p142_p2)   ;;  %v493_v8 = vld [vmem:[%s575_s1 + $0x38] sm:$0xff] (!%p142_p2)   ;;  %p181_p4 = scmp.lt.s32.totalorder (!%p142_p2), %s531_s13, 1  ;;  %vm327_vm2 = vcmask (!%p142_p2), 1041408  }
   0x8   : > { %458 = vmatprep.subr.bf16.mxu0 (!%p142_p2), %v503_v1 }
   0xb   : > { %459 = vmatpush3.bf16.msra.mxu0 (!%p142_p2), %v487_v2 }
   0xc   : > { %460 = vmatprep.subr.bf16.mxu0 (!%p142_p2), %v503_v1 }
   0xd   : > { %s579_s18 = smov (!%p170_p3, %s422_s18), 3  ;;  %s581_s13 = smov (!%p181_p4, %s531_s13), 1 }
   0xe   : > { %s423_s21 = sshll.u32 %s579_s18, 2  ;;  %s426_s11 = sshll.u32 %s581_s13, 3 }
   0xf   : > { %s173_s24 = scalar_lea.vmem %s574_s0, %s423_s21  ;;  %461 = vmatpush3.bf16.msra.mxu0 %v488_v3  ;;  %s179_s10 = scalar_lea.vmem %s576_s2, %s423_s21 }
  0x10   : > { %462 = vmatprep.subr.bf16.mxu0 %v503_v1  ;;  %v494_v9 = vld [vmem:[%s173_s24] sm:$0xff]   ;;  %s184_s16 = scalar_lea.vmem %s577_s3, %s426_s11 }
  0x13   : > { %463 = vmatpush3.bf16.msra.mxu0 %v489_v4 }
  0x14   : > { %464 = vmatprep.subr.bf16.mxu0 %v503_v1 }
  0x17   : > { %465 = vmatpush3.bf16.msra.mxu0 %v490_v5 }
  0x18   : > { %466 = vmatprep.subr.bf16.mxu0 %v503_v1 }
  0x1b   : > { %467 = vmatpush3.bf16.msra.mxu0 %v491_v6 }
  0x1c   : > { %468 = vmatprep.subr.bf16.mxu0 %v503_v1 }
  0x1f   : > { %469 = vmatpush3.bf16.msra.mxu0 %v492_v7 }
  0x20   : > { %470 = vmatprep.subr.bf16.mxu0 %v503_v1 }
  0x23   : > { %471 = vmatpush3.bf16.msra.mxu0 %v493_v8 }
  0x26   : > { %473 = vmatmul.mubr.bf16.vlgmr.msra.gmra.mrb[0].mxu0 %v494_v9 }
  0xf9   : > { %v292_v10 = vpop.f32.mrb[0].mxu0 }
  0xfa   : > { %v474_v11 = vpop.f32.mrb[1].mxu0  ;;  %v316_v13 = vmul.f32 %v292_v10, %v292_v10 }
  0xfb   : > { %v295_v12 = vpop.f32.mrb[2].mxu0 }
  0xfc   : > { %v445_v14 = vpack.c.bf16 %v295_v12, %v292_v10  ;;  %v309_v15 = vadd.f32 %v295_v12, %v292_v10  ;;  %v317_v16 = vmul.f32 %v295_v12, %v295_v12  ;;  %v475_v17 = vpop.f32.mrb[3].mxu0 }
  0xfe   : > { %446 = vst [vmem:[%s179_s10] sm:$0xff] %v445_v14   ;;  %v310_v18 = vrot.slane %v309_v15, 4  ;;  %v318_v19 = vadd.f32 %v317_v16, %v316_v13 }
 0x100   : > { %v311_v20 = vadd.f32 %v310_v18, %v309_v15  ;;  %v319_v21 = vrot.slane %v318_v19, 4 }
 0x102   : > { %v312_v22 = vrot.slane %v311_v20, 2  ;;  %v320_v23 = vadd.f32 %v319_v21, %v318_v19 }
 0x104   : > { %v313_v24 = vadd.f32 %v312_v22, %v311_v20  ;;  %v321_v25 = vrot.slane %v320_v23, 2 }
 0x106   : > { %v314_v26 = vrot.slane %v313_v24, 1  ;;  %v322_v27 = vadd.f32 %v321_v25, %v320_v23 }
 0x108   : > { %v323_v28 = vrot.slane %v322_v27, 1  ;;  %v315_v29 = vadd.f32 %v314_v26, %v313_v24 }
 0x10a   : > { %v324_v30 = vadd.f32 %v323_v28, %v322_v27 }
 0x10c   : > { %v326_v31 = vsel %vm325_vm1, %v315_v29, %v324_v30 }
 0x10d   : > { %v328_v32 = vsel %vm327_vm2, %v326_v31, 0.0 }
 0x10e   : > { %329 = vst [vmem:[%s184_s16] sm:$0xff] %v328_v32 }
 0x10f PF: > { %s14_s12 = sadd.s32 1, %s501_s12  }
 0x110   : > { %p11_p5 = scmp.ge.s32.totalorder %s14_s12, 4  }
 0x112   :  { %13 = sbr.rel (!%p11_p5) target bundleno = 1 (0x1), region = 70 }

// kernel: unet_encoder_forward.23
= control target key start
LH: loop header
LB: loop body
LE: loop exit
PB: predicated region body
PF: predicated region fallthrough
CT: control target
= control target key end

     0   :  { %v170_v0 = vmov 0.0   ;;  %vm171_vm0 = vmmov 0   ;;  %s217_s1 = inlined_call_operand.vmem [shape: bf16[128,128], index: 1, kind: input, shape index: {}]   ;;  %s218_s0 = inlined_call_operand.vmem [shape: bf16[8,128], index: 0, kind: input, shape index: {}]   ;;  %s219_s2 = inlined_call_operand.vmem [shape: bf16[8,128], index: 2, kind: output, shape index: {}]  }
   0x1   :  { %140 = vmatprep.subr.bf16.mxu0 %v170_v0  ;;  %v162_v1 = vld [vmem:[%s217_s1] sm:$0xff]   ;;  %156 = vmatprep.mubr.msk.bf16.mxu0 %vm171_vm0, %v170_v0  ;;  %v163_v2 = vld [vmem:[%s217_s1 + $0x8] sm:$0xff]   ;;  %v164_v3 = vld [vmem:[%s217_s1 + $0x10] sm:$0xff]  }
   0x2   :  { %141 = vmatpush3.bf16.msra.mxu0 %v162_v1  ;;  %v165_v4 = vld [vmem:[%s217_s1 + $0x18] sm:$0xff]   ;;  %v166_v5 = vld [vmem:[%s217_s1 + $0x20] sm:$0xff]   ;;  %v167_v6 = vld [vmem:[%s217_s1 + $0x28] sm:$0xff]  }
   0x3   :  { %142 = vmatprep.subr.bf16.mxu0 %v170_v0  ;;  %v168_v7 = vld [vmem:[%s217_s1 + $0x30] sm:$0xff]   ;;  %v169_v8 = vld [vmem:[%s217_s1 + $0x38] sm:$0xff]   ;;  %v12_v9 = vld [vmem:[%s218_s0] sm:$0xf] }
   0x6   :  { %143 = vmatpush3.bf16.msra.mxu0 %v163_v2 }
   0x7   :  { %144 = vmatprep.subr.bf16.mxu0 %v170_v0 }
   0xa   :  { %145 = vmatpush3.bf16.msra.mxu0 %v164_v3 }
   0xb   :  { %146 = vmatprep.subr.bf16.mxu0 %v170_v0 }
   0xe   :  { %147 = vmatpush3.bf16.msra.mxu0 %v165_v4 }
   0xf   :  { %148 = vmatprep.subr.bf16.mxu0 %v170_v0 }
  0x12   :  { %149 = vmatpush3.bf16.msra.mxu0 %v166_v5 }
  0x13   :  { %150 = vmatprep.subr.bf16.mxu0 %v170_v0 }
  0x16   :  { %151 = vmatpush3.bf16.msra.mxu0 %v167_v6 }
  0x17   :  { %152 = vmatprep.subr.bf16.mxu0 %v170_v0 }
  0x1a   :  { %153 = vmatpush3.bf16.msra.mxu0 %v168_v7 }
  0x1b   :  { %154 = vmatprep.subr.bf16.mxu0 %v170_v0 }
  0x1e   :  { %155 = vmatpush3.bf16.msra.mxu0 %v169_v8 }
  0x21   :  { %157 = vmatmul.mubr.bf16.vlgmr.msra.gmra.mrb[0].mxu0 %v12_v9 }
  0xf4   :  { %v111_v10 = vpop.f32.mrb[0].mxu0 }
  0xf5   :  { %v117_v11 = vpack.c.bf16 %v111_v10, %v111_v10  ;;  %v158_v12 = vpop.f32.mrb[1].mxu0 }
  0xf6   :  { %v114_v13 = vpop.f32.mrb[2].mxu0 }
  0xf7   :  { %118 = vst [vmem:[%s219_s2] sm:$0xf] %v117_v11  ;;  %v159_v14 = vpop.f32.mrb[3].mxu0 }

// kernel: unet_encoder_forward.24
= control target key start
LH: loop header
LB: loop body
LE: loop exit
PB: predicated region body
PF: predicated region fallthrough
CT: control target
= control target key end

     0   :  { %s229_s6 = smov 0   ;;  %s249_s0 = inlined_call_operand.vmem [shape: bf16[2,4,128], index: 0, kind: input, shape index: {}]   ;;  %s250_s1 = inlined_call_operand.vmem [shape: bf16[2,4,128], index: 1, kind: output, shape index: {}]  }
   0x1 LB: > { %s192_s7 = sadd.s32 4294967295, %s217_s6   ;;  %p196_p0 = scmp.ge.s32.totalorder %s217_s6, 1  ;;  %s217_s6 = sphi %s229_s6, %s11_s6  }
   0x2   : > { %p86_p1 = scmp.lt.s32.totalorder %s217_s6, 3 }
   0x4   : > { %p87_p2 = pnand %p196_p0, %p86_p1 }
   0x5   : > { %p104_p3 = scmp.lt.s32.totalorder (!%p87_p2), %s192_s7, 1  ;;  %vm114_vm0 = vcmask (!%p87_p2), 1043456  }
   0x6   : > { %90 = sbr.rel (%p87_p2) target bundleno = 71 (0x47), region = 24 }
   0xd   : > { %s252_s7 = smov (!%p104_p3, %s192_s7), 1 }
   0xe   : > { %s197_s8 = sshll.u32 %s252_s7, 1 }
   0xf   : > { %s107_s11 = scalar_lea.vmem %s249_s0, %s197_s8  ;;  %s111_s14 = scalar_lea.vmem %s250_s1, %s197_s8 }
  0x10   : > { %v112_v0 = vld [vmem:[%s107_s11] sm:$0x3] }
  0x11   : > { %v113_v1 = vunpack.c.l.bf16 %v112_v0 }
  0x13   : > { %v115_v2 = vsel %vm114_vm0, %v113_v1, 0.0 }
  0x14   : > { %v116_v3 = vrot.slane %v115_v2, 4 }
  0x16   : > { %v117_v4 = vadd.f32 %v116_v3, %v115_v2 }
  0x18   : > { %v118_v5 = vrot.slane %v117_v4, 2 }
  0x1a   : > { %v119_v6 = vadd.f32 %v118_v5, %v117_v4 }
  0x1c   : > { %v120_v7 = vrot.slane %v119_v6, 1 }
  0x1e   : > { %v121_v8 = vadd.f32 %v120_v7, %v119_v6 }
  0x20   : > { %v123_v9 = vmul.f32 0.25, %v121_v8 }
  0x22   : > { %v124_v10 = vsub.f32 %v113_v1, %v123_v9 }
  0x24   : > { %v125_v11 = vmul.f32 %v124_v10, %v124_v10 }
  0x26   : > { %v126_v12 = vsel %vm114_vm0, %v125_v11, 0.0 }
  0x27   : > { %v127_v13 = vrot.slane %v126_v12, 4 }
  0x29   : > { %v128_v14 = vadd.f32 %v127_v13, %v126_v12 }
  0x2b   : > { %v129_v15 = vrot.slane %v128_v14, 2 }
  0x2d   : > { %v130_v16 = vadd.f32 %v129_v15, %v128_v14 }
  0x2f   : > { %v131_v17 = vrot.slane %v130_v16, 1 }
  0x31   : > { %v132_v18 = vadd.f32 %v131_v17, %v130_v16 }
  0x33   : > { %v133_v19 = vmul.f32 0.25, %v132_v18 }
  0x35   : > { %v134_v20 = vadd.f32 1e-05, %v133_v19 }
  0x37   : > { %209 = vrsqrt.f32 %v134_v20 }
  0x41   : > { %v210_v21 = vpop.eup %209 }
  0x42   : > { %v136_v22 = vmul.f32 %v210_v21, %v124_v10 }
  0x44   : > { %v137_v23 = vpack.c.bf16 %v136_v22, %v136_v22 }
  0x46   : > { %138 = vst [vmem:[%s111_s14] sm:$0x3] %v137_v23 }
  0x47 PF: > { %s11_s6 = sadd.s32 1, %s217_s6  }
  0x48   : > { %p8_p4 = scmp.ge.s32.totalorder %s11_s6, 4  }
  0x4a   :  { %10 = sbr.rel (!%p8_p4) target bundleno = 1 (0x1), region = 54 }

// kernel: unet_encoder_forward.25
= control target key start
LH: loop header
LB: loop body
LE: loop exit
PB: predicated region body
PF: predicated region fallthrough
CT: control target
= control target key end

     0   :  { %v169_v0 = vmov 0.0   ;;  %vm170_vm0 = vmmov 0   ;;  %s216_s1 = inlined_call_operand.vmem [shape: bf16[128,128], index: 1, kind: input, shape index: {}]   ;;  %s217_s0 = inlined_call_operand.vmem [shape: bf16[8,128], index: 0, kind: input, shape index: {}]   ;;  %s218_s2 = inlined_call_operand.vmem [shape: f32[8,128], index: 2, kind: output, shape index: {}]  }
   0x1   :  { %139 = vmatprep.subr.bf16.mxu0 %v169_v0  ;;  %v161_v1 = vld [vmem:[%s216_s1] sm:$0xff]   ;;  %155 = vmatprep.mubr.msk.bf16.mxu0 %vm170_vm0, %v169_v0  ;;  %v162_v2 = vld [vmem:[%s216_s1 + $0x8] sm:$0xff]   ;;  %v163_v3 = vld [vmem:[%s216_s1 + $0x10] sm:$0xff]  }
   0x2   :  { %140 = vmatpush3.bf16.msra.mxu0 %v161_v1  ;;  %v164_v4 = vld [vmem:[%s216_s1 + $0x18] sm:$0xff]   ;;  %v165_v5 = vld [vmem:[%s216_s1 + $0x20] sm:$0xff]   ;;  %v166_v6 = vld [vmem:[%s216_s1 + $0x28] sm:$0xff]  }
   0x3   :  { %141 = vmatprep.subr.bf16.mxu0 %v169_v0  ;;  %v167_v7 = vld [vmem:[%s216_s1 + $0x30] sm:$0xff]   ;;  %v168_v8 = vld [vmem:[%s216_s1 + $0x38] sm:$0xff]   ;;  %v12_v9 = vld [vmem:[%s217_s0] sm:$0xf] }
   0x6   :  { %142 = vmatpush3.bf16.msra.mxu0 %v162_v2 }
   0x7   :  { %143 = vmatprep.subr.bf16.mxu0 %v169_v0 }
   0xa   :  { %144 = vmatpush3.bf16.msra.mxu0 %v163_v3 }
   0xb   :  { %145 = vmatprep.subr.bf16.mxu0 %v169_v0 }
   0xe   :  { %146 = vmatpush3.bf16.msra.mxu0 %v164_v4 }
   0xf   :  { %147 = vmatprep.subr.bf16.mxu0 %v169_v0 }
  0x12   :  { %148 = vmatpush3.bf16.msra.mxu0 %v165_v5 }
  0x13   :  { %149 = vmatprep.subr.bf16.mxu0 %v169_v0 }
  0x16   :  { %150 = vmatpush3.bf16.msra.mxu0 %v166_v6 }
  0x17   :  { %151 = vmatprep.subr.bf16.mxu0 %v169_v0 }
  0x1a   :  { %152 = vmatpush3.bf16.msra.mxu0 %v167_v7 }
  0x1b   :  { %153 = vmatprep.subr.bf16.mxu0 %v169_v0 }
  0x1e   :  { %154 = vmatpush3.bf16.msra.mxu0 %v168_v8 }
  0x21   :  { %156 = vmatmul.mubr.bf16.vlgmr.msra.gmra.mrb[0].mxu0 %v12_v9 }
  0xf4   :  { %v111_v10 = vpop.f32.mrb[0].mxu0 }
  0xf5   :  { %117 = vst [vmem:[%s218_s2] sm:$0xff] %v111_v10  ;;  %v157_v11 = vpop.f32.mrb[1].mxu0 }
  0xf6   :  { %v114_v12 = vpop.f32.mrb[2].mxu0 }
  0xf7   :  { %v158_v13 = vpop.f32.mrb[3].mxu0 }

</bundles_post_ra>
